<compile_context>
chip_gen: v5e
topology: v5e:2x2
jax: 0.10.0
libtpu: 0.0.40
codegen_flags: <defaults>
</compile_context>

<pallas_src>
import numpy as np
import jax
import jax.numpy as jnp
from jax.experimental import pallas as pl
from jax.experimental.pallas import tpu as pltpu

# ---------------- problem sizes (small, consistent with the module) ----------
BATCH = 2
NUM_BOXES = 8
IMAGE_FEATURE_SIZE = 64     # image_feature_size
EMBEDDING_SIZE = 32         # embedding_size (GloVe dim in the real model)
HIDDEN_SIZE = 32            # hidden_size
ATTN_PROJ_SIZE = 16         # attention_projection_size
VOCAB_SIZE = 48
RAW_CAPTION_LEN = 6         # caption_tokens length before boundary tokens

PAD_INDEX = 0               # '@@UNKNOWN@@' (padding) index
BOUNDARY_INDEX = 1          # '@@BOUNDARY@@' index


# ----------------------------- Pallas kernel ---------------------------------
def updown_train_kernel(tok_in_ref, tok_tgt_ref,            # VMEM int32 (T*B, 1)
                        img_ref,                             # VMEM (B, N, F)
                        emb_ref,                             # (V, E) embedding table
                        wout_t_ref,                          # (E, V) tied output (pre-T)
                        wih1e_ref, wih1v_ref, wih1h_ref,     # attention LSTM W_ih split
                        whh1_ref, b1_ref,                    # attention LSTM W_hh, bias
                        wq_ref, wf_ref, wa_ref,              # BUTD attention
                        wih2v_ref, wih2h_ref,                # language LSTM W_ih split
                        whh2_ref, b2_ref,                    # language LSTM W_hh, bias
                        wg_ref, bg_ref,                      # to_glove
                        loss_ref):                           # out (B, 1)
    B, N, F = img_ref.shape
    V, E = emb_ref.shape
    H = whh1_ref.shape[0]
    P = wq_ref.shape[1]
    H4 = 4 * H
    TB = tok_in_ref.shape[0]
    T = TB // B

    # ------------------- loop-invariant precomputation -----------------------
    img = img_ref[...]                                                # (B,N,F)
    # mask of "real" (non zero-padded) boxes and masked mean feature
    # NOTE: divides by zero for an image with no valid boxes (same as reference)
    feat_mask = (jnp.sum(jnp.abs(img), axis=-1) != 0.0).astype(jnp.float32)   # (B,N)
    num_valid = jnp.sum(feat_mask, axis=-1, keepdims=True)                    # (B,1)
    avg_feat = jnp.sum(img, axis=1) / num_valid                               # (B,F)

    # projected image features for attention (state independent)
    proj_feat = jnp.dot(img.reshape(B * N, F), wf_ref[...],
                        preferred_element_type=jnp.float32).reshape(B, N, P)

    # hoisted broadcasts (JAX does not CSE broadcast_in_dim inside the loop)
    wa3 = wa_ref[...].reshape(1, 1, P)                                # (1,1,P)
    b2_b = jnp.broadcast_to(b2_ref[...], (B, H4))                     # (B,4H)

    # loop-invariant block of the attention-LSTM input projection:
    # avg_feat @ W_ih[E:E+F] + (b_ih + b_hh)
    avg_ih1 = (jnp.dot(avg_feat, wih1v_ref[...],
                       preferred_element_type=jnp.float32) + b1_ref[...])     # (B,4H)

    # ---- all-step embedding lookup as a one-hot MXU matmul (no gathers) -----
    tok_in = tok_in_ref[...]                                          # (TB,1) int32
    tok_tgt = tok_tgt_ref[...]                                        # (TB,1) int32
    vocab_iota = jax.lax.broadcasted_iota(jnp.int32, (TB, V), 1)
    onehot_in = (vocab_iota == tok_in).astype(jnp.float32)            # (TB,V)
    emb_all = jnp.dot(onehot_in, emb_ref[...],
                      preferred_element_type=jnp.float32)             # (TB,E)
    # per-step W_ih contribution of the token embedding, precomputed for all t
    emb_ih1_all = jnp.dot(emb_all, wih1e_ref[...],
                          preferred_element_type=jnp.float32)         # (TB,4H)

    # hoisted lane mask selecting the tanh ("g") gate of the fused 4H gates
    lane4h = jax.lax.broadcasted_iota(jnp.int32, (B, H4), 1)
    g_mask = jnp.logical_and(lane4h >= 2 * H, lane4h < 3 * H)

    def lstm_gates(pre, c):
        # PyTorch LSTMCell gate order: i, f, g, o.  Single full-width sigmoid /
        # tanh pass + lane-mask select, then static 32-lane slices.
        act = jnp.where(g_mask, jnp.tanh(pre), jax.nn.sigmoid(pre))
        i = act[:, 0:H]
        f = act[:, H:2 * H]
        g = act[:, 2 * H:3 * H]
        o = act[:, 3 * H:4 * H]
        c_new = f * c + i * g
        h_new = o * jnp.tanh(c_new)
        return h_new, c_new

    # ------------------------------ recurrence --------------------------------
    zeros_h = jnp.zeros((B, H), jnp.float32)
    h1, c1, h2, c2 = zeros_h, zeros_h, zeros_h, zeros_h
    h2_steps = []
    for t in range(T):                              # static unroll, static slices
        # ---- attention LSTM: split-input matmuls (no lane concat) -----------
        pre1 = (avg_ih1
                + emb_ih1_all[t * B:(t + 1) * B, :]
                + jnp.dot(h2, wih1h_ref[...], preferred_element_type=jnp.float32)
                + jnp.dot(h1, whh1_ref[...], preferred_element_type=jnp.float32))
        h1, c1 = lstm_gates(pre1, c1)

        # ---- bottom-up top-down attention ------------------------------------
        proj_q = jnp.dot(h1, wq_ref[...], preferred_element_type=jnp.float32)  # (B,P)
        att_hidden = jnp.tanh(proj_feat + proj_q.reshape(B, 1, P))             # (B,N,P)
        scores = jnp.sum(att_hidden * wa3, axis=-1)                            # (B,N)
        # allennlp masked_softmax + renormalisation, fused to one reciprocal:
        #   softmax(s*m)*m / (sum+1e-13)  ==  q / (sum(q) + 1e-13*sum(p))
        s = scores * feat_mask
        p = jnp.exp(s - jnp.max(s, axis=-1, keepdims=True))
        q = p * feat_mask
        denom = (jnp.sum(q, axis=-1, keepdims=True)
                 + 1e-13 * jnp.sum(p, axis=-1, keepdims=True))
        att = q * pl.reciprocal(denom, approx=True)                            # (B,N)
        # attention pooling on the MXU (batched contraction over boxes)
        attended = jnp.einsum("bqn,bnf->bqf", att.reshape(B, 1, N), img,
                              preferred_element_type=jnp.float32).reshape(B, F)

        # ---- language LSTM: split-input matmuls (no lane concat) -------------
        pre2 = (b2_b
                + jnp.dot(attended, wih2v_ref[...], preferred_element_type=jnp.float32)
                + jnp.dot(h1, wih2h_ref[...], preferred_element_type=jnp.float32)
                + jnp.dot(h2, whh2_ref[...], preferred_element_type=jnp.float32))
        h2, c2 = lstm_gates(pre2, c2)
        h2_steps.append(h2)

    # -------- deferred output head: all steps at once, off the critical path --
    h2_all = jnp.concatenate(h2_steps, axis=0)                        # (TB,H), t-major
    glove_all = jnp.tanh(jnp.dot(h2_all, wg_ref[...],
                                 preferred_element_type=jnp.float32)
                         + jnp.broadcast_to(bg_ref[...], (TB, E)))    # (TB,E)
    logits_all = jnp.dot(glove_all, wout_t_ref[...],
                         preferred_element_type=jnp.float32)          # (TB,V)

    m = jnp.max(logits_all, axis=-1, keepdims=True)
    lse = m + jnp.log(jnp.sum(jnp.exp(logits_all - m), axis=-1, keepdims=True))
    onehot_tgt = (vocab_iota == tok_tgt).astype(jnp.float32)          # (TB,V)
    logit_tgt = jnp.sum(onehot_tgt * logits_all, axis=-1, keepdims=True)  # (TB,1)
    w_all = (tok_tgt != PAD_INDEX).astype(jnp.float32)                # (TB,1)
    nll_w = (lse - logit_tgt) * w_all                                 # (TB,1)

    # per-image sums over time (rows are t-major; static tiny slices)
    nll_sum = jnp.zeros((B, 1), jnp.float32)
    w_sum = jnp.zeros((B, 1), jnp.float32)
    for t in range(T):
        nll_sum = nll_sum + nll_w[t * B:(t + 1) * B, :]
        w_sum = w_sum + w_all[t * B:(t + 1) * B, :]

    # loss_b = target_len_b * ( sum_t nll*w / (target_len_b + 1e-13) )
    loss_ref[...] = w_sum * (nll_sum / (w_sum + 1e-13))


# ----------------------------- JAX wrapper ------------------------------------
def updown_loss_pallas(params, image_features_3d, tok_in, tok_tgt):
    B, N, F = image_features_3d.shape
    T = tok_in.shape[1]
    E = EMBEDDING_SIZE

    # t-major flattened token ids as (T*B, 1) int32 columns (VMEM)
    tok_in_col = jnp.transpose(tok_in).reshape(T * B, 1).astype(jnp.int32)
    tok_tgt_col = jnp.transpose(tok_tgt).reshape(T * B, 1).astype(jnp.int32)

    # split LSTM input-to-hidden weights by input component so the kernel does
    # no per-step lane concatenation and can hoist the avg_feat / embedding blocks
    wih1 = params["wih1_t"]
    wih1_e, wih1_v, wih1_h = wih1[:E], wih1[E:E + F], wih1[E + F:]
    wih2 = params["wih2_t"]
    wih2_v, wih2_h = wih2[:F], wih2[F:]

    args = (tok_in_col, tok_tgt_col, image_features_3d,
            params["emb_w"], params["wout_t"],
            wih1_e, wih1_v, wih1_h, params["whh1_t"], params["b1"],
            params["wq_t"], params["wf_t"], params["wa"],
            wih2_v, wih2_h, params["whh2_t"], params["b2"],
            params["wg_t"], params["bg"])
    # NOTE: single grid point (B=2, latency-bound).  For larger batches add a
    # leading grid axis over batch with dimension_semantics=("parallel",).
    out = pl.pallas_call(
        updown_train_kernel,
        out_shape=jax.ShapeDtypeStruct((B, 1), jnp.float32),
        in_specs=[pl.BlockSpec(memory_space=pltpu.MemorySpace.VMEM)] * len(args),
        out_specs=pl.BlockSpec(memory_space=pltpu.MemorySpace.VMEM),
    )(*args)
    return out[:, 0]


# --------------------------- pure-JAX reference --------------------------------
def updown_loss_ref(params, img, tok_in, tok_tgt):
    B, N, F = img.shape
    H = HIDDEN_SIZE
    T = tok_in.shape[1]
    feat_mask = (jnp.sum(jnp.abs(img), axis=-1) != 0.0).astype(jnp.float32)
    avg_feat = jnp.sum(img, axis=1) / jnp.sum(feat_mask, axis=-1, keepdims=True)
    proj_feat = jnp.einsum("bnf,fp->bnp", img, params["wf_t"])

    def lstm(x, h, c, w_ih, w_hh, b):
        g = x @ w_ih + h @ w_hh + b
        i, f, gg, o = jnp.split(g, 4, axis=-1)
        c = jax.nn.sigmoid(f) * c + jax.nn.sigmoid(i) * jnp.tanh(gg)
        return jax.nn.sigmoid(o) * jnp.tanh(c), c

    h1 = c1 = h2 = c2 = jnp.zeros((B, H), jnp.float32)
    nll_sum = w_sum = jnp.zeros((B,), jnp.float32)
    for t in range(T):
        emb_t = params["emb_w"][tok_in[:, t]]
        h1, c1 = lstm(jnp.concatenate([emb_t, avg_feat, h2], -1), h1, c1,
                      params["wih1_t"], params["whh1_t"], params["b1"])
        proj_q = h1 @ params["wq_t"]
        scores = jnp.sum(jnp.tanh(proj_feat + proj_q[:, None, :])
                         * params["wa"].reshape(1, 1, -1), -1)
        p = jax.nn.softmax(scores * feat_mask, axis=-1) * feat_mask
        att = p / (jnp.sum(p, -1, keepdims=True) + 1e-13)
        attended = jnp.sum(att[:, :, None] * img, axis=1)
        h2, c2 = lstm(jnp.concatenate([attended, h1], -1), h2, c2,
                      params["wih2_t"], params["whh2_t"], params["b2"])
        glove = jnp.tanh(h2 @ params["wg_t"] + params["bg"])
        logits = glove @ params["wout_t"]
        logp = jax.nn.log_softmax(logits, axis=-1)
        tgt = tok_tgt[:, t]
        nll = -jnp.take_along_axis(logp, tgt[:, None], axis=-1)[:, 0]
        w = (tgt != PAD_INDEX).astype(jnp.float32)
        nll_sum = nll_sum + nll * w
        w_sum = w_sum + w
    return w_sum * (nll_sum / (w_sum + 1e-13))


# ------------------------------- glue -----------------------------------------
def add_sentence_boundaries_np(tokens, pad_idx, boundary_idx):
    """allennlp add_sentence_boundary_token_ids (2-D case, zero/pad filled)."""
    B, T = tokens.shape
    lengths = (tokens != pad_idx).sum(axis=1)
    out = np.full((B, T + 2), pad_idx, dtype=np.int32)
    out[:, 1:-1] = tokens
    out[:, 0] = boundary_idx
    out[np.arange(B), lengths + 1] = boundary_idx
    return out


def make_params(key):
    V, E, F, H, P = VOCAB_SIZE, EMBEDDING_SIZE, IMAGE_FEATURE_SIZE, HIDDEN_SIZE, ATTN_PROJ_SIZE
    ks = jax.random.split(key, 12)
    n = lambda k, shape, s=0.1: (s * jax.random.normal(k, shape)).astype(jnp.float32)
    emb_w = n(ks[0], (V, E))               # embedding table (== tied output weights)
    params = dict(
        emb_w=emb_w,
        wout_t=jnp.transpose(emb_w),       # (E,V) pre-transposed tied output layer
        # attention LSTMCell: input = [embedding, avg_features, h2]
        wih1_t=n(ks[1], (E + F + H, 4 * H)),
        whh1_t=n(ks[2], (H, 4 * H)),
        b1=n(ks[3], (1, 4 * H), 0.01),     # b_ih + b_hh combined
        # BUTD attention (all bias-free linears)
        wq_t=n(ks[4], (H, P)),
        wf_t=n(ks[5], (F, P)),
        wa=n(ks[6], (1, P)),
        # language LSTMCell: input = [attended_features, h1]
        wih2_t=n(ks[7], (F + H, 4 * H)),
        whh2_t=n(ks[8], (H, 4 * H)),
        b2=n(ks[9], (1, 4 * H), 0.01),
        # to_glove
        wg_t=n(ks[10], (H, E)),
        bg=n(ks[11], (1, E), 0.01),
    )
    return params


if __name__ == "__main__":
    key = jax.random.PRNGKey(0)
    kp, kf, kc = jax.random.split(key, 3)

    params = make_params(kp)

    # image_features arrive flat as (batch, num_boxes * image_feature_size)
    image_features_flat = jax.random.normal(
        kf, (BATCH, NUM_BOXES * IMAGE_FEATURE_SIZE), dtype=jnp.float32)
    img3 = image_features_flat.reshape(BATCH, NUM_BOXES, IMAGE_FEATURE_SIZE)

    # caption tokens (no boundary tokens yet), second row partially padded.
    cap = np.array(jax.random.randint(kc, (BATCH, RAW_CAPTION_LEN), 2, VOCAB_SIZE),
                   dtype=np.int32)
    cap[1, 4:] = PAD_INDEX

    cap_b = add_sentence_boundaries_np(cap, PAD_INDEX, BOUNDARY_INDEX)   # (B, T+2)
    tok_in = jnp.asarray(cap_b[:, :-1], dtype=jnp.int32)                 # decoder inputs
    tok_tgt = jnp.asarray(cap_b[:, 1:], dtype=jnp.int32)                 # targets

    loss_kernel = updown_loss_pallas(params, img3, tok_in, tok_tgt)
    jax.block_until_ready(loss_kernel)

    loss_ref = updown_loss_ref(params, img3, tok_in, tok_tgt)
    np.testing.assert_allclose(np.asarray(loss_kernel), np.asarray(loss_ref),
                               rtol=3e-3, atol=3e-3)
    print("KERNEL_OK")
</pallas_src>

<mosaic_0001>
module attributes {stable_mosaic.version = 11 : i64} {
  func.func @updown_train_kernel(%arg0: memref<14x1xi32, #tpu.memory_space<vmem>>, %arg1: memref<14x1xi32, #tpu.memory_space<vmem>>, %arg2: memref<2x8x64xf32, #tpu.memory_space<vmem>>, %arg3: memref<48x32xf32, #tpu.memory_space<vmem>>, %arg4: memref<32x48xf32, #tpu.memory_space<vmem>>, %arg5: memref<32x128xf32, #tpu.memory_space<vmem>>, %arg6: memref<64x128xf32, #tpu.memory_space<vmem>>, %arg7: memref<32x128xf32, #tpu.memory_space<vmem>>, %arg8: memref<32x128xf32, #tpu.memory_space<vmem>>, %arg9: memref<1x128xf32, #tpu.memory_space<vmem>>, %arg10: memref<32x16xf32, #tpu.memory_space<vmem>>, %arg11: memref<64x16xf32, #tpu.memory_space<vmem>>, %arg12: memref<1x16xf32, #tpu.memory_space<vmem>>, %arg13: memref<64x128xf32, #tpu.memory_space<vmem>>, %arg14: memref<32x128xf32, #tpu.memory_space<vmem>>, %arg15: memref<32x128xf32, #tpu.memory_space<vmem>>, %arg16: memref<1x128xf32, #tpu.memory_space<vmem>>, %arg17: memref<32x32xf32, #tpu.memory_space<vmem>>, %arg18: memref<1x32xf32, #tpu.memory_space<vmem>>, %arg19: memref<2x1xf32, #tpu.memory_space<vmem>>) attributes {dimension_semantics = [], scalar_prefetch = 0 : i64, scratch_operands = 0 : i64, tpu.core_type = #tpu.core_type<tc>} {
    %c0 = arith.constant 0 : index
    %c0_0 = arith.constant 0 : index
    %c0_1 = arith.constant 0 : index
    %0 = vector.load %arg2[%c0, %c0_0, %c0_1] : memref<2x8x64xf32, #tpu.memory_space<vmem>>, vector<2x8x64xf32>
    %1 = math.absf %0 : vector<2x8x64xf32>
    %cst = arith.constant dense<0.000000e+00> : vector<2x8xf32>
    %2 = vector.multi_reduction <add>, %1, %cst [2] : vector<2x8x64xf32> to vector<2x8xf32>
    %cst_2 = arith.constant 0.000000e+00 : f32
    %3 = vector.broadcast %cst_2 : f32 to vector<2x8xf32>
    %4 = arith.cmpf one, %2, %3 : vector<2x8xf32>
    %5 = arith.extui %4 : vector<2x8xi1> to vector<2x8xi32>
    %6 = arith.sitofp %5 : vector<2x8xi32> to vector<2x8xf32>
    %cst_3 = arith.constant dense<0.000000e+00> : vector<2xf32>
    %7 = vector.multi_reduction <add>, %6, %cst_3 [1] : vector<2x8xf32> to vector<2xf32>
    %8 = vector.shape_cast %7 : vector<2xf32> to vector<2x1xf32>
    %cst_4 = arith.constant dense<0.000000e+00> : vector<2x64xf32>
    %9 = vector.multi_reduction <add>, %0, %cst_4 [1] : vector<2x8x64xf32> to vector<2x64xf32>
    %10 = vector.broadcast %8 : vector<2x1xf32> to vector<2x64xf32>
    %11 = arith.divf %9, %10 : vector<2x64xf32>
    %12 = vector.shape_cast %0 : vector<2x8x64xf32> to vector<16x64xf32>
    %c0_5 = arith.constant 0 : index
    %c0_6 = arith.constant 0 : index
    %13 = vector.load %arg11[%c0_5, %c0_6] : memref<64x16xf32, #tpu.memory_space<vmem>>, vector<64x16xf32>
    %cst_7 = arith.constant dense<0.000000e+00> : vector<16x16xf32>
    %14 = tpu.matmul %12, %13, %cst_7 {dimension_numbers = #tpu.dot_dimension_numbers<[1], [0], [0], [1], [0, 0, 1, 1], [], []>} : vector<16x64xf32>, vector<64x16xf32>, vector<16x16xf32> -> vector<16x16xf32>
    %15 = vector.shape_cast %14 : vector<16x16xf32> to vector<2x8x16xf32>
    %c0_8 = arith.constant 0 : index
    %c0_9 = arith.constant 0 : index
    %16 = vector.load %arg12[%c0_8, %c0_9] : memref<1x16xf32, #tpu.memory_space<vmem>>, vector<1x16xf32>
    %17 = vector.shape_cast %16 : vector<1x16xf32> to vector<1x1x16xf32>
    %c0_10 = arith.constant 0 : index
    %c0_11 = arith.constant 0 : index
    %18 = vector.load %arg16[%c0_10, %c0_11] : memref<1x128xf32, #tpu.memory_space<vmem>>, vector<1x128xf32>
    %19 = vector.shape_cast %18 : vector<1x128xf32> to vector<1x128xf32>
    %20 = vector.broadcast %19 : vector<1x128xf32> to vector<2x128xf32>
    %c0_12 = arith.constant 0 : index
    %c0_13 = arith.constant 0 : index
    %21 = vector.load %arg6[%c0_12, %c0_13] : memref<64x128xf32, #tpu.memory_space<vmem>>, vector<64x128xf32>
    %cst_14 = arith.constant dense<0.000000e+00> : vector<2x128xf32>
    %22 = tpu.matmul %11, %21, %cst_14 {dimension_numbers = #tpu.dot_dimension_numbers<[1], [0], [0], [1], [0, 0, 1, 1], [], []>} : vector<2x64xf32>, vector<64x128xf32>, vector<2x128xf32> -> vector<2x128xf32>
    %c0_15 = arith.constant 0 : index
    %c0_16 = arith.constant 0 : index
    %23 = vector.load %arg9[%c0_15, %c0_16] : memref<1x128xf32, #tpu.memory_space<vmem>>, vector<1x128xf32>
    %24 = vector.broadcast %23 : vector<1x128xf32> to vector<2x128xf32>
    %25 = arith.addf %22, %24 : vector<2x128xf32>
    %c0_17 = arith.constant 0 : index
    %c0_18 = arith.constant 0 : index
    %26 = vector.load %arg0[%c0_17, %c0_18] : memref<14x1xi32, #tpu.memory_space<vmem>>, vector<14x1xi32>
    %c0_19 = arith.constant 0 : index
    %c0_20 = arith.constant 0 : index
    %27 = vector.load %arg1[%c0_19, %c0_20] : memref<14x1xi32, #tpu.memory_space<vmem>>, vector<14x1xi32>
    %28 = tpu.iota {dimensions = array<i32: 1>} : vector<14x48xi32>
    %29 = vector.broadcast %26 : vector<14x1xi32> to vector<14x48xi32>
    %30 = arith.cmpi eq, %28, %29 : vector<14x48xi32>
    %31 = arith.extui %30 : vector<14x48xi1> to vector<14x48xi32>
    %32 = arith.sitofp %31 : vector<14x48xi32> to vector<14x48xf32>
    %c0_21 = arith.constant 0 : index
    %c0_22 = arith.constant 0 : index
    %33 = vector.load %arg3[%c0_21, %c0_22] : memref<48x32xf32, #tpu.memory_space<vmem>>, vector<48x32xf32>
    %cst_23 = arith.constant dense<0.000000e+00> : vector<14x32xf32>
    %34 = tpu.matmul %32, %33, %cst_23 {dimension_numbers = #tpu.dot_dimension_numbers<[1], [0], [0], [1], [0, 0, 1, 1], [], []>} : vector<14x48xf32>, vector<48x32xf32>, vector<14x32xf32> -> vector<14x32xf32>
    %c0_24 = arith.constant 0 : index
    %c0_25 = arith.constant 0 : index
    %35 = vector.load %arg5[%c0_24, %c0_25] : memref<32x128xf32, #tpu.memory_space<vmem>>, vector<32x128xf32>
    %cst_26 = arith.constant dense<0.000000e+00> : vector<14x128xf32>
    %36 = tpu.matmul %34, %35, %cst_26 {dimension_numbers = #tpu.dot_dimension_numbers<[1], [0], [0], [1], [0, 0, 1, 1], [], []>} : vector<14x32xf32>, vector<32x128xf32>, vector<14x128xf32> -> vector<14x128xf32>
    %37 = tpu.iota {dimensions = array<i32: 1>} : vector<2x128xi32>
    %c64_i32 = arith.constant 64 : i32
    %38 = vector.broadcast %c64_i32 : i32 to vector<2x128xi32>
    %39 = arith.cmpi sge, %37, %38 : vector<2x128xi32>
    %c96_i32 = arith.constant 96 : i32
    %40 = vector.broadcast %c96_i32 : i32 to vector<2x128xi32>
    %41 = arith.cmpi slt, %37, %40 : vector<2x128xi32>
    %42 = arith.andi %39, %41 : vector<2x128xi1>
    %cst_27 = arith.constant 0.000000e+00 : f32
    %43 = vector.broadcast %cst_27 : f32 to vector<2x32xf32>
    %44 = vector.extract_strided_slice %36 {offsets = [0, 0], sizes = [2, 128], strides = [1, 1]} : vector<14x128xf32> to vector<2x128xf32>
    %45 = arith.addf %25, %44 : vector<2x128xf32>
    %c0_28 = arith.constant 0 : index
    %c0_29 = arith.constant 0 : index
    %46 = vector.load %arg7[%c0_28, %c0_29] : memref<32x128xf32, #tpu.memory_space<vmem>>, vector<32x128xf32>
    %cst_30 = arith.constant dense<0.000000e+00> : vector<2x128xf32>
    %47 = tpu.matmul %43, %46, %cst_30 {dimension_numbers = #tpu.dot_dimension_numbers<[1], [0], [0], [1], [0, 0, 1, 1], [], []>} : vector<2x32xf32>, vector<32x128xf32>, vector<2x128xf32> -> vector<2x128xf32>
    %48 = arith.addf %45, %47 : vector<2x128xf32>
    %c0_31 = arith.constant 0 : index
    %c0_32 = arith.constant 0 : index
    %49 = vector.load %arg8[%c0_31, %c0_32] : memref<32x128xf32, #tpu.memory_space<vmem>>, vector<32x128xf32>
    %cst_33 = arith.constant dense<0.000000e+00> : vector<2x128xf32>
    %50 = tpu.matmul %43, %49, %cst_33 {dimension_numbers = #tpu.dot_dimension_numbers<[1], [0], [0], [1], [0, 0, 1, 1], [], []>} : vector<2x32xf32>, vector<32x128xf32>, vector<2x128xf32> -> vector<2x128xf32>
    %51 = arith.addf %48, %50 : vector<2x128xf32>
    %52 = math.tanh %51 : vector<2x128xf32>
    %53 = arith.negf %51 : vector<2x128xf32>
    %54 = math.exp %53 : vector<2x128xf32>
    %cst_34 = arith.constant 1.000000e+00 : f32
    %55 = vector.broadcast %cst_34 : f32 to vector<2x128xf32>
    %56 = arith.addf %55, %54 : vector<2x128xf32>
    %57 = arith.divf %55, %56 : vector<2x128xf32>
    %58 = arith.select %42, %52, %57 : vector<2x128xi1>, vector<2x128xf32>
    %59 = vector.extract_strided_slice %58 {offsets = [0, 0], sizes = [2, 32], strides = [1, 1]} : vector<2x128xf32> to vector<2x32xf32>
    %60 = vector.extract_strided_slice %58 {offsets = [0, 32], sizes = [2, 32], strides = [1, 1]} : vector<2x128xf32> to vector<2x32xf32>
    %61 = vector.extract_strided_slice %58 {offsets = [0, 64], sizes = [2, 32], strides = [1, 1]} : vector<2x128xf32> to vector<2x32xf32>
    %62 = vector.extract_strided_slice %58 {offsets = [0, 96], sizes = [2, 32], strides = [1, 1]} : vector<2x128xf32> to vector<2x32xf32>
    %63 = arith.mulf %60, %43 : vector<2x32xf32>
    %64 = arith.mulf %59, %61 : vector<2x32xf32>
    %65 = arith.addf %63, %64 : vector<2x32xf32>
    %66 = math.tanh %65 : vector<2x32xf32>
    %67 = arith.mulf %62, %66 : vector<2x32xf32>
    %c0_35 = arith.constant 0 : index
    %c0_36 = arith.constant 0 : index
    %68 = vector.load %arg10[%c0_35, %c0_36] : memref<32x16xf32, #tpu.memory_space<vmem>>, vector<32x16xf32>
    %cst_37 = arith.constant dense<0.000000e+00> : vector<2x16xf32>
    %69 = tpu.matmul %67, %68, %cst_37 {dimension_numbers = #tpu.dot_dimension_numbers<[1], [0], [0], [1], [0, 0, 1, 1], [], []>} : vector<2x32xf32>, vector<32x16xf32>, vector<2x16xf32> -> vector<2x16xf32>
    %70 = vector.shape_cast %69 : vector<2x16xf32> to vector<2x1x16xf32>
    %71 = vector.broadcast %70 : vector<2x1x16xf32> to vector<2x8x16xf32>
    %72 = arith.addf %15, %71 : vector<2x8x16xf32>
    %73 = math.tanh %72 : vector<2x8x16xf32>
    %74 = vector.broadcast %17 : vector<1x1x16xf32> to vector<2x8x16xf32>
    %75 = arith.mulf %73, %74 : vector<2x8x16xf32>
    %cst_38 = arith.constant dense<0.000000e+00> : vector<2x8xf32>
    %76 = vector.multi_reduction <add>, %75, %cst_38 [2] : vector<2x8x16xf32> to vector<2x8xf32>
    %77 = arith.mulf %76, %6 : vector<2x8xf32>
    %cst_39 = arith.constant dense<0xFF800000> : vector<2xf32>
    %78 = vector.multi_reduction <maximumf>, %77, %cst_39 [1] : vector<2x8xf32> to vector<2xf32>
    %79 = vector.shape_cast %78 : vector<2xf32> to vector<2x1xf32>
    %80 = vector.broadcast %79 : vector<2x1xf32> to vector<2x8xf32>
    %81 = arith.subf %77, %80 : vector<2x8xf32>
    %82 = math.exp %81 : vector<2x8xf32>
    %83 = arith.mulf %82, %6 : vector<2x8xf32>
    %cst_40 = arith.constant dense<0.000000e+00> : vector<2xf32>
    %84 = vector.multi_reduction <add>, %83, %cst_40 [1] : vector<2x8xf32> to vector<2xf32>
    %85 = vector.shape_cast %84 : vector<2xf32> to vector<2x1xf32>
    %cst_41 = arith.constant dense<0.000000e+00> : vector<2xf32>
    %86 = vector.multi_reduction <add>, %82, %cst_41 [1] : vector<2x8xf32> to vector<2xf32>
    %87 = vector.shape_cast %86 : vector<2xf32> to vector<2x1xf32>
    %cst_42 = arith.constant 9.99999982E-14 : f32
    %88 = vector.broadcast %cst_42 : f32 to vector<2x1xf32>
    %89 = arith.mulf %88, %87 : vector<2x1xf32>
    %90 = arith.addf %85, %89 : vector<2x1xf32>
    %91 = tpu.reciprocal %90 {approx = true} : vector<2x1xf32> -> vector<2x1xf32>
    %92 = vector.broadcast %91 : vector<2x1xf32> to vector<2x8xf32>
    %93 = arith.mulf %83, %92 : vector<2x8xf32>
    %94 = vector.shape_cast %93 : vector<2x8xf32> to vector<2x1x8xf32>
    "tpu.trace_start"() <{level = 10 : i32, message = "bqn,bnf->bqf"}> : () -> ()
    %cst_43 = arith.constant dense<0.000000e+00> : vector<2x1x64xf32>
    %95 = tpu.matmul %94, %0, %cst_43 {dimension_numbers = #tpu.dot_dimension_numbers<[2], [1], [1], [2], [0, 0, 0, 1, 1, 2], [0], [0]>} : vector<2x1x8xf32>, vector<2x8x64xf32>, vector<2x1x64xf32> -> vector<2x1x64xf32>
    "tpu.trace_stop"() : () -> ()
    %96 = vector.shape_cast %95 : vector<2x1x64xf32> to vector<2x64xf32>
    %c0_44 = arith.constant 0 : index
    %c0_45 = arith.constant 0 : index
    %97 = vector.load %arg13[%c0_44, %c0_45] : memref<64x128xf32, #tpu.memory_space<vmem>>, vector<64x128xf32>
    %cst_46 = arith.constant dense<0.000000e+00> : vector<2x128xf32>
    %98 = tpu.matmul %96, %97, %cst_46 {dimension_numbers = #tpu.dot_dimension_numbers<[1], [0], [0], [1], [0, 0, 1, 1], [], []>} : vector<2x64xf32>, vector<64x128xf32>, vector<2x128xf32> -> vector<2x128xf32>
    %99 = arith.addf %20, %98 : vector<2x128xf32>
    %c0_47 = arith.constant 0 : index
    %c0_48 = arith.constant 0 : index
    %100 = vector.load %arg14[%c0_47, %c0_48] : memref<32x128xf32, #tpu.memory_space<vmem>>, vector<32x128xf32>
    %cst_49 = arith.constant dense<0.000000e+00> : vector<2x128xf32>
    %101 = tpu.matmul %67, %100, %cst_49 {dimension_numbers = #tpu.dot_dimension_numbers<[1], [0], [0], [1], [0, 0, 1, 1], [], []>} : vector<2x32xf32>, vector<32x128xf32>, vector<2x128xf32> -> vector<2x128xf32>
    %102 = arith.addf %99, %101 : vector<2x128xf32>
    %c0_50 = arith.constant 0 : index
    %c0_51 = arith.constant 0 : index
    %103 = vector.load %arg15[%c0_50, %c0_51] : memref<32x128xf32, #tpu.memory_space<vmem>>, vector<32x128xf32>
    %cst_52 = arith.constant dense<0.000000e+00> : vector<2x128xf32>
    %104 = tpu.matmul %43, %103, %cst_52 {dimension_numbers = #tpu.dot_dimension_numbers<[1], [0], [0], [1], [0, 0, 1, 1], [], []>} : vector<2x32xf32>, vector<32x128xf32>, vector<2x128xf32> -> vector<2x128xf32>
    %105 = arith.addf %102, %104 : vector<2x128xf32>
    %106 = math.tanh %105 : vector<2x128xf32>
    %107 = arith.negf %105 : vector<2x128xf32>
    %108 = math.exp %107 : vector<2x128xf32>
    %cst_53 = arith.constant 1.000000e+00 : f32
    %109 = vector.broadcast %cst_53 : f32 to vector<2x128xf32>
    %110 = arith.addf %109, %108 : vector<2x128xf32>
    %111 = arith.divf %109, %110 : vector<2x128xf32>
    %112 = arith.select %42, %106, %111 : vector<2x128xi1>, vector<2x128xf32>
    %113 = vector.extract_strided_slice %112 {offsets = [0, 0], sizes = [2, 32], strides = [1, 1]} : vector<2x128xf32> to vector<2x32xf32>
    %114 = vector.extract_strided_slice %112 {offsets = [0, 32], sizes = [2, 32], strides = [1, 1]} : vector<2x128xf32> to vector<2x32xf32>
    %115 = vector.extract_strided_slice %112 {offsets = [0, 64], sizes = [2, 32], strides = [1, 1]} : vector<2x128xf32> to vector<2x32xf32>
    %116 = vector.extract_strided_slice %112 {offsets = [0, 96], sizes = [2, 32], strides = [1, 1]} : vector<2x128xf32> to vector<2x32xf32>
    %117 = arith.mulf %114, %43 : vector<2x32xf32>
    %118 = arith.mulf %113, %115 : vector<2x32xf32>
    %119 = arith.addf %117, %118 : vector<2x32xf32>
    %120 = math.tanh %119 : vector<2x32xf32>
    %121 = arith.mulf %116, %120 : vector<2x32xf32>
    %122 = vector.extract_strided_slice %36 {offsets = [2, 0], sizes = [2, 128], strides = [1, 1]} : vector<14x128xf32> to vector<2x128xf32>
    %123 = arith.addf %25, %122 : vector<2x128xf32>
    %c0_54 = arith.constant 0 : index
    %c0_55 = arith.constant 0 : index
    %124 = vector.load %arg7[%c0_54, %c0_55] : memref<32x128xf32, #tpu.memory_space<vmem>>, vector<32x128xf32>
    %cst_56 = arith.constant dense<0.000000e+00> : vector<2x128xf32>
    %125 = tpu.matmul %121, %124, %cst_56 {dimension_numbers = #tpu.dot_dimension_numbers<[1], [0], [0], [1], [0, 0, 1, 1], [], []>} : vector<2x32xf32>, vector<32x128xf32>, vector<2x128xf32> -> vector<2x128xf32>
    %126 = arith.addf %123, %125 : vector<2x128xf32>
    %c0_57 = arith.constant 0 : index
    %c0_58 = arith.constant 0 : index
    %127 = vector.load %arg8[%c0_57, %c0_58] : memref<32x128xf32, #tpu.memory_space<vmem>>, vector<32x128xf32>
    %cst_59 = arith.constant dense<0.000000e+00> : vector<2x128xf32>
    %128 = tpu.matmul %67, %127, %cst_59 {dimension_numbers = #tpu.dot_dimension_numbers<[1], [0], [0], [1], [0, 0, 1, 1], [], []>} : vector<2x32xf32>, vector<32x128xf32>, vector<2x128xf32> -> vector<2x128xf32>
    %129 = arith.addf %126, %128 : vector<2x128xf32>
    %130 = math.tanh %129 : vector<2x128xf32>
    %131 = arith.negf %129 : vector<2x128xf32>
    %132 = math.exp %131 : vector<2x128xf32>
    %cst_60 = arith.constant 1.000000e+00 : f32
    %133 = vector.broadcast %cst_60 : f32 to vector<2x128xf32>
    %134 = arith.addf %133, %132 : vector<2x128xf32>
    %135 = arith.divf %133, %134 : vector<2x128xf32>
    %136 = arith.select %42, %130, %135 : vector<2x128xi1>, vector<2x128xf32>
    %137 = vector.extract_strided_slice %136 {offsets = [0, 0], sizes = [2, 32], strides = [1, 1]} : vector<2x128xf32> to vector<2x32xf32>
    %138 = vector.extract_strided_slice %136 {offsets = [0, 32], sizes = [2, 32], strides = [1, 1]} : vector<2x128xf32> to vector<2x32xf32>
    %139 = vector.extract_strided_slice %136 {offsets = [0, 64], sizes = [2, 32], strides = [1, 1]} : vector<2x128xf32> to vector<2x32xf32>
    %140 = vector.extract_strided_slice %136 {offsets = [0, 96], sizes = [2, 32], strides = [1, 1]} : vector<2x128xf32> to vector<2x32xf32>
    %141 = arith.mulf %138, %65 : vector<2x32xf32>
    %142 = arith.mulf %137, %139 : vector<2x32xf32>
    %143 = arith.addf %141, %142 : vector<2x32xf32>
    %144 = math.tanh %143 : vector<2x32xf32>
    %145 = arith.mulf %140, %144 : vector<2x32xf32>
    %c0_61 = arith.constant 0 : index
    %c0_62 = arith.constant 0 : index
    %146 = vector.load %arg10[%c0_61, %c0_62] : memref<32x16xf32, #tpu.memory_space<vmem>>, vector<32x16xf32>
    %cst_63 = arith.constant dense<0.000000e+00> : vector<2x16xf32>
    %147 = tpu.matmul %145, %146, %cst_63 {dimension_numbers = #tpu.dot_dimension_numbers<[1], [0], [0], [1], [0, 0, 1, 1], [], []>} : vector<2x32xf32>, vector<32x16xf32>, vector<2x16xf32> -> vector<2x16xf32>
    %148 = vector.shape_cast %147 : vector<2x16xf32> to vector<2x1x16xf32>
    %149 = vector.broadcast %148 : vector<2x1x16xf32> to vector<2x8x16xf32>
    %150 = arith.addf %15, %149 : vector<2x8x16xf32>
    %151 = math.tanh %150 : vector<2x8x16xf32>
    %152 = vector.broadcast %17 : vector<1x1x16xf32> to vector<2x8x16xf32>
    %153 = arith.mulf %151, %152 : vector<2x8x16xf32>
    %cst_64 = arith.constant dense<0.000000e+00> : vector<2x8xf32>
    %154 = vector.multi_reduction <add>, %153, %cst_64 [2] : vector<2x8x16xf32> to vector<2x8xf32>
    %155 = arith.mulf %154, %6 : vector<2x8xf32>
    %cst_65 = arith.constant dense<0xFF800000> : vector<2xf32>
    %156 = vector.multi_reduction <maximumf>, %155, %cst_65 [1] : vector<2x8xf32> to vector<2xf32>
    %157 = vector.shape_cast %156 : vector<2xf32> to vector<2x1xf32>
    %158 = vector.broadcast %157 : vector<2x1xf32> to vector<2x8xf32>
    %159 = arith.subf %155, %158 : vector<2x8xf32>
    %160 = math.exp %159 : vector<2x8xf32>
    %161 = arith.mulf %160, %6 : vector<2x8xf32>
    %cst_66 = arith.constant dense<0.000000e+00> : vector<2xf32>
    %162 = vector.multi_reduction <add>, %161, %cst_66 [1] : vector<2x8xf32> to vector<2xf32>
    %163 = vector.shape_cast %162 : vector<2xf32> to vector<2x1xf32>
    %cst_67 = arith.constant dense<0.000000e+00> : vector<2xf32>
    %164 = vector.multi_reduction <add>, %160, %cst_67 [1] : vector<2x8xf32> to vector<2xf32>
    %165 = vector.shape_cast %164 : vector<2xf32> to vector<2x1xf32>
    %cst_68 = arith.constant 9.99999982E-14 : f32
    %166 = vector.broadcast %cst_68 : f32 to vector<2x1xf32>
    %167 = arith.mulf %166, %165 : vector<2x1xf32>
    %168 = arith.addf %163, %167 : vector<2x1xf32>
    %169 = tpu.reciprocal %168 {approx = true} : vector<2x1xf32> -> vector<2x1xf32>
    %170 = vector.broadcast %169 : vector<2x1xf32> to vector<2x8xf32>
    %171 = arith.mulf %161, %170 : vector<2x8xf32>
    %172 = vector.shape_cast %171 : vector<2x8xf32> to vector<2x1x8xf32>
    "tpu.trace_start"() <{level = 10 : i32, message = "bqn,bnf->bqf"}> : () -> ()
    %cst_69 = arith.constant dense<0.000000e+00> : vector<2x1x64xf32>
    %173 = tpu.matmul %172, %0, %cst_69 {dimension_numbers = #tpu.dot_dimension_numbers<[2], [1], [1], [2], [0, 0, 0, 1, 1, 2], [0], [0]>} : vector<2x1x8xf32>, vector<2x8x64xf32>, vector<2x1x64xf32> -> vector<2x1x64xf32>
    "tpu.trace_stop"() : () -> ()
    %174 = vector.shape_cast %173 : vector<2x1x64xf32> to vector<2x64xf32>
    %c0_70 = arith.constant 0 : index
    %c0_71 = arith.constant 0 : index
    %175 = vector.load %arg13[%c0_70, %c0_71] : memref<64x128xf32, #tpu.memory_space<vmem>>, vector<64x128xf32>
    %cst_72 = arith.constant dense<0.000000e+00> : vector<2x128xf32>
    %176 = tpu.matmul %174, %175, %cst_72 {dimension_numbers = #tpu.dot_dimension_numbers<[1], [0], [0], [1], [0, 0, 1, 1], [], []>} : vector<2x64xf32>, vector<64x128xf32>, vector<2x128xf32> -> vector<2x128xf32>
    %177 = arith.addf %20, %176 : vector<2x128xf32>
    %c0_73 = arith.constant 0 : index
    %c0_74 = arith.constant 0 : index
    %178 = vector.load %arg14[%c0_73, %c0_74] : memref<32x128xf32, #tpu.memory_space<vmem>>, vector<32x128xf32>
    %cst_75 = arith.constant dense<0.000000e+00> : vector<2x128xf32>
    %179 = tpu.matmul %145, %178, %cst_75 {dimension_numbers = #tpu.dot_dimension_numbers<[1], [0], [0], [1], [0, 0, 1, 1], [], []>} : vector<2x32xf32>, vector<32x128xf32>, vector<2x128xf32> -> vector<2x128xf32>
    %180 = arith.addf %177, %179 : vector<2x128xf32>
    %c0_76 = arith.constant 0 : index
    %c0_77 = arith.constant 0 : index
    %181 = vector.load %arg15[%c0_76, %c0_77] : memref<32x128xf32, #tpu.memory_space<vmem>>, vector<32x128xf32>
    %cst_78 = arith.constant dense<0.000000e+00> : vector<2x128xf32>
    %182 = tpu.matmul %121, %181, %cst_78 {dimension_numbers = #tpu.dot_dimension_numbers<[1], [0], [0], [1], [0, 0, 1, 1], [], []>} : vector<2x32xf32>, vector<32x128xf32>, vector<2x128xf32> -> vector<2x128xf32>
    %183 = arith.addf %180, %182 : vector<2x128xf32>
    %184 = math.tanh %183 : vector<2x128xf32>
    %185 = arith.negf %183 : vector<2x128xf32>
    %186 = math.exp %185 : vector<2x128xf32>
    %cst_79 = arith.constant 1.000000e+00 : f32
    %187 = vector.broadcast %cst_79 : f32 to vector<2x128xf32>
    %188 = arith.addf %187, %186 : vector<2x128xf32>
    %189 = arith.divf %187, %188 : vector<2x128xf32>
    %190 = arith.select %42, %184, %189 : vector<2x128xi1>, vector<2x128xf32>
    %191 = vector.extract_strided_slice %190 {offsets = [0, 0], sizes = [2, 32], strides = [1, 1]} : vector<2x128xf32> to vector<2x32xf32>
    %192 = vector.extract_strided_slice %190 {offsets = [0, 32], sizes = [2, 32], strides = [1, 1]} : vector<2x128xf32> to vector<2x32xf32>
    %193 = vector.extract_strided_slice %190 {offsets = [0, 64], sizes = [2, 32], strides = [1, 1]} : vector<2x128xf32> to vector<2x32xf32>
    %194 = vector.extract_strided_slice %190 {offsets = [0, 96], sizes = [2, 32], strides = [1, 1]} : vector<2x128xf32> to vector<2x32xf32>
    %195 = arith.mulf %192, %119 : vector<2x32xf32>
    %196 = arith.mulf %191, %193 : vector<2x32xf32>
    %197 = arith.addf %195, %196 : vector<2x32xf32>
    %198 = math.tanh %197 : vector<2x32xf32>
    %199 = arith.mulf %194, %198 : vector<2x32xf32>
    %200 = vector.extract_strided_slice %36 {offsets = [4, 0], sizes = [2, 128], strides = [1, 1]} : vector<14x128xf32> to vector<2x128xf32>
    %201 = arith.addf %25, %200 : vector<2x128xf32>
    %c0_80 = arith.constant 0 : index
    %c0_81 = arith.constant 0 : index
    %202 = vector.load %arg7[%c0_80, %c0_81] : memref<32x128xf32, #tpu.memory_space<vmem>>, vector<32x128xf32>
    %cst_82 = arith.constant dense<0.000000e+00> : vector<2x128xf32>
    %203 = tpu.matmul %199, %202, %cst_82 {dimension_numbers = #tpu.dot_dimension_numbers<[1], [0], [0], [1], [0, 0, 1, 1], [], []>} : vector<2x32xf32>, vector<32x128xf32>, vector<2x128xf32> -> vector<2x128xf32>
    %204 = arith.addf %201, %203 : vector<2x128xf32>
    %c0_83 = arith.constant 0 : index
    %c0_84 = arith.constant 0 : index
    %205 = vector.load %arg8[%c0_83, %c0_84] : memref<32x128xf32, #tpu.memory_space<vmem>>, vector<32x128xf32>
    %cst_85 = arith.constant dense<0.000000e+00> : vector<2x128xf32>
    %206 = tpu.matmul %145, %205, %cst_85 {dimension_numbers = #tpu.dot_dimension_numbers<[1], [0], [0], [1], [0, 0, 1, 1], [], []>} : vector<2x32xf32>, vector<32x128xf32>, vector<2x128xf32> -> vector<2x128xf32>
    %207 = arith.addf %204, %206 : vector<2x128xf32>
    %208 = math.tanh %207 : vector<2x128xf32>
    %209 = arith.negf %207 : vector<2x128xf32>
    %210 = math.exp %209 : vector<2x128xf32>
    %cst_86 = arith.constant 1.000000e+00 : f32
    %211 = vector.broadcast %cst_86 : f32 to vector<2x128xf32>
    %212 = arith.addf %211, %210 : vector<2x128xf32>
    %213 = arith.divf %211, %212 : vector<2x128xf32>
    %214 = arith.select %42, %208, %213 : vector<2x128xi1>, vector<2x128xf32>
    %215 = vector.extract_strided_slice %214 {offsets = [0, 0], sizes = [2, 32], strides = [1, 1]} : vector<2x128xf32> to vector<2x32xf32>
    %216 = vector.extract_strided_slice %214 {offsets = [0, 32], sizes = [2, 32], strides = [1, 1]} : vector<2x128xf32> to vector<2x32xf32>
    %217 = vector.extract_strided_slice %214 {offsets = [0, 64], sizes = [2, 32], strides = [1, 1]} : vector<2x128xf32> to vector<2x32xf32>
    %218 = vector.extract_strided_slice %214 {offsets = [0, 96], sizes = [2, 32], strides = [1, 1]} : vector<2x128xf32> to vector<2x32xf32>
    %219 = arith.mulf %216, %143 : vector<2x32xf32>
    %220 = arith.mulf %215, %217 : vector<2x32xf32>
    %221 = arith.addf %219, %220 : vector<2x32xf32>
    %222 = math.tanh %221 : vector<2x32xf32>
    %223 = arith.mulf %218, %222 : vector<2x32xf32>
    %c0_87 = arith.constant 0 : index
    %c0_88 = arith.constant 0 : index
    %224 = vector.load %arg10[%c0_87, %c0_88] : memref<32x16xf32, #tpu.memory_space<vmem>>, vector<32x16xf32>
    %cst_89 = arith.constant dense<0.000000e+00> : vector<2x16xf32>
    %225 = tpu.matmul %223, %224, %cst_89 {dimension_numbers = #tpu.dot_dimension_numbers<[1], [0], [0], [1], [0, 0, 1, 1], [], []>} : vector<2x32xf32>, vector<32x16xf32>, vector<2x16xf32> -> vector<2x16xf32>
    %226 = vector.shape_cast %225 : vector<2x16xf32> to vector<2x1x16xf32>
    %227 = vector.broadcast %226 : vector<2x1x16xf32> to vector<2x8x16xf32>
    %228 = arith.addf %15, %227 : vector<2x8x16xf32>
    %229 = math.tanh %228 : vector<2x8x16xf32>
    %230 = vector.broadcast %17 : vector<1x1x16xf32> to vector<2x8x16xf32>
    %231 = arith.mulf %229, %230 : vector<2x8x16xf32>
    %cst_90 = arith.constant dense<0.000000e+00> : vector<2x8xf32>
    %232 = vector.multi_reduction <add>, %231, %cst_90 [2] : vector<2x8x16xf32> to vector<2x8xf32>
    %233 = arith.mulf %232, %6 : vector<2x8xf32>
    %cst_91 = arith.constant dense<0xFF800000> : vector<2xf32>
    %234 = vector.multi_reduction <maximumf>, %233, %cst_91 [1] : vector<2x8xf32> to vector<2xf32>
    %235 = vector.shape_cast %234 : vector<2xf32> to vector<2x1xf32>
    %236 = vector.broadcast %235 : vector<2x1xf32> to vector<2x8xf32>
    %237 = arith.subf %233, %236 : vector<2x8xf32>
    %238 = math.exp %237 : vector<2x8xf32>
    %239 = arith.mulf %238, %6 : vector<2x8xf32>
    %cst_92 = arith.constant dense<0.000000e+00> : vector<2xf32>
    %240 = vector.multi_reduction <add>, %239, %cst_92 [1] : vector<2x8xf32> to vector<2xf32>
    %241 = vector.shape_cast %240 : vector<2xf32> to vector<2x1xf32>
    %cst_93 = arith.constant dense<0.000000e+00> : vector<2xf32>
    %242 = vector.multi_reduction <add>, %238, %cst_93 [1] : vector<2x8xf32> to vector<2xf32>
    %243 = vector.shape_cast %242 : vector<2xf32> to vector<2x1xf32>
    %cst_94 = arith.constant 9.99999982E-14 : f32
    %244 = vector.broadcast %cst_94 : f32 to vector<2x1xf32>
    %245 = arith.mulf %244, %243 : vector<2x1xf32>
    %246 = arith.addf %241, %245 : vector<2x1xf32>
    %247 = tpu.reciprocal %246 {approx = true} : vector<2x1xf32> -> vector<2x1xf32>
    %248 = vector.broadcast %247 : vector<2x1xf32> to vector<2x8xf32>
    %249 = arith.mulf %239, %248 : vector<2x8xf32>
    %250 = vector.shape_cast %249 : vector<2x8xf32> to vector<2x1x8xf32>
    "tpu.trace_start"() <{level = 10 : i32, message = "bqn,bnf->bqf"}> : () -> ()
    %cst_95 = arith.constant dense<0.000000e+00> : vector<2x1x64xf32>
    %251 = tpu.matmul %250, %0, %cst_95 {dimension_numbers = #tpu.dot_dimension_numbers<[2], [1], [1], [2], [0, 0, 0, 1, 1, 2], [0], [0]>} : vector<2x1x8xf32>, vector<2x8x64xf32>, vector<2x1x64xf32> -> vector<2x1x64xf32>
    "tpu.trace_stop"() : () -> ()
    %252 = vector.shape_cast %251 : vector<2x1x64xf32> to vector<2x64xf32>
    %c0_96 = arith.constant 0 : index
    %c0_97 = arith.constant 0 : index
    %253 = vector.load %arg13[%c0_96, %c0_97] : memref<64x128xf32, #tpu.memory_space<vmem>>, vector<64x128xf32>
    %cst_98 = arith.constant dense<0.000000e+00> : vector<2x128xf32>
    %254 = tpu.matmul %252, %253, %cst_98 {dimension_numbers = #tpu.dot_dimension_numbers<[1], [0], [0], [1], [0, 0, 1, 1], [], []>} : vector<2x64xf32>, vector<64x128xf32>, vector<2x128xf32> -> vector<2x128xf32>
    %255 = arith.addf %20, %254 : vector<2x128xf32>
    %c0_99 = arith.constant 0 : index
    %c0_100 = arith.constant 0 : index
    %256 = vector.load %arg14[%c0_99, %c0_100] : memref<32x128xf32, #tpu.memory_space<vmem>>, vector<32x128xf32>
    %cst_101 = arith.constant dense<0.000000e+00> : vector<2x128xf32>
    %257 = tpu.matmul %223, %256, %cst_101 {dimension_numbers = #tpu.dot_dimension_numbers<[1], [0], [0], [1], [0, 0, 1, 1], [], []>} : vector<2x32xf32>, vector<32x128xf32>, vector<2x128xf32> -> vector<2x128xf32>
    %258 = arith.addf %255, %257 : vector<2x128xf32>
    %c0_102 = arith.constant 0 : index
    %c0_103 = arith.constant 0 : index
    %259 = vector.load %arg15[%c0_102, %c0_103] : memref<32x128xf32, #tpu.memory_space<vmem>>, vector<32x128xf32>
    %cst_104 = arith.constant dense<0.000000e+00> : vector<2x128xf32>
    %260 = tpu.matmul %199, %259, %cst_104 {dimension_numbers = #tpu.dot_dimension_numbers<[1], [0], [0], [1], [0, 0, 1, 1], [], []>} : vector<2x32xf32>, vector<32x128xf32>, vector<2x128xf32> -> vector<2x128xf32>
    %261 = arith.addf %258, %260 : vector<2x128xf32>
    %262 = math.tanh %261 : vector<2x128xf32>
    %263 = arith.negf %261 : vector<2x128xf32>
    %264 = math.exp %263 : vector<2x128xf32>
    %cst_105 = arith.constant 1.000000e+00 : f32
    %265 = vector.broadcast %cst_105 : f32 to vector<2x128xf32>
    %266 = arith.addf %265, %264 : vector<2x128xf32>
    %267 = arith.divf %265, %266 : vector<2x128xf32>
    %268 = arith.select %42, %262, %267 : vector<2x128xi1>, vector<2x128xf32>
    %269 = vector.extract_strided_slice %268 {offsets = [0, 0], sizes = [2, 32], strides = [1, 1]} : vector<2x128xf32> to vector<2x32xf32>
    %270 = vector.extract_strided_slice %268 {offsets = [0, 32], sizes = [2, 32], strides = [1, 1]} : vector<2x128xf32> to vector<2x32xf32>
    %271 = vector.extract_strided_slice %268 {offsets = [0, 64], sizes = [2, 32], strides = [1, 1]} : vector<2x128xf32> to vector<2x32xf32>
    %272 = vector.extract_strided_slice %268 {offsets = [0, 96], sizes = [2, 32], strides = [1, 1]} : vector<2x128xf32> to vector<2x32xf32>
    %273 = arith.mulf %270, %197 : vector<2x32xf32>
    %274 = arith.mulf %269, %271 : vector<2x32xf32>
    %275 = arith.addf %273, %274 : vector<2x32xf32>
    %276 = math.tanh %275 : vector<2x32xf32>
    %277 = arith.mulf %272, %276 : vector<2x32xf32>
    %278 = vector.extract_strided_slice %36 {offsets = [6, 0], sizes = [2, 128], strides = [1, 1]} : vector<14x128xf32> to vector<2x128xf32>
    %279 = arith.addf %25, %278 : vector<2x128xf32>
    %c0_106 = arith.constant 0 : index
    %c0_107 = arith.constant 0 : index
    %280 = vector.load %arg7[%c0_106, %c0_107] : memref<32x128xf32, #tpu.memory_space<vmem>>, vector<32x128xf32>
    %cst_108 = arith.constant dense<0.000000e+00> : vector<2x128xf32>
    %281 = tpu.matmul %277, %280, %cst_108 {dimension_numbers = #tpu.dot_dimension_numbers<[1], [0], [0], [1], [0, 0, 1, 1], [], []>} : vector<2x32xf32>, vector<32x128xf32>, vector<2x128xf32> -> vector<2x128xf32>
    %282 = arith.addf %279, %281 : vector<2x128xf32>
    %c0_109 = arith.constant 0 : index
    %c0_110 = arith.constant 0 : index
    %283 = vector.load %arg8[%c0_109, %c0_110] : memref<32x128xf32, #tpu.memory_space<vmem>>, vector<32x128xf32>
    %cst_111 = arith.constant dense<0.000000e+00> : vector<2x128xf32>
    %284 = tpu.matmul %223, %283, %cst_111 {dimension_numbers = #tpu.dot_dimension_numbers<[1], [0], [0], [1], [0, 0, 1, 1], [], []>} : vector<2x32xf32>, vector<32x128xf32>, vector<2x128xf32> -> vector<2x128xf32>
    %285 = arith.addf %282, %284 : vector<2x128xf32>
    %286 = math.tanh %285 : vector<2x128xf32>
    %287 = arith.negf %285 : vector<2x128xf32>
    %288 = math.exp %287 : vector<2x128xf32>
    %cst_112 = arith.constant 1.000000e+00 : f32
    %289 = vector.broadcast %cst_112 : f32 to vector<2x128xf32>
    %290 = arith.addf %289, %288 : vector<2x128xf32>
    %291 = arith.divf %289, %290 : vector<2x128xf32>
    %292 = arith.select %42, %286, %291 : vector<2x128xi1>, vector<2x128xf32>
    %293 = vector.extract_strided_slice %292 {offsets = [0, 0], sizes = [2, 32], strides = [1, 1]} : vector<2x128xf32> to vector<2x32xf32>
    %294 = vector.extract_strided_slice %292 {offsets = [0, 32], sizes = [2, 32], strides = [1, 1]} : vector<2x128xf32> to vector<2x32xf32>
    %295 = vector.extract_strided_slice %292 {offsets = [0, 64], sizes = [2, 32], strides = [1, 1]} : vector<2x128xf32> to vector<2x32xf32>
    %296 = vector.extract_strided_slice %292 {offsets = [0, 96], sizes = [2, 32], strides = [1, 1]} : vector<2x128xf32> to vector<2x32xf32>
    %297 = arith.mulf %294, %221 : vector<2x32xf32>
    %298 = arith.mulf %293, %295 : vector<2x32xf32>
    %299 = arith.addf %297, %298 : vector<2x32xf32>
    %300 = math.tanh %299 : vector<2x32xf32>
    %301 = arith.mulf %296, %300 : vector<2x32xf32>
    %c0_113 = arith.constant 0 : index
    %c0_114 = arith.constant 0 : index
    %302 = vector.load %arg10[%c0_113, %c0_114] : memref<32x16xf32, #tpu.memory_space<vmem>>, vector<32x16xf32>
    %cst_115 = arith.constant dense<0.000000e+00> : vector<2x16xf32>
    %303 = tpu.matmul %301, %302, %cst_115 {dimension_numbers = #tpu.dot_dimension_numbers<[1], [0], [0], [1], [0, 0, 1, 1], [], []>} : vector<2x32xf32>, vector<32x16xf32>, vector<2x16xf32> -> vector<2x16xf32>
    %304 = vector.shape_cast %303 : vector<2x16xf32> to vector<2x1x16xf32>
    %305 = vector.broadcast %304 : vector<2x1x16xf32> to vector<2x8x16xf32>
    %306 = arith.addf %15, %305 : vector<2x8x16xf32>
    %307 = math.tanh %306 : vector<2x8x16xf32>
    %308 = vector.broadcast %17 : vector<1x1x16xf32> to vector<2x8x16xf32>
    %309 = arith.mulf %307, %308 : vector<2x8x16xf32>
    %cst_116 = arith.constant dense<0.000000e+00> : vector<2x8xf32>
    %310 = vector.multi_reduction <add>, %309, %cst_116 [2] : vector<2x8x16xf32> to vector<2x8xf32>
    %311 = arith.mulf %310, %6 : vector<2x8xf32>
    %cst_117 = arith.constant dense<0xFF800000> : vector<2xf32>
    %312 = vector.multi_reduction <maximumf>, %311, %cst_117 [1] : vector<2x8xf32> to vector<2xf32>
    %313 = vector.shape_cast %312 : vector<2xf32> to vector<2x1xf32>
    %314 = vector.broadcast %313 : vector<2x1xf32> to vector<2x8xf32>
    %315 = arith.subf %311, %314 : vector<2x8xf32>
    %316 = math.exp %315 : vector<2x8xf32>
    %317 = arith.mulf %316, %6 : vector<2x8xf32>
    %cst_118 = arith.constant dense<0.000000e+00> : vector<2xf32>
    %318 = vector.multi_reduction <add>, %317, %cst_118 [1] : vector<2x8xf32> to vector<2xf32>
    %319 = vector.shape_cast %318 : vector<2xf32> to vector<2x1xf32>
    %cst_119 = arith.constant dense<0.000000e+00> : vector<2xf32>
    %320 = vector.multi_reduction <add>, %316, %cst_119 [1] : vector<2x8xf32> to vector<2xf32>
    %321 = vector.shape_cast %320 : vector<2xf32> to vector<2x1xf32>
    %cst_120 = arith.constant 9.99999982E-14 : f32
    %322 = vector.broadcast %cst_120 : f32 to vector<2x1xf32>
    %323 = arith.mulf %322, %321 : vector<2x1xf32>
    %324 = arith.addf %319, %323 : vector<2x1xf32>
    %325 = tpu.reciprocal %324 {approx = true} : vector<2x1xf32> -> vector<2x1xf32>
    %326 = vector.broadcast %325 : vector<2x1xf32> to vector<2x8xf32>
    %327 = arith.mulf %317, %326 : vector<2x8xf32>
    %328 = vector.shape_cast %327 : vector<2x8xf32> to vector<2x1x8xf32>
    "tpu.trace_start"() <{level = 10 : i32, message = "bqn,bnf->bqf"}> : () -> ()
    %cst_121 = arith.constant dense<0.000000e+00> : vector<2x1x64xf32>
    %329 = tpu.matmul %328, %0, %cst_121 {dimension_numbers = #tpu.dot_dimension_numbers<[2], [1], [1], [2], [0, 0, 0, 1, 1, 2], [0], [0]>} : vector<2x1x8xf32>, vector<2x8x64xf32>, vector<2x1x64xf32> -> vector<2x1x64xf32>
    "tpu.trace_stop"() : () -> ()
    %330 = vector.shape_cast %329 : vector<2x1x64xf32> to vector<2x64xf32>
    %c0_122 = arith.constant 0 : index
    %c0_123 = arith.constant 0 : index
    %331 = vector.load %arg13[%c0_122, %c0_123] : memref<64x128xf32, #tpu.memory_space<vmem>>, vector<64x128xf32>
    %cst_124 = arith.constant dense<0.000000e+00> : vector<2x128xf32>
    %332 = tpu.matmul %330, %331, %cst_124 {dimension_numbers = #tpu.dot_dimension_numbers<[1], [0], [0], [1], [0, 0, 1, 1], [], []>} : vector<2x64xf32>, vector<64x128xf32>, vector<2x128xf32> -> vector<2x128xf32>
    %333 = arith.addf %20, %332 : vector<2x128xf32>
    %c0_125 = arith.constant 0 : index
    %c0_126 = arith.constant 0 : index
    %334 = vector.load %arg14[%c0_125, %c0_126] : memref<32x128xf32, #tpu.memory_space<vmem>>, vector<32x128xf32>
    %cst_127 = arith.constant dense<0.000000e+00> : vector<2x128xf32>
    %335 = tpu.matmul %301, %334, %cst_127 {dimension_numbers = #tpu.dot_dimension_numbers<[1], [0], [0], [1], [0, 0, 1, 1], [], []>} : vector<2x32xf32>, vector<32x128xf32>, vector<2x128xf32> -> vector<2x128xf32>
    %336 = arith.addf %333, %335 : vector<2x128xf32>
    %c0_128 = arith.constant 0 : index
    %c0_129 = arith.constant 0 : index
    %337 = vector.load %arg15[%c0_128, %c0_129] : memref<32x128xf32, #tpu.memory_space<vmem>>, vector<32x128xf32>
    %cst_130 = arith.constant dense<0.000000e+00> : vector<2x128xf32>
    %338 = tpu.matmul %277, %337, %cst_130 {dimension_numbers = #tpu.dot_dimension_numbers<[1], [0], [0], [1], [0, 0, 1, 1], [], []>} : vector<2x32xf32>, vector<32x128xf32>, vector<2x128xf32> -> vector<2x128xf32>
    %339 = arith.addf %336, %338 : vector<2x128xf32>
    %340 = math.tanh %339 : vector<2x128xf32>
    %341 = arith.negf %339 : vector<2x128xf32>
    %342 = math.exp %341 : vector<2x128xf32>
    %cst_131 = arith.constant 1.000000e+00 : f32
    %343 = vector.broadcast %cst_131 : f32 to vector<2x128xf32>
    %344 = arith.addf %343, %342 : vector<2x128xf32>
    %345 = arith.divf %343, %344 : vector<2x128xf32>
    %346 = arith.select %42, %340, %345 : vector<2x128xi1>, vector<2x128xf32>
    %347 = vector.extract_strided_slice %346 {offsets = [0, 0], sizes = [2, 32], strides = [1, 1]} : vector<2x128xf32> to vector<2x32xf32>
    %348 = vector.extract_strided_slice %346 {offsets = [0, 32], sizes = [2, 32], strides = [1, 1]} : vector<2x128xf32> to vector<2x32xf32>
    %349 = vector.extract_strided_slice %346 {offsets = [0, 64], sizes = [2, 32], strides = [1, 1]} : vector<2x128xf32> to vector<2x32xf32>
    %350 = vector.extract_strided_slice %346 {offsets = [0, 96], sizes = [2, 32], strides = [1, 1]} : vector<2x128xf32> to vector<2x32xf32>
    %351 = arith.mulf %348, %275 : vector<2x32xf32>
    %352 = arith.mulf %347, %349 : vector<2x32xf32>
    %353 = arith.addf %351, %352 : vector<2x32xf32>
    %354 = math.tanh %353 : vector<2x32xf32>
    %355 = arith.mulf %350, %354 : vector<2x32xf32>
    %356 = vector.extract_strided_slice %36 {offsets = [8, 0], sizes = [2, 128], strides = [1, 1]} : vector<14x128xf32> to vector<2x128xf32>
    %357 = arith.addf %25, %356 : vector<2x128xf32>
    %c0_132 = arith.constant 0 : index
    %c0_133 = arith.constant 0 : index
    %358 = vector.load %arg7[%c0_132, %c0_133] : memref<32x128xf32, #tpu.memory_space<vmem>>, vector<32x128xf32>
    %cst_134 = arith.constant dense<0.000000e+00> : vector<2x128xf32>
    %359 = tpu.matmul %355, %358, %cst_134 {dimension_numbers = #tpu.dot_dimension_numbers<[1], [0], [0], [1], [0, 0, 1, 1], [], []>} : vector<2x32xf32>, vector<32x128xf32>, vector<2x128xf32> -> vector<2x128xf32>
    %360 = arith.addf %357, %359 : vector<2x128xf32>
    %c0_135 = arith.constant 0 : index
    %c0_136 = arith.constant 0 : index
    %361 = vector.load %arg8[%c0_135, %c0_136] : memref<32x128xf32, #tpu.memory_space<vmem>>, vector<32x128xf32>
    %cst_137 = arith.constant dense<0.000000e+00> : vector<2x128xf32>
    %362 = tpu.matmul %301, %361, %cst_137 {dimension_numbers = #tpu.dot_dimension_numbers<[1], [0], [0], [1], [0, 0, 1, 1], [], []>} : vector<2x32xf32>, vector<32x128xf32>, vector<2x128xf32> -> vector<2x128xf32>
    %363 = arith.addf %360, %362 : vector<2x128xf32>
    %364 = math.tanh %363 : vector<2x128xf32>
    %365 = arith.negf %363 : vector<2x128xf32>
    %366 = math.exp %365 : vector<2x128xf32>
    %cst_138 = arith.constant 1.000000e+00 : f32
    %367 = vector.broadcast %cst_138 : f32 to vector<2x128xf32>
    %368 = arith.addf %367, %366 : vector<2x128xf32>
    %369 = arith.divf %367, %368 : vector<2x128xf32>
    %370 = arith.select %42, %364, %369 : vector<2x128xi1>, vector<2x128xf32>
    %371 = vector.extract_strided_slice %370 {offsets = [0, 0], sizes = [2, 32], strides = [1, 1]} : vector<2x128xf32> to vector<2x32xf32>
    %372 = vector.extract_strided_slice %370 {offsets = [0, 32], sizes = [2, 32], strides = [1, 1]} : vector<2x128xf32> to vector<2x32xf32>
    %373 = vector.extract_strided_slice %370 {offsets = [0, 64], sizes = [2, 32], strides = [1, 1]} : vector<2x128xf32> to vector<2x32xf32>
    %374 = vector.extract_strided_slice %370 {offsets = [0, 96], sizes = [2, 32], strides = [1, 1]} : vector<2x128xf32> to vector<2x32xf32>
    %375 = arith.mulf %372, %299 : vector<2x32xf32>
    %376 = arith.mulf %371, %373 : vector<2x32xf32>
    %377 = arith.addf %375, %376 : vector<2x32xf32>
    %378 = math.tanh %377 : vector<2x32xf32>
    %379 = arith.mulf %374, %378 : vector<2x32xf32>
    %c0_139 = arith.constant 0 : index
    %c0_140 = arith.constant 0 : index
    %380 = vector.load %arg10[%c0_139, %c0_140] : memref<32x16xf32, #tpu.memory_space<vmem>>, vector<32x16xf32>
    %cst_141 = arith.constant dense<0.000000e+00> : vector<2x16xf32>
    %381 = tpu.matmul %379, %380, %cst_141 {dimension_numbers = #tpu.dot_dimension_numbers<[1], [0], [0], [1], [0, 0, 1, 1], [], []>} : vector<2x32xf32>, vector<32x16xf32>, vector<2x16xf32> -> vector<2x16xf32>
    %382 = vector.shape_cast %381 : vector<2x16xf32> to vector<2x1x16xf32>
    %383 = vector.broadcast %382 : vector<2x1x16xf32> to vector<2x8x16xf32>
    %384 = arith.addf %15, %383 : vector<2x8x16xf32>
    %385 = math.tanh %384 : vector<2x8x16xf32>
    %386 = vector.broadcast %17 : vector<1x1x16xf32> to vector<2x8x16xf32>
    %387 = arith.mulf %385, %386 : vector<2x8x16xf32>
    %cst_142 = arith.constant dense<0.000000e+00> : vector<2x8xf32>
    %388 = vector.multi_reduction <add>, %387, %cst_142 [2] : vector<2x8x16xf32> to vector<2x8xf32>
    %389 = arith.mulf %388, %6 : vector<2x8xf32>
    %cst_143 = arith.constant dense<0xFF800000> : vector<2xf32>
    %390 = vector.multi_reduction <maximumf>, %389, %cst_143 [1] : vector<2x8xf32> to vector<2xf32>
    %391 = vector.shape_cast %390 : vector<2xf32> to vector<2x1xf32>
    %392 = vector.broadcast %391 : vector<2x1xf32> to vector<2x8xf32>
    %393 = arith.subf %389, %392 : vector<2x8xf32>
    %394 = math.exp %393 : vector<2x8xf32>
    %395 = arith.mulf %394, %6 : vector<2x8xf32>
    %cst_144 = arith.constant dense<0.000000e+00> : vector<2xf32>
    %396 = vector.multi_reduction <add>, %395, %cst_144 [1] : vector<2x8xf32> to vector<2xf32>
    %397 = vector.shape_cast %396 : vector<2xf32> to vector<2x1xf32>
    %cst_145 = arith.constant dense<0.000000e+00> : vector<2xf32>
    %398 = vector.multi_reduction <add>, %394, %cst_145 [1] : vector<2x8xf32> to vector<2xf32>
    %399 = vector.shape_cast %398 : vector<2xf32> to vector<2x1xf32>
    %cst_146 = arith.constant 9.99999982E-14 : f32
    %400 = vector.broadcast %cst_146 : f32 to vector<2x1xf32>
    %401 = arith.mulf %400, %399 : vector<2x1xf32>
    %402 = arith.addf %397, %401 : vector<2x1xf32>
    %403 = tpu.reciprocal %402 {approx = true} : vector<2x1xf32> -> vector<2x1xf32>
    %404 = vector.broadcast %403 : vector<2x1xf32> to vector<2x8xf32>
    %405 = arith.mulf %395, %404 : vector<2x8xf32>
    %406 = vector.shape_cast %405 : vector<2x8xf32> to vector<2x1x8xf32>
    "tpu.trace_start"() <{level = 10 : i32, message = "bqn,bnf->bqf"}> : () -> ()
    %cst_147 = arith.constant dense<0.000000e+00> : vector<2x1x64xf32>
    %407 = tpu.matmul %406, %0, %cst_147 {dimension_numbers = #tpu.dot_dimension_numbers<[2], [1], [1], [2], [0, 0, 0, 1, 1, 2], [0], [0]>} : vector<2x1x8xf32>, vector<2x8x64xf32>, vector<2x1x64xf32> -> vector<2x1x64xf32>
    "tpu.trace_stop"() : () -> ()
    %408 = vector.shape_cast %407 : vector<2x1x64xf32> to vector<2x64xf32>
    %c0_148 = arith.constant 0 : index
    %c0_149 = arith.constant 0 : index
    %409 = vector.load %arg13[%c0_148, %c0_149] : memref<64x128xf32, #tpu.memory_space<vmem>>, vector<64x128xf32>
    %cst_150 = arith.constant dense<0.000000e+00> : vector<2x128xf32>
    %410 = tpu.matmul %408, %409, %cst_150 {dimension_numbers = #tpu.dot_dimension_numbers<[1], [0], [0], [1], [0, 0, 1, 1], [], []>} : vector<2x64xf32>, vector<64x128xf32>, vector<2x128xf32> -> vector<2x128xf32>
    %411 = arith.addf %20, %410 : vector<2x128xf32>
    %c0_151 = arith.constant 0 : index
    %c0_152 = arith.constant 0 : index
    %412 = vector.load %arg14[%c0_151, %c0_152] : memref<32x128xf32, #tpu.memory_space<vmem>>, vector<32x128xf32>
    %cst_153 = arith.constant dense<0.000000e+00> : vector<2x128xf32>
    %413 = tpu.matmul %379, %412, %cst_153 {dimension_numbers = #tpu.dot_dimension_numbers<[1], [0], [0], [1], [0, 0, 1, 1], [], []>} : vector<2x32xf32>, vector<32x128xf32>, vector<2x128xf32> -> vector<2x128xf32>
    %414 = arith.addf %411, %413 : vector<2x128xf32>
    %c0_154 = arith.constant 0 : index
    %c0_155 = arith.constant 0 : index
    %415 = vector.load %arg15[%c0_154, %c0_155] : memref<32x128xf32, #tpu.memory_space<vmem>>, vector<32x128xf32>
    %cst_156 = arith.constant dense<0.000000e+00> : vector<2x128xf32>
    %416 = tpu.matmul %355, %415, %cst_156 {dimension_numbers = #tpu.dot_dimension_numbers<[1], [0], [0], [1], [0, 0, 1, 1], [], []>} : vector<2x32xf32>, vector<32x128xf32>, vector<2x128xf32> -> vector<2x128xf32>
    %417 = arith.addf %414, %416 : vector<2x128xf32>
    %418 = math.tanh %417 : vector<2x128xf32>
    %419 = arith.negf %417 : vector<2x128xf32>
    %420 = math.exp %419 : vector<2x128xf32>
    %cst_157 = arith.constant 1.000000e+00 : f32
    %421 = vector.broadcast %cst_157 : f32 to vector<2x128xf32>
    %422 = arith.addf %421, %420 : vector<2x128xf32>
    %423 = arith.divf %421, %422 : vector<2x128xf32>
    %424 = arith.select %42, %418, %423 : vector<2x128xi1>, vector<2x128xf32>
    %425 = vector.extract_strided_slice %424 {offsets = [0, 0], sizes = [2, 32], strides = [1, 1]} : vector<2x128xf32> to vector<2x32xf32>
    %426 = vector.extract_strided_slice %424 {offsets = [0, 32], sizes = [2, 32], strides = [1, 1]} : vector<2x128xf32> to vector<2x32xf32>
    %427 = vector.extract_strided_slice %424 {offsets = [0, 64], sizes = [2, 32], strides = [1, 1]} : vector<2x128xf32> to vector<2x32xf32>
    %428 = vector.extract_strided_slice %424 {offsets = [0, 96], sizes = [2, 32], strides = [1, 1]} : vector<2x128xf32> to vector<2x32xf32>
    %429 = arith.mulf %426, %353 : vector<2x32xf32>
    %430 = arith.mulf %425, %427 : vector<2x32xf32>
    %431 = arith.addf %429, %430 : vector<2x32xf32>
    %432 = math.tanh %431 : vector<2x32xf32>
    %433 = arith.mulf %428, %432 : vector<2x32xf32>
    %434 = vector.extract_strided_slice %36 {offsets = [10, 0], sizes = [2, 128], strides = [1, 1]} : vector<14x128xf32> to vector<2x128xf32>
    %435 = arith.addf %25, %434 : vector<2x128xf32>
    %c0_158 = arith.constant 0 : index
    %c0_159 = arith.constant 0 : index
    %436 = vector.load %arg7[%c0_158, %c0_159] : memref<32x128xf32, #tpu.memory_space<vmem>>, vector<32x128xf32>
    %cst_160 = arith.constant dense<0.000000e+00> : vector<2x128xf32>
    %437 = tpu.matmul %433, %436, %cst_160 {dimension_numbers = #tpu.dot_dimension_numbers<[1], [0], [0], [1], [0, 0, 1, 1], [], []>} : vector<2x32xf32>, vector<32x128xf32>, vector<2x128xf32> -> vector<2x128xf32>
    %438 = arith.addf %435, %437 : vector<2x128xf32>
    %c0_161 = arith.constant 0 : index
    %c0_162 = arith.constant 0 : index
    %439 = vector.load %arg8[%c0_161, %c0_162] : memref<32x128xf32, #tpu.memory_space<vmem>>, vector<32x128xf32>
    %cst_163 = arith.constant dense<0.000000e+00> : vector<2x128xf32>
    %440 = tpu.matmul %379, %439, %cst_163 {dimension_numbers = #tpu.dot_dimension_numbers<[1], [0], [0], [1], [0, 0, 1, 1], [], []>} : vector<2x32xf32>, vector<32x128xf32>, vector<2x128xf32> -> vector<2x128xf32>
    %441 = arith.addf %438, %440 : vector<2x128xf32>
    %442 = math.tanh %441 : vector<2x128xf32>
    %443 = arith.negf %441 : vector<2x128xf32>
    %444 = math.exp %443 : vector<2x128xf32>
    %cst_164 = arith.constant 1.000000e+00 : f32
    %445 = vector.broadcast %cst_164 : f32 to vector<2x128xf32>
    %446 = arith.addf %445, %444 : vector<2x128xf32>
    %447 = arith.divf %445, %446 : vector<2x128xf32>
    %448 = arith.select %42, %442, %447 : vector<2x128xi1>, vector<2x128xf32>
    %449 = vector.extract_strided_slice %448 {offsets = [0, 0], sizes = [2, 32], strides = [1, 1]} : vector<2x128xf32> to vector<2x32xf32>
    %450 = vector.extract_strided_slice %448 {offsets = [0, 32], sizes = [2, 32], strides = [1, 1]} : vector<2x128xf32> to vector<2x32xf32>
    %451 = vector.extract_strided_slice %448 {offsets = [0, 64], sizes = [2, 32], strides = [1, 1]} : vector<2x128xf32> to vector<2x32xf32>
    %452 = vector.extract_strided_slice %448 {offsets = [0, 96], sizes = [2, 32], strides = [1, 1]} : vector<2x128xf32> to vector<2x32xf32>
    %453 = arith.mulf %450, %377 : vector<2x32xf32>
    %454 = arith.mulf %449, %451 : vector<2x32xf32>
    %455 = arith.addf %453, %454 : vector<2x32xf32>
    %456 = math.tanh %455 : vector<2x32xf32>
    %457 = arith.mulf %452, %456 : vector<2x32xf32>
    %c0_165 = arith.constant 0 : index
    %c0_166 = arith.constant 0 : index
    %458 = vector.load %arg10[%c0_165, %c0_166] : memref<32x16xf32, #tpu.memory_space<vmem>>, vector<32x16xf32>
    %cst_167 = arith.constant dense<0.000000e+00> : vector<2x16xf32>
    %459 = tpu.matmul %457, %458, %cst_167 {dimension_numbers = #tpu.dot_dimension_numbers<[1], [0], [0], [1], [0, 0, 1, 1], [], []>} : vector<2x32xf32>, vector<32x16xf32>, vector<2x16xf32> -> vector<2x16xf32>
    %460 = vector.shape_cast %459 : vector<2x16xf32> to vector<2x1x16xf32>
    %461 = vector.broadcast %460 : vector<2x1x16xf32> to vector<2x8x16xf32>
    %462 = arith.addf %15, %461 : vector<2x8x16xf32>
    %463 = math.tanh %462 : vector<2x8x16xf32>
    %464 = vector.broadcast %17 : vector<1x1x16xf32> to vector<2x8x16xf32>
    %465 = arith.mulf %463, %464 : vector<2x8x16xf32>
    %cst_168 = arith.constant dense<0.000000e+00> : vector<2x8xf32>
    %466 = vector.multi_reduction <add>, %465, %cst_168 [2] : vector<2x8x16xf32> to vector<2x8xf32>
    %467 = arith.mulf %466, %6 : vector<2x8xf32>
    %cst_169 = arith.constant dense<0xFF800000> : vector<2xf32>
    %468 = vector.multi_reduction <maximumf>, %467, %cst_169 [1] : vector<2x8xf32> to vector<2xf32>
    %469 = vector.shape_cast %468 : vector<2xf32> to vector<2x1xf32>
    %470 = vector.broadcast %469 : vector<2x1xf32> to vector<2x8xf32>
    %471 = arith.subf %467, %470 : vector<2x8xf32>
    %472 = math.exp %471 : vector<2x8xf32>
    %473 = arith.mulf %472, %6 : vector<2x8xf32>
    %cst_170 = arith.constant dense<0.000000e+00> : vector<2xf32>
    %474 = vector.multi_reduction <add>, %473, %cst_170 [1] : vector<2x8xf32> to vector<2xf32>
    %475 = vector.shape_cast %474 : vector<2xf32> to vector<2x1xf32>
    %cst_171 = arith.constant dense<0.000000e+00> : vector<2xf32>
    %476 = vector.multi_reduction <add>, %472, %cst_171 [1] : vector<2x8xf32> to vector<2xf32>
    %477 = vector.shape_cast %476 : vector<2xf32> to vector<2x1xf32>
    %cst_172 = arith.constant 9.99999982E-14 : f32
    %478 = vector.broadcast %cst_172 : f32 to vector<2x1xf32>
    %479 = arith.mulf %478, %477 : vector<2x1xf32>
    %480 = arith.addf %475, %479 : vector<2x1xf32>
    %481 = tpu.reciprocal %480 {approx = true} : vector<2x1xf32> -> vector<2x1xf32>
    %482 = vector.broadcast %481 : vector<2x1xf32> to vector<2x8xf32>
    %483 = arith.mulf %473, %482 : vector<2x8xf32>
    %484 = vector.shape_cast %483 : vector<2x8xf32> to vector<2x1x8xf32>
    "tpu.trace_start"() <{level = 10 : i32, message = "bqn,bnf->bqf"}> : () -> ()
    %cst_173 = arith.constant dense<0.000000e+00> : vector<2x1x64xf32>
    %485 = tpu.matmul %484, %0, %cst_173 {dimension_numbers = #tpu.dot_dimension_numbers<[2], [1], [1], [2], [0, 0, 0, 1, 1, 2], [0], [0]>} : vector<2x1x8xf32>, vector<2x8x64xf32>, vector<2x1x64xf32> -> vector<2x1x64xf32>
    "tpu.trace_stop"() : () -> ()
    %486 = vector.shape_cast %485 : vector<2x1x64xf32> to vector<2x64xf32>
    %c0_174 = arith.constant 0 : index
    %c0_175 = arith.constant 0 : index
    %487 = vector.load %arg13[%c0_174, %c0_175] : memref<64x128xf32, #tpu.memory_space<vmem>>, vector<64x128xf32>
    %cst_176 = arith.constant dense<0.000000e+00> : vector<2x128xf32>
    %488 = tpu.matmul %486, %487, %cst_176 {dimension_numbers = #tpu.dot_dimension_numbers<[1], [0], [0], [1], [0, 0, 1, 1], [], []>} : vector<2x64xf32>, vector<64x128xf32>, vector<2x128xf32> -> vector<2x128xf32>
    %489 = arith.addf %20, %488 : vector<2x128xf32>
    %c0_177 = arith.constant 0 : index
    %c0_178 = arith.constant 0 : index
    %490 = vector.load %arg14[%c0_177, %c0_178] : memref<32x128xf32, #tpu.memory_space<vmem>>, vector<32x128xf32>
    %cst_179 = arith.constant dense<0.000000e+00> : vector<2x128xf32>
    %491 = tpu.matmul %457, %490, %cst_179 {dimension_numbers = #tpu.dot_dimension_numbers<[1], [0], [0], [1], [0, 0, 1, 1], [], []>} : vector<2x32xf32>, vector<32x128xf32>, vector<2x128xf32> -> vector<2x128xf32>
    %492 = arith.addf %489, %491 : vector<2x128xf32>
    %c0_180 = arith.constant 0 : index
    %c0_181 = arith.constant 0 : index
    %493 = vector.load %arg15[%c0_180, %c0_181] : memref<32x128xf32, #tpu.memory_space<vmem>>, vector<32x128xf32>
    %cst_182 = arith.constant dense<0.000000e+00> : vector<2x128xf32>
    %494 = tpu.matmul %433, %493, %cst_182 {dimension_numbers = #tpu.dot_dimension_numbers<[1], [0], [0], [1], [0, 0, 1, 1], [], []>} : vector<2x32xf32>, vector<32x128xf32>, vector<2x128xf32> -> vector<2x128xf32>
    %495 = arith.addf %492, %494 : vector<2x128xf32>
    %496 = math.tanh %495 : vector<2x128xf32>
    %497 = arith.negf %495 : vector<2x128xf32>
    %498 = math.exp %497 : vector<2x128xf32>
    %cst_183 = arith.constant 1.000000e+00 : f32
    %499 = vector.broadcast %cst_183 : f32 to vector<2x128xf32>
    %500 = arith.addf %499, %498 : vector<2x128xf32>
    %501 = arith.divf %499, %500 : vector<2x128xf32>
    %502 = arith.select %42, %496, %501 : vector<2x128xi1>, vector<2x128xf32>
    %503 = vector.extract_strided_slice %502 {offsets = [0, 0], sizes = [2, 32], strides = [1, 1]} : vector<2x128xf32> to vector<2x32xf32>
    %504 = vector.extract_strided_slice %502 {offsets = [0, 32], sizes = [2, 32], strides = [1, 1]} : vector<2x128xf32> to vector<2x32xf32>
    %505 = vector.extract_strided_slice %502 {offsets = [0, 64], sizes = [2, 32], strides = [1, 1]} : vector<2x128xf32> to vector<2x32xf32>
    %506 = vector.extract_strided_slice %502 {offsets = [0, 96], sizes = [2, 32], strides = [1, 1]} : vector<2x128xf32> to vector<2x32xf32>
    %507 = arith.mulf %504, %431 : vector<2x32xf32>
    %508 = arith.mulf %503, %505 : vector<2x32xf32>
    %509 = arith.addf %507, %508 : vector<2x32xf32>
    %510 = math.tanh %509 : vector<2x32xf32>
    %511 = arith.mulf %506, %510 : vector<2x32xf32>
    %512 = vector.extract_strided_slice %36 {offsets = [12, 0], sizes = [2, 128], strides = [1, 1]} : vector<14x128xf32> to vector<2x128xf32>
    %513 = arith.addf %25, %512 : vector<2x128xf32>
    %c0_184 = arith.constant 0 : index
    %c0_185 = arith.constant 0 : index
    %514 = vector.load %arg7[%c0_184, %c0_185] : memref<32x128xf32, #tpu.memory_space<vmem>>, vector<32x128xf32>
    %cst_186 = arith.constant dense<0.000000e+00> : vector<2x128xf32>
    %515 = tpu.matmul %511, %514, %cst_186 {dimension_numbers = #tpu.dot_dimension_numbers<[1], [0], [0], [1], [0, 0, 1, 1], [], []>} : vector<2x32xf32>, vector<32x128xf32>, vector<2x128xf32> -> vector<2x128xf32>
    %516 = arith.addf %513, %515 : vector<2x128xf32>
    %c0_187 = arith.constant 0 : index
    %c0_188 = arith.constant 0 : index
    %517 = vector.load %arg8[%c0_187, %c0_188] : memref<32x128xf32, #tpu.memory_space<vmem>>, vector<32x128xf32>
    %cst_189 = arith.constant dense<0.000000e+00> : vector<2x128xf32>
    %518 = tpu.matmul %457, %517, %cst_189 {dimension_numbers = #tpu.dot_dimension_numbers<[1], [0], [0], [1], [0, 0, 1, 1], [], []>} : vector<2x32xf32>, vector<32x128xf32>, vector<2x128xf32> -> vector<2x128xf32>
    %519 = arith.addf %516, %518 : vector<2x128xf32>
    %520 = math.tanh %519 : vector<2x128xf32>
    %521 = arith.negf %519 : vector<2x128xf32>
    %522 = math.exp %521 : vector<2x128xf32>
    %cst_190 = arith.constant 1.000000e+00 : f32
    %523 = vector.broadcast %cst_190 : f32 to vector<2x128xf32>
    %524 = arith.addf %523, %522 : vector<2x128xf32>
    %525 = arith.divf %523, %524 : vector<2x128xf32>
    %526 = arith.select %42, %520, %525 : vector<2x128xi1>, vector<2x128xf32>
    %527 = vector.extract_strided_slice %526 {offsets = [0, 0], sizes = [2, 32], strides = [1, 1]} : vector<2x128xf32> to vector<2x32xf32>
    %528 = vector.extract_strided_slice %526 {offsets = [0, 32], sizes = [2, 32], strides = [1, 1]} : vector<2x128xf32> to vector<2x32xf32>
    %529 = vector.extract_strided_slice %526 {offsets = [0, 64], sizes = [2, 32], strides = [1, 1]} : vector<2x128xf32> to vector<2x32xf32>
    %530 = vector.extract_strided_slice %526 {offsets = [0, 96], sizes = [2, 32], strides = [1, 1]} : vector<2x128xf32> to vector<2x32xf32>
    %531 = arith.mulf %528, %455 : vector<2x32xf32>
    %532 = arith.mulf %527, %529 : vector<2x32xf32>
    %533 = arith.addf %531, %532 : vector<2x32xf32>
    %534 = math.tanh %533 : vector<2x32xf32>
    %535 = arith.mulf %530, %534 : vector<2x32xf32>
    %c0_191 = arith.constant 0 : index
    %c0_192 = arith.constant 0 : index
    %536 = vector.load %arg10[%c0_191, %c0_192] : memref<32x16xf32, #tpu.memory_space<vmem>>, vector<32x16xf32>
    %cst_193 = arith.constant dense<0.000000e+00> : vector<2x16xf32>
    %537 = tpu.matmul %535, %536, %cst_193 {dimension_numbers = #tpu.dot_dimension_numbers<[1], [0], [0], [1], [0, 0, 1, 1], [], []>} : vector<2x32xf32>, vector<32x16xf32>, vector<2x16xf32> -> vector<2x16xf32>
    %538 = vector.shape_cast %537 : vector<2x16xf32> to vector<2x1x16xf32>
    %539 = vector.broadcast %538 : vector<2x1x16xf32> to vector<2x8x16xf32>
    %540 = arith.addf %15, %539 : vector<2x8x16xf32>
    %541 = math.tanh %540 : vector<2x8x16xf32>
    %542 = vector.broadcast %17 : vector<1x1x16xf32> to vector<2x8x16xf32>
    %543 = arith.mulf %541, %542 : vector<2x8x16xf32>
    %cst_194 = arith.constant dense<0.000000e+00> : vector<2x8xf32>
    %544 = vector.multi_reduction <add>, %543, %cst_194 [2] : vector<2x8x16xf32> to vector<2x8xf32>
    %545 = arith.mulf %544, %6 : vector<2x8xf32>
    %cst_195 = arith.constant dense<0xFF800000> : vector<2xf32>
    %546 = vector.multi_reduction <maximumf>, %545, %cst_195 [1] : vector<2x8xf32> to vector<2xf32>
    %547 = vector.shape_cast %546 : vector<2xf32> to vector<2x1xf32>
    %548 = vector.broadcast %547 : vector<2x1xf32> to vector<2x8xf32>
    %549 = arith.subf %545, %548 : vector<2x8xf32>
    %550 = math.exp %549 : vector<2x8xf32>
    %551 = arith.mulf %550, %6 : vector<2x8xf32>
    %cst_196 = arith.constant dense<0.000000e+00> : vector<2xf32>
    %552 = vector.multi_reduction <add>, %551, %cst_196 [1] : vector<2x8xf32> to vector<2xf32>
    %553 = vector.shape_cast %552 : vector<2xf32> to vector<2x1xf32>
    %cst_197 = arith.constant dense<0.000000e+00> : vector<2xf32>
    %554 = vector.multi_reduction <add>, %550, %cst_197 [1] : vector<2x8xf32> to vector<2xf32>
    %555 = vector.shape_cast %554 : vector<2xf32> to vector<2x1xf32>
    %cst_198 = arith.constant 9.99999982E-14 : f32
    %556 = vector.broadcast %cst_198 : f32 to vector<2x1xf32>
    %557 = arith.mulf %556, %555 : vector<2x1xf32>
    %558 = arith.addf %553, %557 : vector<2x1xf32>
    %559 = tpu.reciprocal %558 {approx = true} : vector<2x1xf32> -> vector<2x1xf32>
    %560 = vector.broadcast %559 : vector<2x1xf32> to vector<2x8xf32>
    %561 = arith.mulf %551, %560 : vector<2x8xf32>
    %562 = vector.shape_cast %561 : vector<2x8xf32> to vector<2x1x8xf32>
    "tpu.trace_start"() <{level = 10 : i32, message = "bqn,bnf->bqf"}> : () -> ()
    %cst_199 = arith.constant dense<0.000000e+00> : vector<2x1x64xf32>
    %563 = tpu.matmul %562, %0, %cst_199 {dimension_numbers = #tpu.dot_dimension_numbers<[2], [1], [1], [2], [0, 0, 0, 1, 1, 2], [0], [0]>} : vector<2x1x8xf32>, vector<2x8x64xf32>, vector<2x1x64xf32> -> vector<2x1x64xf32>
    "tpu.trace_stop"() : () -> ()
    %564 = vector.shape_cast %563 : vector<2x1x64xf32> to vector<2x64xf32>
    %c0_200 = arith.constant 0 : index
    %c0_201 = arith.constant 0 : index
    %565 = vector.load %arg13[%c0_200, %c0_201] : memref<64x128xf32, #tpu.memory_space<vmem>>, vector<64x128xf32>
    %cst_202 = arith.constant dense<0.000000e+00> : vector<2x128xf32>
    %566 = tpu.matmul %564, %565, %cst_202 {dimension_numbers = #tpu.dot_dimension_numbers<[1], [0], [0], [1], [0, 0, 1, 1], [], []>} : vector<2x64xf32>, vector<64x128xf32>, vector<2x128xf32> -> vector<2x128xf32>
    %567 = arith.addf %20, %566 : vector<2x128xf32>
    %c0_203 = arith.constant 0 : index
    %c0_204 = arith.constant 0 : index
    %568 = vector.load %arg14[%c0_203, %c0_204] : memref<32x128xf32, #tpu.memory_space<vmem>>, vector<32x128xf32>
    %cst_205 = arith.constant dense<0.000000e+00> : vector<2x128xf32>
    %569 = tpu.matmul %535, %568, %cst_205 {dimension_numbers = #tpu.dot_dimension_numbers<[1], [0], [0], [1], [0, 0, 1, 1], [], []>} : vector<2x32xf32>, vector<32x128xf32>, vector<2x128xf32> -> vector<2x128xf32>
    %570 = arith.addf %567, %569 : vector<2x128xf32>
    %c0_206 = arith.constant 0 : index
    %c0_207 = arith.constant 0 : index
    %571 = vector.load %arg15[%c0_206, %c0_207] : memref<32x128xf32, #tpu.memory_space<vmem>>, vector<32x128xf32>
    %cst_208 = arith.constant dense<0.000000e+00> : vector<2x128xf32>
    %572 = tpu.matmul %511, %571, %cst_208 {dimension_numbers = #tpu.dot_dimension_numbers<[1], [0], [0], [1], [0, 0, 1, 1], [], []>} : vector<2x32xf32>, vector<32x128xf32>, vector<2x128xf32> -> vector<2x128xf32>
    %573 = arith.addf %570, %572 : vector<2x128xf32>
    %574 = math.tanh %573 : vector<2x128xf32>
    %575 = arith.negf %573 : vector<2x128xf32>
    %576 = math.exp %575 : vector<2x128xf32>
    %cst_209 = arith.constant 1.000000e+00 : f32
    %577 = vector.broadcast %cst_209 : f32 to vector<2x128xf32>
    %578 = arith.addf %577, %576 : vector<2x128xf32>
    %579 = arith.divf %577, %578 : vector<2x128xf32>
    %580 = arith.select %42, %574, %579 : vector<2x128xi1>, vector<2x128xf32>
    %581 = vector.extract_strided_slice %580 {offsets = [0, 0], sizes = [2, 32], strides = [1, 1]} : vector<2x128xf32> to vector<2x32xf32>
    %582 = vector.extract_strided_slice %580 {offsets = [0, 32], sizes = [2, 32], strides = [1, 1]} : vector<2x128xf32> to vector<2x32xf32>
    %583 = vector.extract_strided_slice %580 {offsets = [0, 64], sizes = [2, 32], strides = [1, 1]} : vector<2x128xf32> to vector<2x32xf32>
    %584 = vector.extract_strided_slice %580 {offsets = [0, 96], sizes = [2, 32], strides = [1, 1]} : vector<2x128xf32> to vector<2x32xf32>
    %585 = arith.mulf %582, %509 : vector<2x32xf32>
    %586 = arith.mulf %581, %583 : vector<2x32xf32>
    %587 = arith.addf %585, %586 : vector<2x32xf32>
    %588 = math.tanh %587 : vector<2x32xf32>
    %589 = arith.mulf %584, %588 : vector<2x32xf32>
    %590 = tpu.concatenate %121, %199, %277, %355, %433, %511, %589 in 0 : vector<2x32xf32>, vector<2x32xf32>, vector<2x32xf32>, vector<2x32xf32>, vector<2x32xf32>, vector<2x32xf32>, vector<2x32xf32> -> vector<14x32xf32>
    %c0_210 = arith.constant 0 : index
    %c0_211 = arith.constant 0 : index
    %591 = vector.load %arg17[%c0_210, %c0_211] : memref<32x32xf32, #tpu.memory_space<vmem>>, vector<32x32xf32>
    %cst_212 = arith.constant dense<0.000000e+00> : vector<14x32xf32>
    %592 = tpu.matmul %590, %591, %cst_212 {dimension_numbers = #tpu.dot_dimension_numbers<[1], [0], [0], [1], [0, 0, 1, 1], [], []>} : vector<14x32xf32>, vector<32x32xf32>, vector<14x32xf32> -> vector<14x32xf32>
    %c0_213 = arith.constant 0 : index
    %c0_214 = arith.constant 0 : index
    %593 = vector.load %arg18[%c0_213, %c0_214] : memref<1x32xf32, #tpu.memory_space<vmem>>, vector<1x32xf32>
    %594 = vector.shape_cast %593 : vector<1x32xf32> to vector<1x32xf32>
    %595 = vector.broadcast %594 : vector<1x32xf32> to vector<14x32xf32>
    %596 = arith.addf %592, %595 : vector<14x32xf32>
    %597 = math.tanh %596 : vector<14x32xf32>
    %c0_215 = arith.constant 0 : index
    %c0_216 = arith.constant 0 : index
    %598 = vector.load %arg4[%c0_215, %c0_216] : memref<32x48xf32, #tpu.memory_space<vmem>>, vector<32x48xf32>
    %cst_217 = arith.constant dense<0.000000e+00> : vector<14x48xf32>
    %599 = tpu.matmul %597, %598, %cst_217 {dimension_numbers = #tpu.dot_dimension_numbers<[1], [0], [0], [1], [0, 0, 1, 1], [], []>} : vector<14x32xf32>, vector<32x48xf32>, vector<14x48xf32> -> vector<14x48xf32>
    %cst_218 = arith.constant dense<0xFF800000> : vector<14xf32>
    %600 = vector.multi_reduction <maximumf>, %599, %cst_218 [1] : vector<14x48xf32> to vector<14xf32>
    %601 = vector.shape_cast %600 : vector<14xf32> to vector<14x1xf32>
    %602 = vector.broadcast %601 : vector<14x1xf32> to vector<14x48xf32>
    %603 = arith.subf %599, %602 : vector<14x48xf32>
    %604 = math.exp %603 : vector<14x48xf32>
    %cst_219 = arith.constant dense<0.000000e+00> : vector<14xf32>
    %605 = vector.multi_reduction <add>, %604, %cst_219 [1] : vector<14x48xf32> to vector<14xf32>
    %606 = vector.shape_cast %605 : vector<14xf32> to vector<14x1xf32>
    %607 = math.log %606 : vector<14x1xf32>
    %608 = arith.addf %601, %607 : vector<14x1xf32>
    %609 = vector.broadcast %27 : vector<14x1xi32> to vector<14x48xi32>
    %610 = arith.cmpi eq, %28, %609 : vector<14x48xi32>
    %611 = arith.extui %610 : vector<14x48xi1> to vector<14x48xi32>
    %612 = arith.sitofp %611 : vector<14x48xi32> to vector<14x48xf32>
    %613 = arith.mulf %612, %599 : vector<14x48xf32>
    %cst_220 = arith.constant dense<0.000000e+00> : vector<14xf32>
    %614 = vector.multi_reduction <add>, %613, %cst_220 [1] : vector<14x48xf32> to vector<14xf32>
    %615 = vector.shape_cast %614 : vector<14xf32> to vector<14x1xf32>
    %c0_i32 = arith.constant 0 : i32
    %616 = vector.broadcast %c0_i32 : i32 to vector<14x1xi32>
    %617 = arith.cmpi ne, %27, %616 : vector<14x1xi32>
    %618 = arith.extui %617 : vector<14x1xi1> to vector<14x1xi32>
    %619 = arith.sitofp %618 : vector<14x1xi32> to vector<14x1xf32>
    %620 = arith.subf %608, %615 : vector<14x1xf32>
    %621 = arith.mulf %620, %619 : vector<14x1xf32>
    %cst_221 = arith.constant 0.000000e+00 : f32
    %622 = vector.broadcast %cst_221 : f32 to vector<2x1xf32>
    %cst_222 = arith.constant 0.000000e+00 : f32
    %623 = vector.broadcast %cst_222 : f32 to vector<2x1xf32>
    %624 = vector.extract_strided_slice %621 {offsets = [0, 0], sizes = [2, 1], strides = [1, 1]} : vector<14x1xf32> to vector<2x1xf32>
    %625 = arith.addf %622, %624 : vector<2x1xf32>
    %626 = vector.extract_strided_slice %619 {offsets = [0, 0], sizes = [2, 1], strides = [1, 1]} : vector<14x1xf32> to vector<2x1xf32>
    %627 = arith.addf %623, %626 : vector<2x1xf32>
    %628 = vector.extract_strided_slice %621 {offsets = [2, 0], sizes = [2, 1], strides = [1, 1]} : vector<14x1xf32> to vector<2x1xf32>
    %629 = arith.addf %625, %628 : vector<2x1xf32>
    %630 = vector.extract_strided_slice %619 {offsets = [2, 0], sizes = [2, 1], strides = [1, 1]} : vector<14x1xf32> to vector<2x1xf32>
    %631 = arith.addf %627, %630 : vector<2x1xf32>
    %632 = vector.extract_strided_slice %621 {offsets = [4, 0], sizes = [2, 1], strides = [1, 1]} : vector<14x1xf32> to vector<2x1xf32>
    %633 = arith.addf %629, %632 : vector<2x1xf32>
    %634 = vector.extract_strided_slice %619 {offsets = [4, 0], sizes = [2, 1], strides = [1, 1]} : vector<14x1xf32> to vector<2x1xf32>
    %635 = arith.addf %631, %634 : vector<2x1xf32>
    %636 = vector.extract_strided_slice %621 {offsets = [6, 0], sizes = [2, 1], strides = [1, 1]} : vector<14x1xf32> to vector<2x1xf32>
    %637 = arith.addf %633, %636 : vector<2x1xf32>
    %638 = vector.extract_strided_slice %619 {offsets = [6, 0], sizes = [2, 1], strides = [1, 1]} : vector<14x1xf32> to vector<2x1xf32>
    %639 = arith.addf %635, %638 : vector<2x1xf32>
    %640 = vector.extract_strided_slice %621 {offsets = [8, 0], sizes = [2, 1], strides = [1, 1]} : vector<14x1xf32> to vector<2x1xf32>
    %641 = arith.addf %637, %640 : vector<2x1xf32>
    %642 = vector.extract_strided_slice %619 {offsets = [8, 0], sizes = [2, 1], strides = [1, 1]} : vector<14x1xf32> to vector<2x1xf32>
    %643 = arith.addf %639, %642 : vector<2x1xf32>
    %644 = vector.extract_strided_slice %621 {offsets = [10, 0], sizes = [2, 1], strides = [1, 1]} : vector<14x1xf32> to vector<2x1xf32>
    %645 = arith.addf %641, %644 : vector<2x1xf32>
    %646 = vector.extract_strided_slice %619 {offsets = [10, 0], sizes = [2, 1], strides = [1, 1]} : vector<14x1xf32> to vector<2x1xf32>
    %647 = arith.addf %643, %646 : vector<2x1xf32>
    %648 = vector.extract_strided_slice %621 {offsets = [12, 0], sizes = [2, 1], strides = [1, 1]} : vector<14x1xf32> to vector<2x1xf32>
    %649 = arith.addf %645, %648 : vector<2x1xf32>
    %650 = vector.extract_strided_slice %619 {offsets = [12, 0], sizes = [2, 1], strides = [1, 1]} : vector<14x1xf32> to vector<2x1xf32>
    %651 = arith.addf %647, %650 : vector<2x1xf32>
    %cst_223 = arith.constant 9.99999982E-14 : f32
    %652 = vector.broadcast %cst_223 : f32 to vector<2x1xf32>
    %653 = arith.addf %651, %652 : vector<2x1xf32>
    %654 = arith.divf %649, %653 : vector<2x1xf32>
    %655 = arith.mulf %651, %654 : vector<2x1xf32>
    %c0_224 = arith.constant 0 : index
    %c0_225 = arith.constant 0 : index
    %656 = vector.load %arg19[%c0_224, %c0_225] : memref<2x1xf32, #tpu.memory_space<vmem>>, vector<2x1xf32>
    tpu.vector_store %arg19[%c0_224, %c0_225], %655 {strides = array<i32>} : memref<2x1xf32, #tpu.memory_space<vmem>>, vector<2x1xf32>,
    return
  }
}

</mosaic_0001>

<bundles_post_ra>
// kernel: tpu_custom_call.1
= control target key start
LH: loop header
LB: loop body
LE: loop exit
PB: predicated region body
PF: predicated region fallthrough
CT: control target
= control target key end

     0   :  { %s4977_s0 = inlined_call_operand.vmem [shape: s32[14,1], index: 0, kind: input, shape index: {}]   ;;  %s4978_s1 = inlined_call_operand.vmem [shape: s32[14,1], index: 1, kind: input, shape index: {}]   ;;  %s4979_s2 = inlined_call_operand.vmem [shape: f32[2,8,64], index: 2, kind: input, shape index: {}]   ;;  %s4980_s3 = inlined_call_operand.vmem [shape: f32[48,32], index: 3, kind: input, shape index: {}]   ;;  %s4981_s4 = inlined_call_operand.vmem [shape: f32[32,48], index: 4, kind: input, shape index: {}]   ;;  %s4982_s5 = inlined_call_operand.hbm [shape: f32[32,128], index: 5, kind: input, shape index: {}]   ;;  %s4983_s6 = inlined_call_operand.vmem [shape: f32[64,128], index: 6, kind: input, shape index: {}]   ;;  %s4984_s7 = inlined_call_operand.hbm [shape: f32[32,128], index: 7, kind: input, shape index: {}]   ;;  %s4985_s8 = inlined_call_operand.hbm [shape: f32[32,128], index: 8, kind: input, shape index: {}]   ;;  %s4986_s9 = inlined_call_operand.vmem [shape: f32[1,128], index: 9, kind: input, shape index: {}]   ;;  %s4987_s10 = inlined_call_operand.vmem [shape: f32[32,16], index: 10, kind: input, shape index: {}]   ;;  %s4988_s11 = inlined_call_operand.vmem [shape: f32[64,16], index: 11, kind: input, shape index: {}]   ;;  %s4989_s12 = inlined_call_operand.vmem [shape: f32[1,16], index: 12, kind: input, shape index: {}]   ;;  %s4990_s13 = inlined_call_operand.vmem [shape: f32[64,128], index: 13, kind: input, shape index: {}]   ;;  %s4991_s14 = inlined_call_operand.hbm [shape: f32[32,128], index: 14, kind: input, shape index: {}]   ;;  %s4992_s15 = inlined_call_operand.hbm [shape: f32[32,128], index: 15, kind: input, shape index: {}]   ;;  %s4993_s16 = inlined_call_operand.vmem [shape: f32[1,128], index: 16, kind: input, shape index: {}]   ;;  %s4994_s17 = inlined_call_operand.hbm [shape: f32[32,32], index: 17, kind: input, shape index: {}]   ;;  %s4995_s18 = inlined_call_operand.vmem [shape: f32[1,32], index: 18, kind: input, shape index: {}]   ;;  %s4996_s19 = inlined_call_operand.vmem [shape: f32[2,1], index: 19, kind: output, shape index: {}]  }
   0x1   :  { %5001 = sst [smem:[#allocation16_spill]] %s4977_s0 }
   0x2   :  { %5002 = sst [smem:[#allocation17_spill]] %s4978_s1 }
   0x3   :  { %5003 = sst [smem:[#allocation18_spill]] %s4979_s2 }
   0x4   :  { %5004 = sst [smem:[#allocation19_spill]] %s4980_s3 }
   0x5   :  { %24 = vsyncpa [#allocation3], 0 }
   0x6   :  { %25 = vsyncpa [#allocation5], 0 }
   0x7   :  { %26 = vsyncpa [#allocation8], 0 }
   0x8   :  { %27 = vsyncpa [#allocation11], 0  ;;  %s57_s20 = sshll.u32 %s4984_s7, 4  ;;  %s3771_s21 = smov [#allocation4]   ;;  %s58_s20 = int_to_ptr.hbm [resolvable:$true] %s57_s20 }
   0x9   :  { %s59_s1 = sshll.u32 %s3771_s21, 4  ;;  %s93_s23 = sshll.u32 %s4991_s14, 4  ;;  %s60_s1 = int_to_ptr.vmem [resolvable:$true] %s59_s1  ;;  %s94_s23 = int_to_ptr.hbm [resolvable:$true] %s93_s23 }
   0xa   :  { %s3772_s24 = smov 128   ;;  %s3773_s25 = smov 8  }
   0xb   :  { %65 = dma.hbm_to_vmem [thread:$0]  %s58_s20, 512, %s60_s1, [#allocation5], %s3772_s24, %s3772_s24, %s3773_s25  }
   0xc   :  { %s3774_s3 = smov [#allocation7]   ;;  %s42_s7 = sshll.u32 %s4982_s5, 4  ;;  %s43_s7 = int_to_ptr.hbm [resolvable:$true] %s42_s7 }
   0xd   :  { %s95_s26 = sshll.u32 %s3774_s3, 4  ;;  %s70_s0 = sshll.u32 %s4985_s8, 4  ;;  %s96_s26 = int_to_ptr.vmem [resolvable:$true] %s95_s26  ;;  %s71_s0 = int_to_ptr.hbm [resolvable:$true] %s70_s0 }
   0xe   :  { %101 = dma.hbm_to_vmem [thread:$0]  %s94_s23, 512, %s96_s26, [#allocation8], %s3772_s24, %s3772_s24, %s3773_s25  }
   0xf   :  { %s3775_s30 = smov [#allocation2]   ;;  %s3776_s20 = smov [#allocation6]  }
  0x10   :  { %s44_s21 = sshll.u32 %s3775_s30, 4  ;;  %s72_s5 = sshll.u32 %s3776_s20, 4  ;;  %s45_s21 = int_to_ptr.vmem [resolvable:$true] %s44_s21  ;;  %s73_s5 = int_to_ptr.vmem [resolvable:$true] %s72_s5 }
  0x11   :  { %50 = dma.hbm_to_vmem [thread:$0]  %s43_s7, 512, %s45_s21, [#allocation3], %s3772_s24, %s3772_s24, %s3773_s25  }
  0x12   :  { %s106_s2 = sshll.u32 %s4992_s15, 4  ;;  %s121_s3 = sshll.u32 %s4994_s17, 4  ;;  %s107_s2 = int_to_ptr.hbm [resolvable:$true] %s106_s2  ;;  %s122_s3 = int_to_ptr.hbm [resolvable:$true] %s121_s3 }
  0x13   :  { %78 = dma.hbm_to_vmem [thread:$0]  %s71_s0, 512, %s73_s5, [#allocation5], %s3772_s24, %s3772_s24, %s3773_s25  }
  0x14   :  { %s3777_s26 = smov [#allocation9]   ;;  %s3778_s28 = smov [#allocation10]  }
  0x15   :  { %s108_s27 = sshll.u32 %s3777_s26, 4  ;;  %s123_s15 = sshll.u32 %s3778_s28, 4  ;;  %s109_s27 = int_to_ptr.vmem [resolvable:$true] %s108_s27  ;;  %s124_s15 = int_to_ptr.vmem [resolvable:$true] %s123_s15 }
  0x16   :  { %114 = dma.hbm_to_vmem [thread:$0]  %s107_s2, 512, %s109_s27, [#allocation8], %s3772_s24, %s3772_s24, %s3773_s25  }
  0x17   :  { %129 = dma.hbm_to_vmem [thread:$0]  %s122_s3, 512, %s124_s15, [#allocation11], %s3772_s24, %s3772_s24, %s3773_s25  }
  0x18   :  { %3763 = dma.done.wait [#allocation3], 512  }
  0x19   :  { %3764 = vsyncadd [#allocation3], 4294966784 }
  0x1a   :  { %3765 = dma.done.wait [#allocation5], 1024  }
  0x1b   :  { %3766 = vsyncadd [#allocation5], 4294966272 }
  0x1c   :  { %3767 = dma.done.wait [#allocation8], 1024  }
  0x1d   :  { %3768 = vsyncadd [#allocation8], 4294966272 }
  0x1e   :  { %3769 = dma.done.wait [#allocation11], 512  }
  0x1f   :  { %3770 = vsyncadd [#allocation11], 4294966784  ;;  %v3779_v0 = vmov 0   ;;  %s5005_s14 = sld [smem:[#allocation16_spill]]  ;;  %vm160_vm0 = vcmask 523264   ;;  %v369_v15 = vld [vmem:[#allocation2 + $0x18] sm:$0xff]  ;;  %v175_v18 = vlaneseq }
  0x20   :  { %3405 = vset.pattern.permute.xlu0 %v3779_v0  ;;  %3406 = vset.pattern.permute.xlu2 %v3779_v0  ;;  %s5006_s30 = sld [smem:[#allocation18_spill]]  ;;  %v368_v16 = vld [vmem:[#allocation2 + $0x10] sm:$0xff]  ;;  %v367_v17 = vld [vmem:[#allocation2 + $0x8] sm:$0xff]  ;;  %vm336_vm1 = vcmask 392192   ;;  %v3780_v21 = vmov 0.0   ;;  %vm179_vm6 = vcmask 1041409  }
  0x21   :  { %3407 = vset.pattern.permute.xlu1 %v3779_v0  ;;  %s5007_s21 = sld [smem:[#allocation19_spill]]  ;;  %389 = vmatpush.msra.mxu3 %v369_v15  ;;  %v3957_v19 = vand.u32 127, %v175_v18  ;;  %vm182_vm7 = vcmask 58368   ;;  %v366_v33 = vld [vmem:[#allocation2] sm:$0xff]  ;;  %v3977_v34 = vld [vmem:[#allocation4 + $0x18] sm:$0xff]  ;;  %v3983_v36 = vld [vmem:[#allocation4 + $0x10] sm:$0xff] }
  0x22   :  { %v283_v35 = vld [vmem:[%s4983_s6 + $0x38] sm:$0xff]  ;;  %v282_v37 = vld [vmem:[%s4983_s6 + $0x30] sm:$0xff]  ;;  %v3989_v38 = vld [vmem:[#allocation4 + $0x8] sm:$0xff]  ;;  %vm370_vm8 = vcmask 261120   ;;  %s3782_s15 = smov 32  }
  0x23   :  { %390 = vmatpush.msra.mxu3 %v368_v16  ;;  %302 = vmatpush.msra.mxu1 %v283_v35  ;;  %v281_v39 = vld [vmem:[%s4983_s6 + $0x28] sm:$0xff]  ;;  %v3994_v40 = vld [vmem:[#allocation4] sm:$0xff]  ;;  %v279_v42 = vld [vmem:[%s4983_s6 + $0x18] sm:$0xff] }
  0x24   :  { %v280_v41 = vld [vmem:[%s4983_s6 + $0x20] sm:$0xff]  ;;  %v278_v43 = vld [vmem:[%s4983_s6 + $0x10] sm:$0xff]  ;;  %v277_v44 = vld [vmem:[%s4983_s6 + $0x8] sm:$0xff] }
  0x25   :  { %v314_v1 = vld [vmem:[%s5005_s14] sm:$0xff]  ;;  %v315_v11 = vld [vmem:[%s5005_s14 + $0x8] sm:$0x3f]  ;;  %391 = vmatpush.msra.mxu3 %v367_v17  ;;  %303 = vmatpush.msra.mxu1 %v282_v37  ;;  %v4018_v50 = vld [vmem:[#allocation6 + $0x18] sm:$0xff] }
  0x26   :  { %v3925_v2 = vld [vmem:[%s5006_s30] sm:$0xff]  ;;  %319 = vperm.xlu0 %3405, %v314_v1   ;;  %v3937_v6 = vld [vmem:[%s5006_s30 + $0x8] sm:$0xff]  ;;  %v4021_v56 = vld [vmem:[#allocation6 + $0x10] sm:$0xff] }
  0x27   :  { %v158_v3 = vand.u32 2147483647, %v3925_v2  ;;  %v335_v4 = vld [vmem:[%s5007_s21 + $0x28] sm:$0xff]  ;;  %v334_v5 = vld [vmem:[%s5007_s21 + $0x20] sm:$0xff]  ;;  %v333_v8 = vld [vmem:[%s5007_s21 + $0x18] sm:$0xff]  ;;  %392 = vmatpush.msra.mxu3 %v366_v33  ;;  %304 = vmatpush.msra.mxu1 %v281_v39  ;;  %v186_v46 = vsel %vm160_vm0, %v3925_v2, 0.0 }
  0x28   :  { %353 = vmatpush.msra.mxu2 %v335_v4  ;;  %v159_v9 = vand.u32 2147483647, %v3937_v6  ;;  %v332_v10 = vld [vmem:[%s5007_s21 + $0x10] sm:$0xff]  ;;  %v331_v12 = vld [vmem:[%s5007_s21 + $0x8] sm:$0xff]  ;;  %v330_v14 = vld [vmem:[%s5007_s21] sm:$0xff]  ;;  %v193_v47 = vsel %vm160_vm0, %v3937_v6, 0.0 }
  0x29   :  { %v161_v7 = vsel %vm160_vm0, %v158_v3, 0.0  ;;  %423 = vmatpush.msrb.mxu3 %v3977_v34  ;;  %305 = vmatpush.msra.mxu1 %v280_v41  ;;  %v276_v45 = vld [vmem:[%s4983_s6] sm:$0xff]  ;;  %v187_v48 = vrot.slane %v186_v46, 4  ;;  %v194_v49 = vrot.slane %v193_v47, 4  ;;  %v4024_v57 = vld [vmem:[#allocation6 + $0x8] sm:$0xff] }
  0x2a   :  { %162 = vadd.xlane.f32.xlu1 %v161_v7  ;;  %354 = vmatpush.msra.mxu2 %v334_v5  ;;  %v164_v13 = vsel %vm160_vm0, %v159_v9, 0.0  ;;  %v4027_v60 = vld [vmem:[#allocation6] sm:$0xff] }
  0x2b   :  { %424 = vmatpush.msrb.mxu3 %v3983_v36  ;;  %306 = vmatpush.msra.mxu1 %v279_v42  ;;  %v188_v51 = vadd.f32 %v187_v48, %v186_v46  ;;  %v195_v54 = vadd.f32 %v194_v49, %v193_v47  ;;  %v3408_v39 = vld [vmem:[%s4986_s9] ss:$0 sm:$0xff]  ;;  %s3781_s9 = smov 64  }
  0x2c   :  { %355 = vmatpush.msra.mxu2 %v333_v8 }
  0x2d   :  { %425 = vmatpush.msrb.mxu3 %v3989_v38  ;;  %307 = vmatpush.msra.mxu1 %v278_v43  ;;  %v189_v58 = vrot.slane %v188_v51, 2  ;;  %v196_v59 = vrot.slane %v195_v54, 2 }
  0x2e   :  { %356 = vmatpush.msra.mxu2 %v332_v10  ;;  %322 = vperm.xlu0 %3405, %v315_v11  }
  0x2f   :  { %426 = vmatpush.msrb.mxu3 %v3994_v40  ;;  %308 = vmatpush.msra.mxu1 %v277_v44  ;;  %v190_v62 = vadd.f32 %v189_v58, %v188_v51  ;;  %v197_v1 = vadd.f32 %v196_v59, %v195_v54 }
  0x30   :  { %357 = vmatpush.msra.mxu2 %v331_v12 }
  0x31   :  { %309 = vmatpush.msra.mxu1 %v276_v45  ;;  %v191_v7 = vrot.slane %v190_v62, 1  ;;  %v198_v9 = vrot.slane %v197_v1, 1 }
  0x32   :  { %165 = vadd.xlane.f32.xlu1 %v164_v13  ;;  %358 = vmatpush.msra.mxu2 %v330_v14 }
  0x33   :  { %660 = vmatpush.msrb.mxu1 %v3937_v6  ;;  %v199_v17 = vadd.f32 %v198_v9, %v197_v1 }
  0x98   :  { %v320_v20 = vpop.permute.xlu0 %319 }
  0x99   :  { %vm324_vm2 = vcmp.eq.s32.totalorder %v3957_v19, %v320_v20 }
  0x9a   :  { %v3312_v22 = vsel %vm324_vm2, 1.0, %v3780_v21 }
  0x9b   :  { %3314 = vmatmul.msk.f32.vlgmr.msra.gmra.mxu2 %vm336_vm1, %v3312_v22 }
  0x9d   :  { %v163_v23 = vpop.xlane.xlu1 %162 }
  0x9e   :  { %vm167_vm3 = vcmp.ne.f32.partialorder %v163_v23, 0.0 }
  0x9f   :  { %v3966_v26 = vsel %vm167_vm3, 1.0, %v3780_v21  ;;  %vm400_vm3 = vcmp.ge.s32.totalorder %v3957_v19, 64 }
  0xa0   :  { %v323_v24 = vpop.permute.xlu0 %322  ;;  %v177_v29 = vperm.slane %v3966_v26, %v3957_v19 }
  0xa1   :  { %vm325_vm4 = vcmp.eq.s32.totalorder %v3957_v19, %v323_v24  ;;  %v192_v24 = vadd.f32 %v191_v7, %v190_v62 }
  0xa2   :  { %v3313_v25 = vsel %vm325_vm4, 1.0, %v3780_v21  ;;  %vm401_vm4 = vcmp.lt.s32.totalorder %v3957_v19, 96 }
  0xa3   :  { %3315 = vmatmul.msk.f32.gmra.mxu2 %vm336_vm1, %v3313_v25 }
  0xa5   :  { %v166_v27 = vpop.xlane.xlu1 %165 }
  0xa6   :  { %vm168_vm5 = vcmp.ne.f32.partialorder %v166_v27, 0.0 }
  0xa7   :  { %v3969_v28 = vsel %vm168_vm5, 1.0, %v3780_v21 }
  0xa8   :  { %v178_v30 = vperm.slane %v3969_v28, %v3957_v19 }
  0xaa   :  { %v180_v31 = vsel %vm179_vm6, %v178_v30, %v177_v29 }
  0xab   :  { %v183_v32 = vsel %vm182_vm7, %v180_v31, 0.0 }
  0xac   :  { %184 = vadd.xlane.f32.xlu2 %v183_v32 }
 0x11e   :  { %v360_v52 = vpop.f32.mrf.mxu2 }
 0x11f   :  { %v185_v53 = vpop.xlane.xlu2 %184  ;;  %3316 = vmatmul.msk.f32.vlgmr.msra.gmra.mxu3 %vm370_vm8, %v360_v52 }
 0x120   :  { %v201_v55 = vrot.slane %v185_v53, 1  ;;  %3412 = vrcp.f32 %v185_v53  ;;  %448 = vmatpush.msra.mxu3 %v4018_v50  ;;  %vm209_vm10 = vweird.f32 %v185_v53  ;;  %v215_v11 = vand.u32 2147483648, %v185_v53 }
 0x121   :  { %v213_v12 = vand.u32 2147483647, %v185_v53 }
 0x122   :  { %3414 = vrcp.f32 %v201_v55  ;;  %449 = vmatpush.msra.mxu3 %v4021_v56  ;;  %v230_v13 = vand.u32 2147483648, %v201_v55  ;;  %v228_v16 = vand.u32 2147483647, %v201_v55  ;;  %vm224_vm13 = vweird.f32 %v201_v55 }
 0x123   :  { %v216_v22 = vor.u32 1.1754944e-38, %v215_v11  ;;  %vm214_vm15 = vcmp.eq.f32.partialorder %v213_v12, 8.507059e+37 }
 0x124   :  { %450 = vmatpush.msra.mxu3 %v4024_v57  ;;  %v231_v23 = vor.u32 1.1754944e-38, %v230_v13  ;;  %vm229_vm2 = vcmp.eq.f32.partialorder %v228_v16, 8.507059e+37 }
 0x126   :  { %v3413_v61 = vpop.eup %3412  ;;  %v363_v0 = vpop.f32.mrf.mxu2  ;;  %451 = vmatpush.msra.mxu3 %v4027_v60 }
 0x127   :  { %v205_v63 = vmul.f32 %v3413_v61, %v185_v53  ;;  %3317 = vmatmul.msk.f32.gmra.mxu3 %vm370_vm8, %v363_v0  ;;  %vm210_vm9 = vweird.f32 %v3413_v61 }
 0x128   :  { %v3415_v3 = vpop.eup %3414  ;;  %vm211_vm12 = vmor %vm209_vm10, %vm210_vm9 }
 0x129   :  { %v206_v4 = vsub.f32 1.0, %v205_v63  ;;  %v220_v5 = vmul.f32 %v3415_v3, %v201_v55  ;;  %vm225_vm11 = vweird.f32 %v3415_v3  ;;  %vm4057_vm9 = vmand %vm400_vm3, %vm401_vm4 }
 0x12a   :  { %vm226_vm14 = vmor %vm224_vm13, %vm225_vm11  ;;  %vm539_vm13 = vcmask 130048  }
 0x12b   :  { %v207_v8 = vmul.f32 %v3413_v61, %v206_v4  ;;  %v221_v10 = vsub.f32 1.0, %v220_v5 }
 0x12d   :  { %v208_v14 = vadd.f32 %v3413_v61, %v207_v8  ;;  %v222_v15 = vmul.f32 %v3415_v3, %v221_v10 }
 0x12f   :  { %v212_v18 = vsel %vm211_vm12, %v3413_v61, %v208_v14  ;;  %v223_v20 = vadd.f32 %v3415_v3, %v222_v15  ;;  %427 = vmatmul.f32.vlgmr.msrb.gmra.mxu3 %v3780_v21 }
 0x130   :  { %v217_v27 = vsel %vm214_vm15, %v216_v22, %v212_v18  ;;  %v241_v22 = vld [vmem:[%s4988_s11 + $0x38] sm:$0xff] }
 0x131   :  { %v227_v25 = vsel %vm226_vm14, %v3415_v3, %v223_v20  ;;  %v218_v31 = vmul.f32 %v217_v27, %v192_v24  ;;  %v4072_v20 = vld [vmem:[%s4987_s10 + $0x18] sm:$0xff]  ;;  %256 = vmatpush.msra.mxu0 %v241_v22  ;;  %v240_v24 = vld [vmem:[%s4988_s11 + $0x30] sm:$0xff]  ;;  %v4092_v27 = vld [vmem:[%s4987_s10 + $0x8] sm:$0xff]  ;;  %vm615_vm14 = vcmask 64512  }
 0x132   :  { %v232_v29 = vsel %vm229_vm2, %v231_v23, %v227_v25  ;;  %v4080_v23 = vld [vmem:[%s4987_s10 + $0x10] sm:$0xff]  ;;  %516 = vmatpush.msrb.mxu2 %v4072_v20  ;;  %v239_v25 = vld [vmem:[%s4988_s11 + $0x28] sm:$0xff] }
 0x133   :  { %v233_v30 = vmul.f32 %v232_v29, %v199_v17  ;;  %257 = vmatpush.msra.mxu0 %v240_v24  ;;  %v238_v29 = vld [vmem:[%s4988_s11 + $0x20] sm:$0xff] }
 0x134   :  { %517 = vmatpush.msrb.mxu2 %v4080_v23 }
 0x135   :  { %v290_v32 = vrot.slane %v233_v30, 7  ;;  %v4101_v30 = vld [vmem:[%s4987_s10] sm:$0xff]  ;;  %258 = vmatpush.msra.mxu0 %v239_v25 }
 0x136   :  { %518 = vmatpush.msrb.mxu2 %v4092_v27 }
 0x137   :  { %v291_v33 = vsel %vm179_vm6, %v290_v32, %v218_v31  ;;  %452 = vmatmul.f32.vlgmr.msra.gmra.mxu3 %v3780_v21  ;;  %v237_v31 = vld [vmem:[%s4988_s11 + $0x18] sm:$0xff]  ;;  %259 = vmatpush.msra.mxu0 %v238_v29  ;;  %v236_v32 = vld [vmem:[%s4988_s11 + $0x10] sm:$0xff] }
 0x138   :  { %3311 = vmatmul.msk.f32.vlgmr.msra.gmra.mxu1 %vm160_vm0, %v291_v33  ;;  %519 = vmatpush.msrb.mxu2 %v4101_v30  ;;  %v235_v33 = vld [vmem:[%s4988_s11 + $0x8] sm:$0xff] }
 0x139   :  { %813 = vmatpush.msra.mxu1 %v3977_v34  ;;  %260 = vmatpush.msra.mxu0 %v237_v31 }
 0x13b   :  { %814 = vmatpush.msra.mxu1 %v3983_v36  ;;  %261 = vmatpush.msra.mxu0 %v236_v32 }
 0x13d   :  { %815 = vmatpush.msra.mxu1 %v3989_v38  ;;  %262 = vmatpush.msra.mxu0 %v235_v33 }
 0x13f   :  { %816 = vmatpush.msra.mxu1 %v3994_v40 }
 0x1a2   :  { %v394_v35 = vpop.f32.mrf.mxu3 }
 0x1a3   :  { %v789_v44 = vrot.slane %v394_v35, 2  ;;  %v1173_v45 = vrot.slane %v394_v35, 4  ;;  %v1557_v46 = vrot.slane %v394_v35, 6 }
 0x1aa   :  { %v397_v37 = vpop.f32.mrf.mxu3 }
 0x1ab   :  { %v2324_v47 = vrot.slane %v397_v37, 2  ;;  %v2708_v34 = vrot.slane %v397_v37, 4 }
 0x1b2   :  { %v428_v41 = vpop.f32.mrf.mxu3 }
 0x1b5   :  { %v311_v42 = vpop.f32.mrf.mxu1 }
 0x1b6   :  { %v312_v43 = vadd.f32 %v3408_v39, %v311_v42  ;;  %v234_v39 = vld [vmem:[%s4988_s11] sm:$0xff]  ;;  %v4120_v42 = vld [vmem:[#allocation7 + $0x10] sm:$0xff] }
 0x1b7   :  { %263 = vmatpush.msra.mxu0 %v234_v39 }
 0x1b8   :  { %v403_v48 = vadd.f32 %v394_v35, %v312_v43  ;;  %v4043_v36 = vadd.f32 %v789_v44, %v312_v43  ;;  %v4045_v38 = vadd.f32 %v1173_v45, %v312_v43  ;;  %v4047_v40 = vadd.f32 %v1557_v46, %v312_v43  ;;  %3309 = vmatmul.msk.f32.vlgmr.msra.gmra.mxu0 %vm160_vm0, %v3925_v2  ;;  %v4129_v44 = vld [vmem:[#allocation7] sm:$0xff] }
 0x1b9   :  { %v4049_v49 = vadd.f32 %v397_v37, %v312_v43  ;;  %v4051_v51 = vadd.f32 %v2324_v47, %v312_v43  ;;  %v4053_v52 = vadd.f32 %v2708_v34, %v312_v43  ;;  %v4125_v43 = vld [vmem:[#allocation7 + $0x8] sm:$0xff]  ;;  %633 = vmatpush.msrb.mxu0 %v3925_v2 }
 0x1ba   :  { %v431_v53 = vadd.f32 %v428_v41, %v403_v48  ;;  %v453_v54 = vpop.f32.mrf.mxu3  ;;  %v4118_v41 = vld [vmem:[#allocation7 + $0x18] sm:$0xff] }
 0x1bb   :  { %716 = vmatpush.msra.mxu2 %v4118_v41 }
 0x1bc   :  { %v456_v55 = vadd.f32 %v453_v54, %v431_v53 }
 0x1bd   :  { %717 = vmatpush.msra.mxu2 %v4120_v42 }
 0x1be   :  { %v3318_v58 = vmul.f32 -1.442695, %v456_v55 }
 0x1bf   :  { %718 = vmatpush.msra.mxu2 %v4125_v43 }
 0x1c0   :  { %3416 = vpow2.f32 %v3318_v58  ;;  %3310 = vmatmul.msk.f32.gmra.mxu0 %vm160_vm0, %v3937_v6 }
 0x1c1   :  { %719 = vmatpush.msra.mxu2 %v4129_v44 }
 0x1c6   :  { %v3417_v59 = vpop.eup %3416 }
 0x1c7   :  { %v461_v61 = vadd.f32 1.0, %v3417_v59  ;;  %v4151_v59 = vld [vmem:[%s4989_s12] ss:$0 sm:$0xff] }
 0x1c9   :  { %3418 = vrcp.f32 %v461_v61  ;;  %v473_v1 = vand.u32 2147483648, %v461_v61  ;;  %v471_v4 = vand.u32 2147483647, %v461_v61  ;;  %vm467_vm10 = vweird.f32 %v461_v61 }
 0x1ca   :  { %3420 = vtanh.f32 %v456_v55 }
 0x1cb   :  { %v474_v8 = vor.u32 1.1754944e-38, %v473_v1  ;;  %vm472_vm12 = vcmp.eq.f32.partialorder %v471_v4, 8.507059e+37 }
 0x1cf   :  { %v3419_v62 = vpop.eup %3418 }
 0x1d0   :  { %v463_v63 = vmul.f32 %v3419_v62, %v461_v61  ;;  %vm468_vm5 = vweird.f32 %v3419_v62  ;;  %v3421_v10 = vpop.eup %3420 }
 0x1d1   :  { %vm469_vm11 = vmor %vm467_vm10, %vm468_vm5 }
 0x1d2   :  { %v464_v0 = vsub.f32 1.0, %v463_v63 }
 0x1d4   :  { %v465_v3 = vmul.f32 %v3419_v62, %v464_v0 }
 0x1d6   :  { %v466_v7 = vadd.f32 %v3419_v62, %v465_v3 }
 0x1d8   :  { %v470_v9 = vsel %vm469_vm11, %v3419_v62, %v466_v7 }
 0x1d9   :  { %v475_v11 = vsel %vm472_vm12, %v474_v8, %v470_v9 }
 0x1da   :  { %v477_v12 = vsel %vm4057_vm9, %v3421_v10, %v475_v11 }
 0x1db   :  { %480 = vrot.lane.b32.xlu2 %v477_v12, %s3781_s9  ;;  %v478_v15 = vmul.f32 0.0, %v477_v12 }
 0x235   :  { %v481_v13 = vpop.permute.xlu2 %480  ;;  %v4142_v46 = vpop.f32.mrf.mxu0 }
 0x236   :  { %v483_v14 = vmul.f32 %v481_v13, %v477_v12 }
 0x238   :  { %485 = vrot.lane.b32.xlu0 %v483_v14, %s3782_s15 }
 0x23d   :  { %v4144_v53 = vpop.f32.mrf.mxu0 }
 0x2aa   :  { %v486_v16 = vpop.permute.xlu0 %485 }
 0x2ab   :  { %v4065_v17 = vadd.f32 %v486_v16, %v478_v15 }
 0x2ad   :  { %3422 = vtanh.f32 %v4065_v17 }
 0x2b3   :  { %v3423_v18 = vpop.eup %3422 }
 0x2b4   :  { %491 = vrot.lane.b32.xlu1 %v3423_v18, %s3781_s9 }
 0x326   :  { %v492_v35 = vpop.permute.xlu1 %491 }
 0x327   :  { %v494_v37 = vmul.f32 %v492_v35, %v477_v12 }
 0x329   :  { %500 = vrot.lane.b32.xlu0 %v494_v37, %s3782_s15 }
 0x39b   :  { %v501_v45 = vpop.permute.xlu0 %500 }
 0x39c   :  { %3319 = vmatmul.msk.f32.vlgmr.msrb.gmra.mxu2 %vm370_vm8, %v501_v45 }
 0x39d   :  { %838 = vmatpush.msrb.mxu2 %v4018_v50 }
 0x39f   :  { %839 = vmatpush.msrb.mxu2 %v4021_v56 }
 0x3a1   :  { %840 = vmatpush.msrb.mxu2 %v4024_v57 }
 0x3a3   :  { %841 = vmatpush.msrb.mxu2 %v4027_v60 }
 0x3a4   :  { %3323 = vmatmul.msk.f32.vlgmr.msra.gmra.mxu2 %vm370_vm8, %v501_v45 }
 0x3ac   :  { %3326 = vmatmul.msk.f32.vlgmr.msrb.gmra.mxu2 %vm370_vm8, %v501_v45 }
 0x41f   :  { %v521_v47 = vpop.f32.mrf.mxu2 }
 0x420   :  { %v525_v34 = vrot.slane %v521_v47, 1  ;;  %v526_v48 = vperm.slane %v521_v47, 0 }
 0x422   :  { %v527_v54 = vperm.slane %v525_v34, 0  ;;  %v530_v55 = vadd.f32 %v526_v48, %v4142_v46 }
 0x424   :  { %3424 = vtanh.f32 %v530_v55  ;;  %v531_v58 = vadd.f32 %v527_v54, %v4144_v53 }
 0x426   :  { %3426 = vtanh.f32 %v531_v58 }
 0x42a   :  { %v3425_v61 = vpop.eup %3424 }
 0x42b   :  { %v537_v62 = vmul.f32 %v3425_v61, %v4151_v59 }
 0x42c   :  { %v3427_v63 = vpop.eup %3426 }
 0x42d   :  { %v540_v0 = vsel %vm539_vm13, %v537_v62, 0.0  ;;  %v538_v1 = vmul.f32 %v3427_v63, %v4151_v59 }
 0x42e   :  { %541 = vadd.xlane.f32.xlu0 %v540_v0 }
 0x42f   :  { %v543_v3 = vsel %vm539_vm13, %v538_v1, 0.0 }
 0x430   :  { %544 = vadd.xlane.f32.xlu2 %v543_v3 }
 0x4a1   :  { %v542_v4 = vpop.xlane.xlu0 %541 }
 0x4a2   :  { %v546_v7 = vmul.f32 %v3966_v26, %v542_v4 }
 0x4a3   :  { %v545_v8 = vpop.xlane.xlu2 %544 }
 0x4a4   :  { %v547_v9 = vmul.f32 %v3969_v28, %v545_v8  ;;  %v550_v10 = vperm.slane %v546_v7, %v3957_v19 }
 0x4a6   :  { %v551_v11 = vperm.slane %v547_v9, %v3957_v19 }
 0x4a8   :  { %v552_v12 = vsel %vm179_vm6, %v551_v11, %v550_v10  ;;  %v4176_v11 = vld [vmem:[%s4990_s13 + $0x38] sm:$0xff] }
 0x4a9   :  { %v554_v13 = vsel %vm182_vm7, %v552_v12, -inf  ;;  %v4181_v12 = vld [vmem:[%s4990_s13 + $0x30] sm:$0xff]  ;;  %687 = vmatpush.msrb.mxu3 %v4176_v11  ;;  %1072 = vmatpush.msra.mxu2 %v4176_v11 }
 0x4aa   :  { %555 = vmax.xlane.f32.xlu1 %v554_v13  ;;  %v4188_v13 = vld [vmem:[%s4990_s13 + $0x28] sm:$0xff] }
 0x4ab   :  { %688 = vmatpush.msrb.mxu3 %v4181_v12  ;;  %1073 = vmatpush.msra.mxu2 %v4181_v12 }
 0x4ad   :  { %689 = vmatpush.msrb.mxu3 %v4188_v13  ;;  %1074 = vmatpush.msra.mxu2 %v4188_v13 }
 0x51d   :  { %v556_v14 = vpop.xlane.xlu1 %555 }
 0x51e   :  { %v558_v15 = vperm.slane %v556_v14, 0  ;;  %v559_v16 = vperm.slane %v556_v14, 1 }
 0x520   :  { %v562_v18 = vsub.f32 %v546_v7, %v558_v15  ;;  %v563_v22 = vsub.f32 %v547_v9, %v559_v16 }
 0x522   :  { %v564_v24 = vmul.f32 1.442695, %v562_v18  ;;  %v566_v25 = vmul.f32 1.442695, %v563_v22  ;;  %v4202_v22 = vld [vmem:[%s4990_s13 + $0x20] sm:$0xff] }
 0x523   :  { %690 = vmatpush.msrb.mxu3 %v4202_v22  ;;  %1075 = vmatpush.msra.mxu2 %v4202_v22 }
 0x524   :  { %3428 = vpow2.f32 %v564_v24  ;;  %v4208_v24 = vld [vmem:[%s4990_s13 + $0x18] sm:$0xff] }
 0x525   :  { %3430 = vpow2.f32 %v566_v25  ;;  %691 = vmatpush.msrb.mxu3 %v4208_v24  ;;  %1076 = vmatpush.msra.mxu2 %v4208_v24  ;;  %v4221_v25 = vld [vmem:[%s4990_s13 + $0x8] sm:$0xff] }
 0x52a   :  { %v3429_v29 = vpop.eup %3428 }
 0x52b   :  { %v3431_v31 = vpop.eup %3430  ;;  %588 = vperm.xlu2 %3406, %v3429_v29   ;;  %v568_v32 = vmul.f32 %v3429_v29, %v3966_v26  ;;  %v4230_v29 = vld [vmem:[%s4990_s13] sm:$0xff] }
 0x52c   :  { %591 = vperm.xlu0 %3405, %v3431_v31   ;;  %v569_v33 = vmul.f32 %v3431_v31, %v3969_v28  ;;  %v4234_v31 = vld [vmem:[#allocation9 + $0x18] sm:$0xff] }
 0x52d   :  { %573 = vperm.xlu1 %3407, %v568_v32   ;;  %741 = vmatpush.msra.mxu0 %v4234_v31 }
 0x534   :  { %576 = vperm.xlu0 %3405, %v569_v33  }
 0x585   :  { %v589_v35 = vpop.permute.xlu2 %588 }
 0x586   :  { %v593_v39 = vperm.slane %v589_v35, %v3957_v19  ;;  %v4244_v35 = vld [vmem:[#allocation9] sm:$0xff] }
 0x59e   :  { %v592_v37 = vpop.permute.xlu0 %591 }
 0x59f   :  { %v594_v45 = vperm.slane %v592_v37, %v3957_v19  ;;  %v574_v48 = vpop.permute.xlu1 %573 }
 0x5a0   :  { %v578_v55 = vperm.slane %v574_v48, %v3957_v19 }
 0x5a1   :  { %v595_v47 = vsel %vm179_vm6, %v594_v45, %v593_v39 }
 0x5a2   :  { %v597_v34 = vsel %vm182_vm7, %v595_v47, 0.0 }
 0x5a3   :  { %598 = vadd.xlane.f32.xlu2 %v597_v34  ;;  %v4262_v34 = vld [vmem:[%s4993_s16] ss:$0 sm:$0xff] }
 0x5a6   :  { %v577_v54 = vpop.permute.xlu0 %576 }
 0x5a7   :  { %v579_v58 = vperm.slane %v577_v54, %v3957_v19 }
 0x5a9   :  { %v580_v61 = vsel %vm179_vm6, %v579_v58, %v578_v55  ;;  %v721_v55 = vpop.f32.mrf.mxu2 }
 0x5aa   :  { %v582_v62 = vsel %vm182_vm7, %v580_v61, 0.0 }
 0x5ab   :  { %583 = vadd.xlane.f32.xlu0 %v582_v62 }
 0x616   :  { %v599_v63 = vpop.xlane.xlu2 %598 }
 0x617   :  { %v600_v0 = vmul.f32 1e-13, %v599_v63 }
 0x61e   :  { %v584_v1 = vpop.xlane.xlu0 %583 }
 0x61f   :  { %v601_v3 = vadd.f32 %v600_v0, %v584_v1 }
 0x621   :  { %3432 = vrcp.f32 %v601_v3 }
 0x627   :  { %v3433_v4 = vpop.eup %3432 }
 0x628   :  { %v605_v7 = vperm.slane %v3433_v4, 1  ;;  %v604_v9 = vperm.slane %v3433_v4, 0 }
 0x62a   :  { %v609_v8 = vmul.f32 %v605_v7, %v569_v33  ;;  %v608_v10 = vmul.f32 %v604_v9, %v568_v32  ;;  %v4236_v32 = vld [vmem:[#allocation9 + $0x10] sm:$0xff]  ;;  %v4241_v33 = vld [vmem:[#allocation9 + $0x8] sm:$0xff] }
 0x62b   :  { %742 = vmatpush.msra.mxu0 %v4236_v32 }
 0x62c   :  { %640 = vperm.xlu1 %3407, %v609_v8  }
 0x62d   :  { %743 = vmatpush.msra.mxu0 %v4241_v33 }
 0x62f   :  { %744 = vmatpush.msra.mxu0 %v4244_v35 }
 0x634   :  { %612 = vperm.xlu1 %3407, %v608_v10  }
 0x69e   :  { %v641_v14 = vpop.permute.xlu1 %640 }
 0x69f   :  { %v642_v15 = vperm.slane %v641_v14, %v3957_v19 }
 0x6a1   :  { %3321 = vmatmul.msk.f32.vlgmr.msrb.gmra.mxu1 %vm615_vm14, %v642_v15 }
 0x6a2   :  { %1018 = vmatpush.msrb.mxu1 %v3925_v2  ;;  %v4214_v2 = vld [vmem:[%s4990_s13 + $0x10] sm:$0xff] }
 0x6a3   :  { %692 = vmatpush.msrb.mxu3 %v4214_v2  ;;  %1077 = vmatpush.msra.mxu2 %v4214_v2 }
 0x6a5   :  { %693 = vmatpush.msrb.mxu3 %v4221_v25  ;;  %1078 = vmatpush.msra.mxu2 %v4221_v25 }
 0x6a6   :  { %v613_v16 = vpop.permute.xlu1 %612 }
 0x6a7   :  { %v614_v18 = vperm.slane %v613_v16, %v3957_v19  ;;  %694 = vmatpush.msrb.mxu3 %v4230_v29  ;;  %1079 = vmatpush.msra.mxu2 %v4230_v29 }
 0x6a9   :  { %3320 = vmatmul.msk.f32.vlgmr.msrb.gmra.mxu0 %vm615_vm14, %v614_v18  ;;  %1045 = vmatpush.msra.mxu3 %v3937_v6 }
 0x6aa   :  { %1429 = vmatpush.msrb.mxu2 %v3937_v6  ;;  %906 = vmatpush.msrb.mxu0 %v4072_v20 }
 0x6ac   :  { %907 = vmatpush.msrb.mxu0 %v4080_v23 }
 0x6ae   :  { %908 = vmatpush.msrb.mxu0 %v4092_v27 }
 0x6b0   :  { %909 = vmatpush.msrb.mxu0 %v4101_v30 }
 0x6b1   :  { %745 = vmatmul.f32.vlgmr.msra.gmra.mxu0 %v3780_v21 }
 0x6b2   :  { %1101 = vmatpush.msra.mxu0 %v4118_v41 }
 0x6b4   :  { %1102 = vmatpush.msra.mxu0 %v4120_v42 }
 0x6b6   :  { %1103 = vmatpush.msra.mxu0 %v4125_v43 }
 0x6b8   :  { %1104 = vmatpush.msra.mxu0 %v4129_v44 }
 0x71e   :  { %v662_v37 = vpop.f32.mrf.mxu1 }
 0x71f   :  { %v675_v39 = vrot.slane %v662_v37, 7 }
 0x726   :  { %v635_v45 = vpop.f32.mrf.mxu0 }
 0x727   :  { %v676_v47 = vsel %vm179_vm6, %v675_v39, %v635_v45 }
 0x728   :  { %3322 = vmatmul.msk.f32.vlgmr.msrb.gmra.mxu3 %vm160_vm0, %v676_v47 }
 0x72e   :  { %v746_v58 = vpop.f32.mrf.mxu0 }
 0x7ab   :  { %v696_v48 = vpop.f32.mrf.mxu3 }
 0x7ac   :  { %v699_v54 = vadd.f32 %v4262_v34, %v696_v48 }
 0x7ae   :  { %v724_v61 = vadd.f32 %v721_v55, %v699_v54 }
 0x7b0   :  { %v749_v62 = vadd.f32 %v746_v58, %v724_v61 }
 0x7b2   :  { %v3324_v63 = vmul.f32 -1.442695, %v749_v62 }
 0x7b4   :  { %3434 = vpow2.f32 %v3324_v63 }
 0x7ba   :  { %v3435_v0 = vpop.eup %3434 }
 0x7bb   :  { %v754_v1 = vadd.f32 1.0, %v3435_v0 }
 0x7bd   :  { %3436 = vrcp.f32 %v754_v1  ;;  %v766_v8 = vand.u32 2147483648, %v754_v1  ;;  %v764_v10 = vand.u32 2147483647, %v754_v1  ;;  %vm760_vm2 = vweird.f32 %v754_v1 }
 0x7be   :  { %3438 = vtanh.f32 %v749_v62 }
 0x7bf   :  { %v767_v15 = vor.u32 1.1754944e-38, %v766_v8  ;;  %vm765_vm4 = vcmp.eq.f32.partialorder %v764_v10, 8.507059e+37 }
 0x7c3   :  { %v3437_v3 = vpop.eup %3436 }
 0x7c4   :  { %v756_v4 = vmul.f32 %v3437_v3, %v754_v1  ;;  %vm761_vm15 = vweird.f32 %v3437_v3  ;;  %v3439_v18 = vpop.eup %3438 }
 0x7c5   :  { %vm762_vm3 = vmor %vm760_vm2, %vm761_vm15 }
 0x7c6   :  { %v757_v7 = vsub.f32 1.0, %v756_v4 }
 0x7c8   :  { %v758_v9 = vmul.f32 %v3437_v3, %v757_v7 }
 0x7ca   :  { %v759_v14 = vadd.f32 %v3437_v3, %v758_v9 }
 0x7cc   :  { %v763_v16 = vsel %vm762_vm3, %v3437_v3, %v759_v14  ;;  %v843_v3 = vpop.f32.mrf.mxu2 }
 0x7cd   :  { %v768_v37 = vsel %vm765_vm4, %v767_v15, %v763_v16 }
 0x7ce   :  { %v770_v39 = vsel %vm4057_vm9, %v3439_v18, %v768_v37 }
 0x7cf   :  { %773 = vrot.lane.b32.xlu1 %v770_v39, %s3781_s9  ;;  %v771_v48 = vmul.f32 0.0, %v770_v39 }
 0x841   :  { %v774_v45 = vpop.permute.xlu1 %773 }
 0x842   :  { %v776_v47 = vmul.f32 %v774_v45, %v770_v39 }
 0x844   :  { %778 = vrot.lane.b32.xlu1 %v776_v47, %s3782_s15 }
 0x8b6   :  { %v779_v54 = vpop.permute.xlu1 %778 }
 0x8b7   :  { %v4269_v55 = vadd.f32 %v779_v54, %v771_v48 }
 0x8b9   :  { %3440 = vtanh.f32 %v4269_v55 }
 0x8bf   :  { %v3441_v58 = vpop.eup %3440 }
 0x8c0   :  { %784 = vrot.lane.b32.xlu2 %v3441_v58, %s3781_s9 }
 0x91a   :  { %v785_v61 = vpop.permute.xlu2 %784 }
 0x91b   :  { %v4273_v62 = vmul.f32 %v785_v61, %v770_v39 }
 0x91d   :  { %797 = vrot.lane.b32.xlu1 %v4273_v62, %s3782_s15 }
 0x98f   :  { %v4277_v63 = vpop.permute.xlu1 %797 }
 0x990   :  { %3325 = vmatmul.msk.f32.vlgmr.msra.gmra.mxu1 %vm370_vm8, %v4277_v63 }
 0x991   :  { %1126 = vmatpush.msra.mxu1 %v4234_v31 }
 0x993   :  { %1127 = vmatpush.msra.mxu1 %v4236_v32 }
 0x995   :  { %1128 = vmatpush.msra.mxu1 %v4241_v33 }
 0x997   :  { %1129 = vmatpush.msra.mxu1 %v4244_v35 }
 0xa0d   :  { %v818_v0 = vpop.f32.mrf.mxu1 }
 0xa0e   :  { %v821_v1 = vadd.f32 %v818_v0, %v4043_v36 }
 0xa10   :  { %v846_v4 = vadd.f32 %v843_v3, %v821_v1 }
 0xa12   :  { %v3327_v7 = vmul.f32 -1.442695, %v846_v4 }
 0xa14   :  { %3442 = vpow2.f32 %v3327_v7 }
 0xa1a   :  { %v3443_v8 = vpop.eup %3442 }
 0xa1b   :  { %v851_v9 = vadd.f32 1.0, %v3443_v8 }
 0xa1d   :  { %3444 = vrcp.f32 %v851_v9  ;;  %v863_v16 = vand.u32 2147483648, %v851_v9  ;;  %v861_v37 = vand.u32 2147483647, %v851_v9  ;;  %vm857_vm10 = vweird.f32 %v851_v9 }
 0xa1e   :  { %3446 = vtanh.f32 %v846_v4 }
 0xa1f   :  { %v864_v45 = vor.u32 1.1754944e-38, %v863_v16  ;;  %vm862_vm12 = vcmp.eq.f32.partialorder %v861_v37, 8.507059e+37 }
 0xa23   :  { %v3445_v10 = vpop.eup %3444 }
 0xa24   :  { %v853_v14 = vmul.f32 %v3445_v10, %v851_v9  ;;  %vm858_vm5 = vweird.f32 %v3445_v10  ;;  %v3447_v47 = vpop.eup %3446 }
 0xa25   :  { %vm859_vm11 = vmor %vm857_vm10, %vm858_vm5 }
 0xa26   :  { %v854_v15 = vsub.f32 1.0, %v853_v14 }
 0xa28   :  { %v855_v18 = vmul.f32 %v3445_v10, %v854_v15 }
 0xa2a   :  { %v856_v39 = vadd.f32 %v3445_v10, %v855_v18 }
 0xa2c   :  { %v860_v36 = vsel %vm859_vm11, %v3445_v10, %v856_v39 }
 0xa2d   :  { %v865_v48 = vsel %vm862_vm12, %v864_v45, %v860_v36 }
 0xa2e   :  { %v867_v54 = vsel %vm4057_vm9, %v3447_v47, %v865_v48 }
 0xa2f   :  { %870 = vrot.lane.b32.xlu0 %v867_v54, %s3781_s9  ;;  %v868_v0 = vmul.f32 %v867_v54, %v4065_v17 }
 0xaa1   :  { %v871_v58 = vpop.permute.xlu0 %870 }
 0xaa2   :  { %v873_v61 = vmul.f32 %v871_v58, %v867_v54 }
 0xaa4   :  { %875 = vrot.lane.b32.xlu1 %v873_v61, %s3782_s15 }
 0xb16   :  { %v876_v1 = vpop.permute.xlu1 %875 }
 0xb17   :  { %v4291_v3 = vadd.f32 %v876_v1, %v868_v0 }
 0xb19   :  { %3448 = vtanh.f32 %v4291_v3 }
 0xb1f   :  { %v3449_v4 = vpop.eup %3448 }
 0xb20   :  { %881 = vrot.lane.b32.xlu1 %v3449_v4, %s3781_s9 }
 0xb92   :  { %v882_v7 = vpop.permute.xlu1 %881 }
 0xb93   :  { %v884_v8 = vmul.f32 %v882_v7, %v867_v54 }
 0xb95   :  { %890 = vrot.lane.b32.xlu2 %v884_v8, %s3782_s15 }
 0xbef   :  { %v891_v9 = vpop.permute.xlu2 %890 }
 0xbf0   :  { %3328 = vmatmul.msk.f32.vlgmr.msrb.gmra.mxu0 %vm370_vm8, %v891_v9 }
 0xbf1   :  { %1222 = vmatpush.msrb.mxu0 %v4018_v50 }
 0xbf3   :  { %1223 = vmatpush.msrb.mxu0 %v4021_v56 }
 0xbf5   :  { %1224 = vmatpush.msrb.mxu0 %v4024_v57 }
 0xbf7   :  { %1225 = vmatpush.msrb.mxu0 %v4027_v60 }
 0xbf8   :  { %3332 = vmatmul.msk.f32.vlgmr.msra.gmra.mxu0 %vm370_vm8, %v891_v9 }
 0xbf9   :  { %1456 = vmatpush.msra.mxu0 %v4176_v11 }
 0xbfb   :  { %1457 = vmatpush.msra.mxu0 %v4181_v12 }
 0xbfd   :  { %1458 = vmatpush.msra.mxu0 %v4188_v13 }
 0xbff   :  { %1459 = vmatpush.msra.mxu0 %v4202_v22 }
 0xc00   :  { %3336 = vmatmul.msk.f32.vlgmr.msrb.gmra.mxu0 %vm370_vm8, %v891_v9 }
 0xc01   :  { %1460 = vmatpush.msra.mxu0 %v4208_v24 }
 0xc03   :  { %1461 = vmatpush.msra.mxu0 %v4214_v2 }
 0xc05   :  { %1462 = vmatpush.msra.mxu0 %v4221_v25 }
 0xc07   :  { %1463 = vmatpush.msra.mxu0 %v4230_v29 }
 0xc09   :  { %1813 = vmatpush.msrb.mxu0 %v3937_v6 }
 0xc6d   :  { %v911_v50 = vpop.f32.mrf.mxu0 }
 0xc6e   :  { %v915_v56 = vrot.slane %v911_v50, 1  ;;  %v916_v57 = vperm.slane %v911_v50, 0 }
 0xc70   :  { %v917_v60 = vperm.slane %v915_v56, 0  ;;  %v920_v17 = vadd.f32 %v916_v57, %v4142_v46 }
 0xc72   :  { %v921_v11 = vadd.f32 %v917_v60, %v4144_v53  ;;  %3450 = vtanh.f32 %v920_v17 }
 0xc74   :  { %3452 = vtanh.f32 %v921_v11 }
 0xc78   :  { %v3451_v12 = vpop.eup %3450 }
 0xc79   :  { %v924_v13 = vmul.f32 %v3451_v12, %v4151_v59 }
 0xc7a   :  { %v3453_v22 = vpop.eup %3452 }
 0xc7b   :  { %v926_v24 = vsel %vm539_vm13, %v924_v13, 0.0  ;;  %v925_v2 = vmul.f32 %v3453_v22, %v4151_v59 }
 0xc7c   :  { %927 = vadd.xlane.f32.xlu0 %v926_v24 }
 0xc7d   :  { %v929_v6 = vsel %vm539_vm13, %v925_v2, 0.0 }
 0xc7e   :  { %930 = vadd.xlane.f32.xlu1 %v929_v6 }
 0xcef   :  { %v928_v25 = vpop.xlane.xlu0 %927 }
 0xcf0   :  { %v932_v29 = vmul.f32 %v3966_v26, %v928_v25 }
 0xcf1   :  { %v931_v10 = vpop.xlane.xlu1 %930 }
 0xcf2   :  { %v933_v14 = vmul.f32 %v3969_v28, %v931_v10  ;;  %v936_v15 = vperm.slane %v932_v29, %v3957_v19 }
 0xcf4   :  { %v937_v16 = vperm.slane %v933_v14, %v3957_v19 }
 0xcf6   :  { %v938_v18 = vsel %vm179_vm6, %v937_v16, %v936_v15 }
 0xcf7   :  { %v940_v37 = vsel %vm182_vm7, %v938_v18, -inf }
 0xcf8   :  { %941 = vmax.xlane.f32.xlu2 %v940_v37 }
 0xd6b   :  { %v942_v39 = vpop.xlane.xlu2 %941 }
 0xd6c   :  { %v944_v45 = vperm.slane %v942_v39, 0  ;;  %v945_v36 = vperm.slane %v942_v39, 1 }
 0xd6e   :  { %v948_v47 = vsub.f32 %v932_v29, %v944_v45  ;;  %v949_v48 = vsub.f32 %v933_v14, %v945_v36 }
 0xd70   :  { %v950_v54 = vmul.f32 1.442695, %v948_v47  ;;  %v952_v58 = vmul.f32 1.442695, %v949_v48  ;;  %v1106_v48 = vpop.f32.mrf.mxu0 }
 0xd72   :  { %3454 = vpow2.f32 %v950_v54 }
 0xd73   :  { %3456 = vpow2.f32 %v952_v58 }
 0xd78   :  { %v3455_v61 = vpop.eup %3454 }
 0xd79   :  { %v3457_v0 = vpop.eup %3456  ;;  %974 = vperm.xlu0 %3405, %v3455_v61   ;;  %v954_v1 = vmul.f32 %v3455_v61, %v3966_v26 }
 0xd7a   :  { %977 = vperm.xlu1 %3407, %v3457_v0   ;;  %v955_v4 = vmul.f32 %v3457_v0, %v3969_v28 }
 0xd7b   :  { %959 = vperm.xlu2 %3406, %v954_v1  }
 0xd81   :  { %962 = vperm.xlu0 %3405, %v955_v4  }
 0xdd5   :  { %v960_v60 = vpop.permute.xlu2 %959 }
 0xdd6   :  { %v964_v11 = vperm.slane %v960_v60, %v3957_v19 }
 0xdeb   :  { %v975_v7 = vpop.permute.xlu0 %974 }
 0xdec   :  { %v978_v8 = vpop.permute.xlu1 %977  ;;  %v979_v9 = vperm.slane %v975_v7, %v3957_v19 }
 0xded   :  { %v980_v50 = vperm.slane %v978_v8, %v3957_v19 }
 0xdef   :  { %v981_v56 = vsel %vm179_vm6, %v980_v50, %v979_v9 }
 0xdf0   :  { %v983_v57 = vsel %vm182_vm7, %v981_v56, 0.0 }
 0xdf1   :  { %984 = vadd.xlane.f32.xlu1 %v983_v57 }
 0xdf3   :  { %v963_v17 = vpop.permute.xlu0 %962 }
 0xdf4   :  { %v965_v12 = vperm.slane %v963_v17, %v3957_v19 }
 0xdf6   :  { %v966_v13 = vsel %vm179_vm6, %v965_v12, %v964_v11 }
 0xdf7   :  { %v968_v22 = vsel %vm182_vm7, %v966_v13, 0.0 }
 0xdf8   :  { %969 = vadd.xlane.f32.xlu0 %v968_v22 }
 0xe64   :  { %v985_v24 = vpop.xlane.xlu1 %984 }
 0xe65   :  { %v986_v2 = vmul.f32 1e-13, %v985_v24 }
 0xe6b   :  { %v970_v6 = vpop.xlane.xlu0 %969 }
 0xe6c   :  { %v987_v25 = vadd.f32 %v986_v2, %v970_v6  ;;  %v4360_v2 = vld [vmem:[#allocation4 + $0x18] sm:$0xff]  ;;  %v4362_v6 = vld [vmem:[#allocation4 + $0x10] sm:$0xff] }
 0xe6d   :  { %1197 = vmatpush.msrb.mxu3 %v4360_v2 }
 0xe6e   :  { %3458 = vrcp.f32 %v987_v25  ;;  %v4366_v25 = vld [vmem:[#allocation4 + $0x8] sm:$0xff] }
 0xe6f   :  { %1198 = vmatpush.msrb.mxu3 %v4362_v6 }
 0xe71   :  { %1199 = vmatpush.msrb.mxu3 %v4366_v25 }
 0xe74   :  { %v3459_v29 = vpop.eup %3458 }
 0xe75   :  { %v991_v10 = vperm.slane %v3459_v29, 1  ;;  %v990_v15 = vperm.slane %v3459_v29, 0  ;;  %v4379_v29 = vld [vmem:[%s5006_s30] sm:$0xff] }
 0xe77   :  { %v995_v14 = vmul.f32 %v991_v10, %v955_v4  ;;  %v994_v16 = vmul.f32 %v990_v15, %v954_v1 }
 0xe79   :  { %1025 = vperm.xlu2 %3406, %v995_v14  }
 0xe81   :  { %998 = vperm.xlu2 %3406, %v994_v16  }
 0xed3   :  { %v1026_v18 = vpop.permute.xlu2 %1025 }
 0xed4   :  { %v1027_v37 = vperm.slane %v1026_v18, %v3957_v19 }
 0xed6   :  { %3330 = vmatmul.msk.f32.vlgmr.msra.gmra.mxu3 %vm615_vm14, %v1027_v37  ;;  %v1227_v37 = vpop.f32.mrf.mxu0 }
 0xedb   :  { %v999_v39 = vpop.permute.xlu2 %998 }
 0xedc   :  { %v1000_v45 = vperm.slane %v999_v39, %v3957_v19 }
 0xede   :  { %3329 = vmatmul.msk.f32.vlgmr.msrb.gmra.mxu1 %vm615_vm14, %v1000_v45 }
 0xedf   :  { %1290 = vmatpush.msrb.mxu1 %v4072_v20 }
 0xee1   :  { %1291 = vmatpush.msrb.mxu1 %v4080_v23 }
 0xee3   :  { %1292 = vmatpush.msrb.mxu1 %v4092_v27 }
 0xee5   :  { %1293 = vmatpush.msrb.mxu1 %v4101_v30 }
 0xee6   :  { %3333 = vmatmul.msk.f32.vlgmr.msra.gmra.mxu1 %vm370_vm8, %v4277_v63 }
 0xee7   :  { %1485 = vmatpush.msra.mxu1 %v4118_v41 }
 0xee9   :  { %1486 = vmatpush.msra.mxu1 %v4120_v42 }
 0xeeb   :  { %1487 = vmatpush.msra.mxu1 %v4125_v43 }
 0xeed   :  { %1488 = vmatpush.msra.mxu1 %v4129_v44 }
 0xf59   :  { %v1047_v36 = vpop.f32.mrf.mxu3 }
 0xf5a   :  { %v1060_v47 = vrot.slane %v1047_v36, 7 }
 0xf5b   :  { %v1020_v20 = vpop.f32.mrf.mxu1 }
 0xf5c   :  { %v1061_v23 = vsel %vm179_vm6, %v1060_v47, %v1020_v20 }
 0xf5d   :  { %3331 = vmatmul.msk.f32.vlgmr.msra.gmra.mxu2 %vm160_vm0, %v1061_v23 }
 0xf5e   :  { %1581 = vmatpush.msra.mxu2 %v4360_v2 }
 0xf60   :  { %1582 = vmatpush.msra.mxu2 %v4362_v6 }
 0xf62   :  { %1583 = vmatpush.msra.mxu2 %v4366_v25 }
 0xf63   :  { %v1131_v54 = vpop.f32.mrf.mxu1 }
 0xfe0   :  { %v1081_v27 = vpop.f32.mrf.mxu2 }
 0xfe1   :  { %v1084_v30 = vadd.f32 %v4262_v34, %v1081_v27 }
 0xfe3   :  { %v1109_v63 = vadd.f32 %v1106_v48, %v1084_v30 }
 0xfe5   :  { %v1134_v41 = vadd.f32 %v1131_v54, %v1109_v63 }
 0xfe7   :  { %v3334_v58 = vmul.f32 -1.442695, %v1134_v41 }
 0xfe9   :  { %3460 = vpow2.f32 %v3334_v58 }
 0xfef   :  { %v3461_v42 = vpop.eup %3460 }
 0xff0   :  { %v1139_v43 = vadd.f32 1.0, %v3461_v42 }
 0xff2   :  { %3462 = vrcp.f32 %v1139_v43  ;;  %v1151_v1 = vand.u32 2147483648, %v1139_v43  ;;  %v1149_v7 = vand.u32 2147483647, %v1139_v43  ;;  %vm1145_vm2 = vweird.f32 %v1139_v43 }
 0xff3   :  { %3464 = vtanh.f32 %v1134_v41 }
 0xff4   :  { %v1152_v9 = vor.u32 1.1754944e-38, %v1151_v1  ;;  %vm1150_vm4 = vcmp.eq.f32.partialorder %v1149_v7, 8.507059e+37 }
 0xff8   :  { %v3463_v44 = vpop.eup %3462 }
 0xff9   :  { %v1141_v61 = vmul.f32 %v3463_v44, %v1139_v43  ;;  %vm1146_vm15 = vweird.f32 %v3463_v44  ;;  %v3465_v56 = vpop.eup %3464 }
 0xffa   :  { %vm1147_vm3 = vmor %vm1145_vm2, %vm1146_vm15 }
 0xffb   :  { %v1142_v0 = vsub.f32 1.0, %v1141_v61 }
 0xffd   :  { %v1143_v4 = vmul.f32 %v3463_v44, %v1142_v0 }
 0xfff   :  { %v1144_v8 = vadd.f32 %v3463_v44, %v1143_v4  ;;  %v4405_v4 = vld [vmem:[#allocation6 + $0x18] sm:$0xff] }
0x1001   :  { %v1148_v50 = vsel %vm1147_vm3, %v3463_v44, %v1144_v8  ;;  %v4408_v8 = vld [vmem:[#allocation6 + $0x10] sm:$0xff] }
0x1002   :  { %v1153_v57 = vsel %vm1150_vm4, %v1152_v9, %v1148_v50  ;;  %v4414_v9 = vld [vmem:[#allocation6] sm:$0xff] }
0x1003   :  { %v1155_v60 = vsel %vm4057_vm9, %v3465_v56, %v1153_v57 }
0x1004   :  { %1158 = vrot.lane.b32.xlu2 %v1155_v60, %s3781_s9  ;;  %v1156_v12 = vmul.f32 %v1155_v60, %v4269_v55  ;;  %v4370_v55 = vld [vmem:[#allocation4] sm:$0xff] }
0x1005   :  { %1200 = vmatpush.msrb.mxu3 %v4370_v55  ;;  %1584 = vmatpush.msra.mxu2 %v4370_v55 }
0x1007   :  { %1402 = vmatpush.msra.mxu3 %v4379_v29 }
0x105e   :  { %v1159_v17 = vpop.permute.xlu2 %1158 }
0x105f   :  { %v1161_v11 = vmul.f32 %v1159_v17, %v1155_v60 }
0x1061   :  { %1163 = vrot.lane.b32.xlu2 %v1161_v11, %s3782_s15 }
0x10bb   :  { %v1164_v13 = vpop.permute.xlu2 %1163 }
0x10bc   :  { %v4356_v22 = vadd.f32 %v1164_v13, %v1156_v12 }
0x10be   :  { %3466 = vtanh.f32 %v4356_v22 }
0x10c4   :  { %v3467_v24 = vpop.eup %3466 }
0x10c5   :  { %1169 = vrot.lane.b32.xlu2 %v3467_v24, %s3781_s9 }
0x111f   :  { %v1170_v10 = vpop.permute.xlu2 %1169 }
0x1120   :  { %v4382_v14 = vmul.f32 %v1170_v10, %v1155_v60 }
0x1122   :  { %1181 = vrot.lane.b32.xlu1 %v4382_v14, %s3782_s15 }
0x1194   :  { %v4386_v15 = vpop.permute.xlu1 %1181 }
0x1195   :  { %3335 = vmatmul.msk.f32.vlgmr.msrb.gmra.mxu3 %vm370_vm8, %v4386_v15 }
0x1196   :  { %1510 = vmatpush.msrb.mxu3 %v4234_v31 }
0x1198   :  { %1511 = vmatpush.msrb.mxu3 %v4236_v32 }
0x119a   :  { %1512 = vmatpush.msrb.mxu3 %v4241_v33 }
0x119c   :  { %1513 = vmatpush.msrb.mxu3 %v4244_v35 }
0x1218   :  { %v1202_v16 = vpop.f32.mrf.mxu3 }
0x1219   :  { %v1205_v18 = vadd.f32 %v1202_v16, %v4045_v38 }
0x121b   :  { %v1230_v39 = vadd.f32 %v1227_v37, %v1205_v18 }
0x121d   :  { %v3337_v45 = vmul.f32 -1.442695, %v1230_v39 }
0x121f   :  { %3468 = vpow2.f32 %v3337_v45 }
0x1225   :  { %v3469_v36 = vpop.eup %3468 }
0x1226   :  { %v1235_v47 = vadd.f32 1.0, %v3469_v36 }
0x1228   :  { %3470 = vrcp.f32 %v1235_v47  ;;  %v1247_v31 = vand.u32 2147483648, %v1235_v47  ;;  %v1245_v33 = vand.u32 2147483647, %v1235_v47  ;;  %vm1241_vm10 = vweird.f32 %v1235_v47 }
0x1229   :  { %3472 = vtanh.f32 %v1230_v39 }
0x122a   :  { %v1248_v35 = vor.u32 1.1754944e-38, %v1247_v31  ;;  %vm1246_vm12 = vcmp.eq.f32.partialorder %v1245_v33, 8.507059e+37 }
0x122e   :  { %v3471_v20 = vpop.eup %3470 }
0x122f   :  { %v1237_v23 = vmul.f32 %v3471_v20, %v1235_v47  ;;  %vm1242_vm5 = vweird.f32 %v3471_v20  ;;  %v3473_v48 = vpop.eup %3472 }
0x1230   :  { %vm1243_vm11 = vmor %vm1241_vm10, %vm1242_vm5  ;;  %vm3103_vm5 = vcmask 1041408   ;;  %vm3105_vm10 = vcmask 1043456  }
0x1231   :  { %v1238_v27 = vsub.f32 1.0, %v1237_v23 }
0x1233   :  { %v1239_v32 = vmul.f32 %v3471_v20, %v1238_v27 }
0x1235   :  { %v1240_v30 = vadd.f32 %v3471_v20, %v1239_v32 }
0x1237   :  { %v1244_v38 = vsel %vm1243_vm11, %v3471_v20, %v1240_v30 }
0x1238   :  { %v1249_v63 = vsel %vm1246_vm12, %v1248_v35, %v1244_v38 }
0x1239   :  { %v1251_v54 = vsel %vm4057_vm9, %v3473_v48, %v1249_v63 }
0x123a   :  { %1254 = vrot.lane.b32.xlu2 %v1251_v54, %s3781_s9  ;;  %v1252_v42 = vmul.f32 %v1251_v54, %v4291_v3  ;;  %v4411_v3 = vld [vmem:[#allocation6 + $0x8] sm:$0xff] }
0x1294   :  { %v1255_v41 = vpop.permute.xlu2 %1254 }
0x1295   :  { %v1257_v58 = vmul.f32 %v1255_v41, %v1251_v54 }
0x1297   :  { %1259 = vrot.lane.b32.xlu0 %v1257_v58, %s3782_s15 }
0x1309   :  { %v1260_v43 = vpop.permute.xlu0 %1259 }
0x130a   :  { %v4400_v44 = vadd.f32 %v1260_v43, %v1252_v42 }
0x130c   :  { %3474 = vtanh.f32 %v4400_v44 }
0x1312   :  { %v3475_v61 = vpop.eup %3474 }
0x1313   :  { %1265 = vrot.lane.b32.xlu2 %v3475_v61, %s3781_s9 }
0x136d   :  { %v1266_v0 = vpop.permute.xlu2 %1265 }
0x136e   :  { %v1268_v1 = vmul.f32 %v1266_v0, %v1251_v54 }
0x1370   :  { %1274 = vrot.lane.b32.xlu2 %v1268_v1, %s3782_s15 }
0x13ca   :  { %v1275_v7 = vpop.permute.xlu2 %1274 }
0x13cb   :  { %3338 = vmatmul.msk.f32.vlgmr.msrb.gmra.mxu1 %vm370_vm8, %v1275_v7 }
0x13cc   :  { %1606 = vmatpush.msrb.mxu1 %v4405_v4 }
0x13ce   :  { %1607 = vmatpush.msrb.mxu1 %v4408_v8 }
0x13d0   :  { %1608 = vmatpush.msrb.mxu1 %v4411_v3 }
0x13d2   :  { %1609 = vmatpush.msrb.mxu1 %v4414_v9 }
0x13d3   :  { %3342 = vmatmul.msk.f32.vlgmr.msra.gmra.mxu1 %vm370_vm8, %v1275_v7 }
0x13db   :  { %3346 = vmatmul.msk.f32.vlgmr.msrb.gmra.mxu1 %vm370_vm8, %v1275_v7 }
0x1448   :  { %v1295_v50 = vpop.f32.mrf.mxu1 }
0x1449   :  { %v1299_v56 = vrot.slane %v1295_v50, 1  ;;  %v1300_v57 = vperm.slane %v1295_v50, 0 }
0x144b   :  { %v1301_v60 = vperm.slane %v1299_v56, 0  ;;  %v1304_v17 = vadd.f32 %v1300_v57, %v4142_v46 }
0x144d   :  { %v1305_v11 = vadd.f32 %v1301_v60, %v4144_v53  ;;  %3476 = vtanh.f32 %v1304_v17 }
0x144f   :  { %3478 = vtanh.f32 %v1305_v11 }
0x1453   :  { %v3477_v12 = vpop.eup %3476 }
0x1454   :  { %v1308_v13 = vmul.f32 %v3477_v12, %v4151_v59 }
0x1455   :  { %v3479_v24 = vpop.eup %3478 }
0x1456   :  { %v1310_v10 = vsel %vm539_vm13, %v1308_v13, 0.0  ;;  %v1309_v16 = vmul.f32 %v3479_v24, %v4151_v59 }
0x1457   :  { %1311 = vadd.xlane.f32.xlu0 %v1310_v10 }
0x1458   :  { %v1313_v18 = vsel %vm539_vm13, %v1309_v16, 0.0 }
0x1459   :  { %1314 = vadd.xlane.f32.xlu1 %v1313_v18 }
0x14ca   :  { %v1312_v37 = vpop.xlane.xlu0 %1311 }
0x14cb   :  { %v1316_v39 = vmul.f32 %v3966_v26, %v1312_v37 }
0x14cc   :  { %v1315_v45 = vpop.xlane.xlu1 %1314 }
0x14cd   :  { %v1317_v36 = vmul.f32 %v3969_v28, %v1315_v45  ;;  %v1320_v47 = vperm.slane %v1316_v39, %v3957_v19 }
0x14cf   :  { %v1321_v20 = vperm.slane %v1317_v36, %v3957_v19 }
0x14d1   :  { %v1322_v23 = vsel %vm179_vm6, %v1321_v20, %v1320_v47 }
0x14d2   :  { %v1324_v27 = vsel %vm182_vm7, %v1322_v23, -inf }
0x14d3   :  { %1325 = vmax.xlane.f32.xlu2 %v1324_v27 }
0x1546   :  { %v1326_v59 = vpop.xlane.xlu2 %1325 }
0x1547   :  { %v1328_v31 = vperm.slane %v1326_v59, 0  ;;  %v1329_v32 = vperm.slane %v1326_v59, 1 }
0x1549   :  { %v1332_v33 = vsub.f32 %v1316_v39, %v1328_v31  ;;  %v1333_v30 = vsub.f32 %v1317_v36, %v1329_v32 }
0x154b   :  { %v1334_v35 = vmul.f32 1.442695, %v1332_v33  ;;  %v1336_v38 = vmul.f32 1.442695, %v1333_v30  ;;  %v1490_v30 = vpop.f32.mrf.mxu1 }
0x154d   :  { %3480 = vpow2.f32 %v1334_v35 }
0x154e   :  { %3482 = vpow2.f32 %v1336_v38 }
0x1553   :  { %v3481_v48 = vpop.eup %3480 }
0x1554   :  { %v3483_v63 = vpop.eup %3482  ;;  %1358 = vperm.xlu0 %3405, %v3481_v48   ;;  %v1338_v54 = vmul.f32 %v3481_v48, %v3966_v26 }
0x1555   :  { %1361 = vperm.xlu1 %3407, %v3483_v63   ;;  %v1339_v41 = vmul.f32 %v3483_v63, %v3969_v28 }
0x1556   :  { %1343 = vperm.xlu2 %3406, %v1338_v54  }
0x155c   :  { %1346 = vperm.xlu0 %3405, %v1339_v41  }
0x15b0   :  { %v1344_v7 = vpop.permute.xlu2 %1343 }
0x15b1   :  { %v1348_v56 = vperm.slane %v1344_v7, %v3957_v19 }
0x15c6   :  { %v1359_v58 = vpop.permute.xlu0 %1358 }
0x15c7   :  { %v1362_v42 = vpop.permute.xlu1 %1361  ;;  %v1363_v43 = vperm.slane %v1359_v58, %v3957_v19 }
0x15c8   :  { %v1364_v61 = vperm.slane %v1362_v42, %v3957_v19 }
0x15ca   :  { %v1365_v0 = vsel %vm179_vm6, %v1364_v61, %v1363_v43 }
0x15cb   :  { %v1367_v1 = vsel %vm182_vm7, %v1365_v0, 0.0 }
0x15cc   :  { %1368 = vadd.xlane.f32.xlu2 %v1367_v1 }
0x15ce   :  { %v1347_v50 = vpop.permute.xlu0 %1346 }
0x15cf   :  { %v1349_v57 = vperm.slane %v1347_v50, %v3957_v19 }
0x15d1   :  { %v1350_v60 = vsel %vm179_vm6, %v1349_v57, %v1348_v56 }
0x15d2   :  { %v1352_v17 = vsel %vm182_vm7, %v1350_v60, 0.0 }
0x15d3   :  { %1353 = vadd.xlane.f32.xlu1 %v1352_v17 }
0x163f   :  { %v1369_v11 = vpop.xlane.xlu2 %1368 }
0x1640   :  { %v1370_v12 = vmul.f32 1e-13, %v1369_v11  ;;  %v3092_v11 = vrot.slane %v4382_v14, 6 }
0x1646   :  { %v1354_v13 = vpop.xlane.xlu1 %1353 }
0x1647   :  { %v1371_v24 = vadd.f32 %v1370_v12, %v1354_v13 }
0x1649   :  { %3484 = vrcp.f32 %v1371_v24 }
0x164f   :  { %v3485_v10 = vpop.eup %3484 }
0x1650   :  { %v1375_v16 = vperm.slane %v3485_v10, 1  ;;  %v1374_v37 = vperm.slane %v3485_v10, 0 }
0x1652   :  { %v1379_v18 = vmul.f32 %v1375_v16, %v1339_v41  ;;  %v1378_v39 = vmul.f32 %v1374_v37, %v1338_v54  ;;  %v1611_v37 = vpop.f32.mrf.mxu1 }
0x1654   :  { %1409 = vperm.xlu0 %3405, %v1379_v18  }
0x165c   :  { %1382 = vperm.xlu0 %3405, %v1378_v39  }
0x16c6   :  { %v1410_v45 = vpop.permute.xlu0 %1409 }
0x16c7   :  { %v1411_v36 = vperm.slane %v1410_v45, %v3957_v19 }
0x16c9   :  { %3340 = vmatmul.msk.f32.vlgmr.msrb.gmra.mxu2 %vm615_vm14, %v1411_v36 }
0x16ca   :  { %1786 = vmatpush.msrb.mxu2 %v4379_v29 }
0x16ce   :  { %v1383_v47 = vpop.permute.xlu0 %1382 }
0x16cf   :  { %v1384_v20 = vperm.slane %v1383_v47, %v3957_v19 }
0x16d1   :  { %3339 = vmatmul.msk.f32.vlgmr.msra.gmra.mxu3 %vm615_vm14, %v1384_v20 }
0x16d9   :  { %3343 = vmatmul.msk.f32.vlgmr.msrb.gmra.mxu3 %vm370_vm8, %v4386_v15 }
0x174c   :  { %v1431_v23 = vpop.f32.mrf.mxu2 }
0x174d   :  { %v1444_v27 = vrot.slane %v1431_v23, 7 }
0x1754   :  { %v1404_v59 = vpop.f32.mrf.mxu3 }
0x1755   :  { %v1445_v31 = vsel %vm179_vm6, %v1444_v27, %v1404_v59 }
0x1756   :  { %3341 = vmatmul.msk.f32.vlgmr.msra.gmra.mxu0 %vm160_vm0, %v1445_v31 }
0x1757   :  { %1963 = vmatpush.msra.mxu0 %v4360_v2 }
0x1759   :  { %1964 = vmatpush.msra.mxu0 %v4362_v6 }
0x175b   :  { %1965 = vmatpush.msra.mxu0 %v4366_v25 }
0x175c   :  { %v1515_v35 = vpop.f32.mrf.mxu3 }
0x175d   :  { %1966 = vmatpush.msra.mxu0 %v4370_v55 }
0x17d3   :  { %v1465_v32 = vpop.f32.mrf.mxu0 }
0x17d4   :  { %v1468_v33 = vadd.f32 %v4262_v34, %v1465_v32 }
0x17d6   :  { %v1493_v15 = vadd.f32 %v1490_v30, %v1468_v33 }
0x17d8   :  { %v1518_v38 = vadd.f32 %v1515_v35, %v1493_v15 }
0x17da   :  { %v3344_v48 = vmul.f32 -1.442695, %v1518_v38 }
0x17dc   :  { %3486 = vpow2.f32 %v3344_v48 }
0x17e2   :  { %v3487_v63 = vpop.eup %3486 }
0x17e3   :  { %v1523_v54 = vadd.f32 1.0, %v3487_v63 }
0x17e5   :  { %3488 = vrcp.f32 %v1523_v54  ;;  %v1535_v6 = vand.u32 2147483648, %v1523_v54  ;;  %v1533_v55 = vand.u32 2147483647, %v1523_v54  ;;  %vm1529_vm2 = vweird.f32 %v1523_v54 }
0x17e6   :  { %3490 = vtanh.f32 %v1518_v38 }
0x17e7   :  { %v1536_v34 = vor.u32 1.1754944e-38, %v1535_v6  ;;  %vm1534_vm4 = vcmp.eq.f32.partialorder %v1533_v55, 8.507059e+37  ;;  %v4494_v6 = vld [vmem:[%s4987_s10 + $0x10] sm:$0xff] }
0x17eb   :  { %v3489_v41 = vpop.eup %3488 }
0x17ec   :  { %v1525_v2 = vmul.f32 %v3489_v41, %v1523_v54  ;;  %vm1530_vm15 = vweird.f32 %v3489_v41  ;;  %v3491_v61 = vpop.eup %3490 }
0x17ed   :  { %vm1531_vm3 = vmor %vm1529_vm2, %vm1530_vm15 }
0x17ee   :  { %v1526_v58 = vsub.f32 1.0, %v1525_v2 }
0x17f0   :  { %v1527_v25 = vmul.f32 %v3489_v41, %v1526_v58  ;;  %v4489_v58 = vld [vmem:[%s4987_s10 + $0x18] sm:$0xff] }
0x17f1   :  { %1674 = vmatpush.msra.mxu3 %v4489_v58 }
0x17f2   :  { %v1528_v42 = vadd.f32 %v3489_v41, %v1527_v25  ;;  %v4506_v25 = vld [vmem:[%s4987_s10] sm:$0xff] }
0x17f3   :  { %1675 = vmatpush.msra.mxu3 %v4494_v6 }
0x17f4   :  { %v1532_v43 = vsel %vm1531_vm3, %v3489_v41, %v1528_v42 }
0x17f5   :  { %v1537_v0 = vsel %vm1534_vm4, %v1536_v34, %v1532_v43  ;;  %v4511_v34 = vld [vmem:[#allocation7 + $0x18] sm:$0xff]  ;;  %v4513_v43 = vld [vmem:[#allocation7 + $0x10] sm:$0xff] }
0x17f6   :  { %v1539_v1 = vsel %vm4057_vm9, %v3491_v61, %v1537_v0  ;;  %v4516_v61 = vld [vmem:[#allocation7 + $0x8] sm:$0xff]  ;;  %v4519_v0 = vld [vmem:[#allocation7] sm:$0xff] }
0x17f7   :  { %1542 = vrot.lane.b32.xlu0 %v1539_v1, %s3781_s9  ;;  %v1540_v56 = vmul.f32 %v1539_v1, %v4356_v22  ;;  %v3104_v22 = vsel %vm3103_vm5, %v4273_v62, %v3092_v11 }
0x1869   :  { %v1543_v7 = vpop.permute.xlu0 %1542 }
0x186a   :  { %v1545_v50 = vmul.f32 %v1543_v7, %v1539_v1 }
0x186c   :  { %1547 = vrot.lane.b32.xlu0 %v1545_v50, %s3782_s15 }
0x18de   :  { %v1548_v57 = vpop.permute.xlu0 %1547 }
0x18df   :  { %v4461_v60 = vadd.f32 %v1548_v57, %v1540_v56 }
0x18e1   :  { %3492 = vtanh.f32 %v4461_v60 }
0x18e7   :  { %v3493_v17 = vpop.eup %3492 }
0x18e8   :  { %1553 = vrot.lane.b32.xlu0 %v3493_v17, %s3781_s9 }
0x195a   :  { %v1554_v12 = vpop.permute.xlu0 %1553 }
0x195b   :  { %v1556_v13 = vmul.f32 %v1554_v12, %v1539_v1 }
0x195d   :  { %v3094_v24 = vrot.slane %v1556_v13, 4  ;;  %1565 = vrot.lane.b32.xlu2 %v1556_v13, %s3782_s15  ;;  %v4535_v13 = vld [vmem:[%s4989_s12] ss:$0 sm:$0xff] }
0x195f   :  { %v4470_v10 = vsel %vm3105_vm10, %v3104_v22, %v3094_v24 }
0x19b7   :  { %v4472_v16 = vpop.permute.xlu2 %1565 }
0x19b8   :  { %3345 = vmatmul.msk.f32.vlgmr.msra.gmra.mxu2 %vm370_vm8, %v4472_v16 }
0x1a3b   :  { %v1586_v18 = vpop.f32.mrf.mxu2 }
0x1a3c   :  { %v1589_v14 = vadd.f32 %v1586_v18, %v4047_v40 }
0x1a3e   :  { %v1614_v39 = vadd.f32 %v1611_v37, %v1589_v14 }
0x1a40   :  { %v3347_v45 = vmul.f32 -1.442695, %v1614_v39 }
0x1a42   :  { %3494 = vpow2.f32 %v3347_v45 }
0x1a48   :  { %v3495_v36 = vpop.eup %3494 }
0x1a49   :  { %v1619_v47 = vadd.f32 1.0, %v3495_v36 }
0x1a4b   :  { %3496 = vrcp.f32 %v1619_v47  ;;  %v1631_v27 = vand.u32 2147483648, %v1619_v47  ;;  %v1629_v31 = vand.u32 2147483647, %v1619_v47  ;;  %vm1625_vm12 = vweird.f32 %v1619_v47 }
0x1a4c   :  { %3498 = vtanh.f32 %v1614_v39 }
0x1a4d   :  { %v1632_v33 = vor.u32 1.1754944e-38, %v1631_v27  ;;  %vm1630_vm2 = vcmp.eq.f32.partialorder %v1629_v31, 8.507059e+37 }
0x1a51   :  { %v3497_v20 = vpop.eup %3496 }
0x1a52   :  { %v1621_v62 = vmul.f32 %v3497_v20, %v1619_v47  ;;  %vm1626_vm11 = vweird.f32 %v3497_v20  ;;  %v3499_v30 = vpop.eup %3498 }
0x1a53   :  { %vm1627_vm15 = vmor %vm1625_vm12, %vm1626_vm11 }
0x1a54   :  { %v1622_v23 = vsub.f32 1.0, %v1621_v62 }
0x1a56   :  { %v1623_v59 = vmul.f32 %v3497_v20, %v1622_v23 }
0x1a58   :  { %v1624_v32 = vadd.f32 %v3497_v20, %v1623_v59 }
0x1a5a   :  { %v1628_v40 = vsel %vm1627_vm15, %v3497_v20, %v1624_v32  ;;  %vm3107_vm15 = vcmask 1045504  }
0x1a5b   :  { %v1633_v15 = vsel %vm1630_vm2, %v1632_v33, %v1628_v40 }
0x1a5c   :  { %v1635_v35 = vsel %vm4057_vm9, %v3499_v30, %v1633_v15 }
0x1a5d   :  { %1638 = vrot.lane.b32.xlu0 %v1635_v35, %s3781_s9  ;;  %v1636_v63 = vmul.f32 %v1635_v35, %v4400_v44  ;;  %v4500_v44 = vld [vmem:[%s4987_s10 + $0x8] sm:$0xff] }
0x1a5e   :  { %1676 = vmatpush.msra.mxu3 %v4500_v44 }
0x1a60   :  { %1677 = vmatpush.msra.mxu3 %v4506_v25 }
0x1a62   :  { %1869 = vmatpush.msrb.mxu3 %v4511_v34 }
0x1a64   :  { %1870 = vmatpush.msrb.mxu3 %v4513_v43 }
0x1a66   :  { %1871 = vmatpush.msrb.mxu3 %v4516_v61 }
0x1a68   :  { %1872 = vmatpush.msrb.mxu3 %v4519_v0 }
0x1acf   :  { %v1639_v38 = vpop.permute.xlu0 %1638 }
0x1ad0   :  { %v1641_v48 = vmul.f32 %v1639_v38, %v1635_v35 }
0x1ad2   :  { %1643 = vrot.lane.b32.xlu1 %v1641_v48, %s3782_s15 }
0x1b44   :  { %v1644_v54 = vpop.permute.xlu1 %1643 }
0x1b45   :  { %v4482_v41 = vadd.f32 %v1644_v54, %v1636_v63 }
0x1b47   :  { %3500 = vtanh.f32 %v4482_v41 }
0x1b4d   :  { %v3501_v2 = vpop.eup %3500 }
0x1b4e   :  { %1649 = vrot.lane.b32.xlu0 %v3501_v2, %s3781_s9 }
0x1bc0   :  { %v1650_v55 = vpop.permute.xlu0 %1649 }
0x1bc1   :  { %v1652_v42 = vmul.f32 %v1650_v55, %v1635_v35 }
0x1bc3   :  { %1658 = vrot.lane.b32.xlu0 %v1652_v42, %s3782_s15 }
0x1c35   :  { %v1659_v1 = vpop.permute.xlu0 %1658 }
0x1c36   :  { %3348 = vmatmul.msk.f32.vlgmr.msra.gmra.mxu3 %vm370_vm8, %v1659_v1 }
0x1c37   :  { %1988 = vmatpush.msra.mxu3 %v4405_v4 }
0x1c39   :  { %1989 = vmatpush.msra.mxu3 %v4408_v8 }
0x1c3b   :  { %1990 = vmatpush.msra.mxu3 %v4411_v3 }
0x1c3d   :  { %1991 = vmatpush.msra.mxu3 %v4414_v9 }
0x1c3e   :  { %3352 = vmatmul.msk.f32.vlgmr.msrb.gmra.mxu3 %vm370_vm8, %v1659_v1 }
0x1c46   :  { %3356 = vmatmul.msk.f32.vlgmr.msra.gmra.mxu3 %vm370_vm8, %v1659_v1 }
0x1cb9   :  { %v1679_v7 = vpop.f32.mrf.mxu3 }
0x1cba   :  { %v1683_v50 = vrot.slane %v1679_v7, 1  ;;  %v1684_v56 = vperm.slane %v1679_v7, 0 }
0x1cbc   :  { %v1685_v57 = vperm.slane %v1683_v50, 0  ;;  %v1688_v17 = vadd.f32 %v1684_v56, %v4142_v46 }
0x1cbe   :  { %v1689_v11 = vadd.f32 %v1685_v57, %v4144_v53  ;;  %3502 = vtanh.f32 %v1688_v17 }
0x1cc0   :  { %3504 = vtanh.f32 %v1689_v11 }
0x1cc4   :  { %v3503_v12 = vpop.eup %3502 }
0x1cc5   :  { %v1692_v24 = vmul.f32 %v4535_v13, %v3503_v12 }
0x1cc6   :  { %v3505_v22 = vpop.eup %3504 }
0x1cc7   :  { %v1694_v18 = vsel %vm539_vm13, %v1692_v24, 0.0  ;;  %v1693_v14 = vmul.f32 %v4535_v13, %v3505_v22 }
0x1cc8   :  { %1695 = vadd.xlane.f32.xlu2 %v1694_v18 }
0x1cc9   :  { %v1697_v37 = vsel %vm539_vm13, %v1693_v14, 0.0 }
0x1cca   :  { %1698 = vadd.xlane.f32.xlu0 %v1697_v37 }
0x1d3b   :  { %v1696_v39 = vpop.xlane.xlu2 %1695 }
0x1d3c   :  { %v1700_v45 = vmul.f32 %v3966_v26, %v1696_v39 }
0x1d3d   :  { %v1699_v36 = vpop.xlane.xlu0 %1698 }
0x1d3e   :  { %v1701_v47 = vmul.f32 %v3969_v28, %v1699_v36  ;;  %v1704_v20 = vperm.slane %v1700_v45, %v3957_v19 }
0x1d40   :  { %v1705_v62 = vperm.slane %v1701_v47, %v3957_v19 }
0x1d42   :  { %v1706_v23 = vsel %vm179_vm6, %v1705_v62, %v1704_v20  ;;  %v4557_v20 = vld [vmem:[#allocation9 + $0x18] sm:$0xff]  ;;  %v4559_v62 = vld [vmem:[#allocation9 + $0x10] sm:$0xff] }
0x1d43   :  { %v1708_v27 = vsel %vm182_vm7, %v1706_v23, -inf  ;;  %1894 = vmatpush.msra.mxu2 %v4557_v20  ;;  %v4562_v23 = vld [vmem:[#allocation9 + $0x8] sm:$0xff] }
0x1d44   :  { %1709 = vmax.xlane.f32.xlu1 %v1708_v27  ;;  %v4566_v27 = vld [vmem:[#allocation9] sm:$0xff] }
0x1d45   :  { %1895 = vmatpush.msra.mxu2 %v4559_v62 }
0x1d47   :  { %1896 = vmatpush.msra.mxu2 %v4562_v23 }
0x1d49   :  { %1897 = vmatpush.msra.mxu2 %v4566_v27 }
0x1db7   :  { %v1710_v59 = vpop.xlane.xlu1 %1709 }
0x1db8   :  { %v1712_v31 = vperm.slane %v1710_v59, 0  ;;  %v1713_v32 = vperm.slane %v1710_v59, 1  ;;  %v4572_v59 = vld [vmem:[%s4990_s13 + $0x38] sm:$0xff] }
0x1db9   :  { %1840 = vmatpush.msra.mxu1 %v4572_v59  ;;  %2222 = vmatpush.msrb.mxu3 %v4572_v59 }
0x1dba   :  { %v1716_v33 = vsub.f32 %v1700_v45, %v1712_v31  ;;  %v1717_v40 = vsub.f32 %v1701_v47, %v1713_v32  ;;  %v4577_v31 = vld [vmem:[%s4990_s13 + $0x30] sm:$0xff]  ;;  %v4584_v32 = vld [vmem:[%s4990_s13 + $0x28] sm:$0xff] }
0x1dbb   :  { %1841 = vmatpush.msra.mxu1 %v4577_v31  ;;  %2223 = vmatpush.msrb.mxu3 %v4577_v31 }
0x1dbc   :  { %v1718_v30 = vmul.f32 1.442695, %v1716_v33  ;;  %v1720_v15 = vmul.f32 1.442695, %v1717_v40  ;;  %v4591_v33 = vld [vmem:[%s4990_s13 + $0x20] sm:$0xff]  ;;  %v4598_v40 = vld [vmem:[%s4990_s13 + $0x18] sm:$0xff] }
0x1dbd   :  { %1842 = vmatpush.msra.mxu1 %v4584_v32  ;;  %2224 = vmatpush.msrb.mxu3 %v4584_v32 }
0x1dbe   :  { %3506 = vpow2.f32 %v1718_v30 }
0x1dbf   :  { %3508 = vpow2.f32 %v1720_v15  ;;  %1843 = vmatpush.msra.mxu1 %v4591_v33  ;;  %2225 = vmatpush.msrb.mxu3 %v4591_v33 }
0x1dc1   :  { %1844 = vmatpush.msra.mxu1 %v4598_v40  ;;  %2226 = vmatpush.msrb.mxu3 %v4598_v40 }
0x1dc4   :  { %v3507_v35 = vpop.eup %3506 }
0x1dc5   :  { %v3509_v38 = vpop.eup %3508  ;;  %1742 = vperm.xlu2 %3406, %v3507_v35   ;;  %v1722_v48 = vmul.f32 %v3507_v35, %v3966_v26 }
0x1dc6   :  { %1745 = vperm.xlu0 %3405, %v3509_v38   ;;  %v1723_v63 = vmul.f32 %v3509_v38, %v3969_v28 }
0x1dc7   :  { %1727 = vperm.xlu1 %3407, %v1722_v48  }
0x1dce   :  { %1730 = vperm.xlu0 %3405, %v1723_v63  }
0x1e1f   :  { %v1743_v54 = vpop.permute.xlu2 %1742 }
0x1e20   :  { %v1747_v55 = vperm.slane %v1743_v54, %v3957_v19 }
0x1e38   :  { %v1746_v2 = vpop.permute.xlu0 %1745 }
0x1e39   :  { %v1748_v42 = vperm.slane %v1746_v2, %v3957_v19  ;;  %v1728_v50 = vpop.permute.xlu1 %1727 }
0x1e3a   :  { %v1732_v57 = vperm.slane %v1728_v50, %v3957_v19 }
0x1e3b   :  { %v1749_v1 = vsel %vm179_vm6, %v1748_v42, %v1747_v55 }
0x1e3c   :  { %v1751_v7 = vsel %vm182_vm7, %v1749_v1, 0.0 }
0x1e3d   :  { %1752 = vadd.xlane.f32.xlu2 %v1751_v7  ;;  %v4652_v7 = vld [vmem:[%s4993_s16] ss:$0 sm:$0xff] }
0x1e40   :  { %v1731_v56 = vpop.permute.xlu0 %1730 }
0x1e41   :  { %v1733_v17 = vperm.slane %v1731_v56, %v3957_v19  ;;  %v1874_v56 = vpop.f32.mrf.mxu3 }
0x1e43   :  { %v1734_v11 = vsel %vm179_vm6, %v1733_v17, %v1732_v57 }
0x1e44   :  { %v1736_v12 = vsel %vm182_vm7, %v1734_v11, 0.0 }
0x1e45   :  { %1737 = vadd.xlane.f32.xlu1 %v1736_v12 }
0x1eb0   :  { %v1753_v24 = vpop.xlane.xlu2 %1752 }
0x1eb1   :  { %v1754_v22 = vmul.f32 1e-13, %v1753_v24 }
0x1eb8   :  { %v1738_v18 = vpop.xlane.xlu1 %1737 }
0x1eb9   :  { %v1755_v14 = vadd.f32 %v1754_v22, %v1738_v18 }
0x1ebb   :  { %3510 = vrcp.f32 %v1755_v14 }
0x1ec1   :  { %v3511_v37 = vpop.eup %3510 }
0x1ec2   :  { %v1758_v39 = vperm.slane %v3511_v37, 0  ;;  %v1759_v36 = vperm.slane %v3511_v37, 1 }
0x1ec4   :  { %v1762_v45 = vmul.f32 %v1758_v39, %v1722_v48  ;;  %v1763_v47 = vmul.f32 %v1759_v36, %v1723_v63  ;;  %v4622_v48 = vld [vmem:[%s4990_s13 + $0x10] sm:$0xff]  ;;  %v4643_v63 = vld [vmem:[%s5006_s30 + $0x8] sm:$0xff] }
0x1ec5   :  { %1845 = vmatpush.msra.mxu1 %v4622_v48  ;;  %2227 = vmatpush.msrb.mxu3 %v4622_v48 }
0x1ec6   :  { %1766 = vperm.xlu0 %3405, %v1762_v45  }
0x1ece   :  { %1793 = vperm.xlu0 %3405, %v1763_v47  }
0x1f38   :  { %v1767_v30 = vpop.permute.xlu0 %1766 }
0x1f39   :  { %v1768_v15 = vperm.slane %v1767_v30, %v3957_v19 }
0x1f3b   :  { %3349 = vmatmul.msk.f32.vlgmr.msrb.gmra.mxu2 %vm615_vm14, %v1768_v15 }
0x1f3c   :  { %2056 = vmatpush.msrb.mxu2 %v4489_v58 }
0x1f3e   :  { %2057 = vmatpush.msrb.mxu2 %v4494_v6 }
0x1f40   :  { %v1794_v35 = vpop.permute.xlu0 %1793  ;;  %2058 = vmatpush.msrb.mxu2 %v4500_v44 }
0x1f41   :  { %v1795_v38 = vperm.slane %v1794_v35, %v3957_v19 }
0x1f42   :  { %2059 = vmatpush.msrb.mxu2 %v4506_v25 }
0x1f43   :  { %3350 = vmatmul.msk.f32.vlgmr.msrb.gmra.mxu0 %vm615_vm14, %v1795_v38  ;;  %3353 = vmatmul.msk.f32.vlgmr.msra.gmra.mxu2 %vm370_vm8, %v4472_v16  ;;  %v4629_v16 = vld [vmem:[%s4990_s13 + $0x8] sm:$0xff] }
0x1f44   :  { %2251 = vmatpush.msra.mxu2 %v4511_v34  ;;  %2168 = vmatpush.msrb.mxu0 %v4379_v29  ;;  %v4636_v29 = vld [vmem:[%s4990_s13] sm:$0xff] }
0x1f45   :  { %1846 = vmatpush.msra.mxu1 %v4629_v16  ;;  %2228 = vmatpush.msrb.mxu3 %v4629_v16 }
0x1f46   :  { %2252 = vmatpush.msra.mxu2 %v4513_v43 }
0x1f47   :  { %1847 = vmatpush.msra.mxu1 %v4636_v29  ;;  %2229 = vmatpush.msrb.mxu3 %v4636_v29 }
0x1f48   :  { %2253 = vmatpush.msra.mxu2 %v4516_v61 }
0x1f49   :  { %2195 = vmatpush.msrb.mxu1 %v4643_v63  ;;  %2580 = vmatpush.msra.mxu3 %v4643_v63 }
0x1f4a   :  { %2254 = vmatpush.msra.mxu2 %v4519_v0 }
0x1fbe   :  { %v1788_v55 = vpop.f32.mrf.mxu2 }
0x1fc0   :  { %v1815_v54 = vpop.f32.mrf.mxu0 }
0x1fc1   :  { %v1828_v2 = vrot.slane %v1815_v54, 7 }
0x1fc3   :  { %v1829_v42 = vsel %vm179_vm6, %v1828_v2, %v1788_v55 }
0x1fc4   :  { %3351 = vmatmul.msk.f32.vlgmr.msra.gmra.mxu1 %vm160_vm0, %v1829_v42 }
0x1fc6   :  { %v1899_v17 = vpop.f32.mrf.mxu2 }
0x2041   :  { %v1849_v1 = vpop.f32.mrf.mxu1 }
0x2042   :  { %v1852_v50 = vadd.f32 %v4652_v7, %v1849_v1 }
0x2044   :  { %v1877_v57 = vadd.f32 %v1874_v56, %v1852_v50 }
0x2046   :  { %v1902_v11 = vadd.f32 %v1899_v17, %v1877_v57 }
0x2048   :  { %v3354_v12 = vmul.f32 -1.442695, %v1902_v11 }
0x204a   :  { %3512 = vpow2.f32 %v3354_v12 }
0x2050   :  { %v3513_v24 = vpop.eup %3512 }
0x2051   :  { %v1907_v22 = vadd.f32 1.0, %v3513_v24 }
0x2053   :  { %3514 = vrcp.f32 %v1907_v22  ;;  %v1919_v39 = vand.u32 2147483648, %v1907_v22  ;;  %v1917_v36 = vand.u32 2147483647, %v1907_v22  ;;  %vm1913_vm4 = vweird.f32 %v1907_v22 }
0x2054   :  { %3516 = vtanh.f32 %v1902_v11 }
0x2055   :  { %v1920_v30 = vor.u32 1.1754944e-38, %v1919_v39  ;;  %vm1918_vm12 = vcmp.eq.f32.partialorder %v1917_v36, 8.507059e+37 }
0x2059   :  { %v3515_v18 = vpop.eup %3514 }
0x205a   :  { %v1909_v14 = vmul.f32 %v3515_v18, %v1907_v22  ;;  %vm1914_vm3 = vweird.f32 %v3515_v18  ;;  %v3517_v35 = vpop.eup %3516 }
0x205b   :  { %vm1915_vm11 = vmor %vm1913_vm4, %vm1914_vm3 }
0x205c   :  { %v1910_v37 = vsub.f32 1.0, %v1909_v14 }
0x205e   :  { %v1911_v45 = vmul.f32 %v3515_v18, %v1910_v37 }
0x2060   :  { %v1912_v47 = vadd.f32 %v3515_v18, %v1911_v45 }
0x2062   :  { %v1916_v15 = vsel %vm1915_vm11, %v3515_v18, %v1912_v47  ;;  %v1993_v18 = vpop.f32.mrf.mxu3 }
0x2063   :  { %v1921_v38 = vsel %vm1918_vm12, %v1920_v30, %v1916_v15 }
0x2064   :  { %v1923_v54 = vsel %vm4057_vm9, %v3517_v35, %v1921_v38 }
0x2065   :  { %1926 = vrot.lane.b32.xlu0 %v1923_v54, %s3781_s9  ;;  %v1924_v42 = vmul.f32 %v1923_v54, %v4461_v60 }
0x20d7   :  { %v1927_v2 = vpop.permute.xlu0 %1926 }
0x20d8   :  { %v1929_v55 = vmul.f32 %v1927_v2, %v1923_v54 }
0x20da   :  { %1931 = vrot.lane.b32.xlu0 %v1929_v55, %s3782_s15 }
0x214c   :  { %v1932_v1 = vpop.permute.xlu0 %1931 }
0x214d   :  { %v4660_v50 = vadd.f32 %v1932_v1, %v1924_v42 }
0x214f   :  { %3518 = vtanh.f32 %v4660_v50 }
0x2155   :  { %v3519_v56 = vpop.eup %3518 }
0x2156   :  { %1937 = vrot.lane.b32.xlu0 %v3519_v56, %s3781_s9 }
0x21c8   :  { %v1938_v57 = vpop.permute.xlu0 %1937 }
0x21c9   :  { %v1940_v17 = vmul.f32 %v1938_v57, %v1923_v54 }
0x21cb   :  { %v3096_v11 = vrot.slane %v1940_v17, 2  ;;  %1947 = vrot.lane.b32.xlu2 %v1940_v17, %s3782_s15 }
0x21cd   :  { %v4666_v12 = vsel %vm3107_vm15, %v4470_v10, %v3096_v11 }
0x2225   :  { %v4668_v24 = vpop.permute.xlu2 %1947 }
0x2226   :  { %3355 = vmatmul.msk.f32.vlgmr.msra.gmra.mxu0 %vm370_vm8, %v4668_v24 }
0x2227   :  { %2276 = vmatpush.msra.mxu0 %v4557_v20 }
0x2229   :  { %2277 = vmatpush.msra.mxu0 %v4559_v62 }
0x222b   :  { %2278 = vmatpush.msra.mxu0 %v4562_v23 }
0x222d   :  { %2279 = vmatpush.msra.mxu0 %v4566_v27 }
0x22a3   :  { %v1968_v60 = vpop.f32.mrf.mxu0 }
0x22a4   :  { %v1971_v22 = vadd.f32 %v1968_v60, %v4049_v49 }
0x22a6   :  { %v1996_v14 = vadd.f32 %v1993_v18, %v1971_v22 }
0x22a8   :  { %v3357_v10 = vmul.f32 -1.442695, %v1996_v14 }
0x22aa   :  { %3520 = vpow2.f32 %v3357_v10 }
0x22b0   :  { %v3521_v37 = vpop.eup %3520 }
0x22b1   :  { %v2001_v39 = vadd.f32 1.0, %v3521_v37 }
0x22b3   :  { %3522 = vrcp.f32 %v2001_v39  ;;  %v2013_v30 = vand.u32 2147483648, %v2001_v39  ;;  %v2011_v35 = vand.u32 2147483647, %v2001_v39  ;;  %vm2007_vm3 = vweird.f32 %v2001_v39 }
0x22b4   :  { %3524 = vtanh.f32 %v1996_v14 }
0x22b5   :  { %v2014_v54 = vor.u32 1.1754944e-38, %v2013_v30  ;;  %vm2012_vm11 = vcmp.eq.f32.partialorder %v2011_v35, 8.507059e+37 }
0x22b9   :  { %v3523_v45 = vpop.eup %3522 }
0x22ba   :  { %v2003_v36 = vmul.f32 %v3523_v45, %v2001_v39  ;;  %vm2008_vm2 = vweird.f32 %v3523_v45  ;;  %v3525_v2 = vpop.eup %3524 }
0x22bb   :  { %vm2009_vm4 = vmor %vm2007_vm3, %vm2008_vm2 }
0x22bc   :  { %v2004_v47 = vsub.f32 1.0, %v2003_v36 }
0x22be   :  { %v2005_v15 = vmul.f32 %v3523_v45, %v2004_v47 }
0x22c0   :  { %v2006_v38 = vadd.f32 %v3523_v45, %v2005_v15 }
0x22c2   :  { %v2010_v49 = vsel %vm2009_vm4, %v3523_v45, %v2006_v38 }
0x22c3   :  { %v2015_v55 = vsel %vm2012_vm11, %v2014_v54, %v2010_v49 }
0x22c4   :  { %v2017_v42 = vsel %vm4057_vm9, %v3525_v2, %v2015_v55 }
0x22c5   :  { %2020 = vrot.lane.b32.xlu0 %v2017_v42, %s3781_s9  ;;  %v2018_v57 = vmul.f32 %v2017_v42, %v4482_v41 }
0x2337   :  { %v2021_v1 = vpop.permute.xlu0 %2020 }
0x2338   :  { %v2023_v56 = vmul.f32 %v2021_v1, %v2017_v42 }
0x233a   :  { %2025 = vrot.lane.b32.xlu1 %v2023_v56, %s3782_s15 }
0x23ac   :  { %v2026_v17 = vpop.permute.xlu1 %2025 }
0x23ad   :  { %v4682_v11 = vadd.f32 %v2026_v17, %v2018_v57 }
0x23af   :  { %3526 = vtanh.f32 %v4682_v11 }
0x23b5   :  { %v3527_v60 = vpop.eup %3526 }
0x23b6   :  { %2031 = vrot.lane.b32.xlu0 %v3527_v60, %s3781_s9 }
0x2428   :  { %v2032_v22 = vpop.permute.xlu0 %2031 }
0x2429   :  { %v2034_v18 = vmul.f32 %v2032_v22, %v2017_v42 }
0x242b   :  { %2040 = vrot.lane.b32.xlu0 %v2034_v18, %s3782_s15 }
0x249d   :  { %v2041_v14 = vpop.permute.xlu0 %2040 }
0x249e   :  { %3358 = vmatmul.msk.f32.vlgmr.msrb.gmra.mxu2 %vm370_vm8, %v2041_v14 }
0x249f   :  { %2373 = vmatpush.msrb.mxu2 %v4405_v4 }
0x24a1   :  { %2374 = vmatpush.msrb.mxu2 %v4408_v8 }
0x24a3   :  { %2375 = vmatpush.msrb.mxu2 %v4411_v3 }
0x24a5   :  { %2376 = vmatpush.msrb.mxu2 %v4414_v9 }
0x24a6   :  { %3362 = vmatmul.msk.f32.vlgmr.msra.gmra.mxu2 %vm370_vm8, %v2041_v14 }
0x24a7   :  { %2607 = vmatpush.msra.mxu2 %v4572_v59 }
0x24a9   :  { %2608 = vmatpush.msra.mxu2 %v4577_v31 }
0x24ab   :  { %2609 = vmatpush.msra.mxu2 %v4584_v32 }
0x24ad   :  { %2610 = vmatpush.msra.mxu2 %v4591_v33 }
0x24ae   :  { %3366 = vmatmul.msk.f32.vlgmr.msrb.gmra.mxu2 %vm370_vm8, %v2041_v14 }
0x24af   :  { %2611 = vmatpush.msra.mxu2 %v4598_v40 }
0x24b1   :  { %2612 = vmatpush.msra.mxu2 %v4622_v48 }
0x24b3   :  { %2613 = vmatpush.msra.mxu2 %v4629_v16 }
0x24b5   :  { %2614 = vmatpush.msra.mxu2 %v4636_v29 }
0x24b7   :  { %2964 = vmatpush.msrb.mxu2 %v4643_v63 }
0x2521   :  { %v2061_v4 = vpop.f32.mrf.mxu2 }
0x2522   :  { %v2065_v8 = vrot.slane %v2061_v4, 1  ;;  %v2066_v3 = vperm.slane %v2061_v4, 0 }
0x2524   :  { %v2067_v9 = vperm.slane %v2065_v8, 0  ;;  %v2070_v41 = vadd.f32 %v2066_v3, %v4142_v46 }
0x2526   :  { %v2071_v59 = vadd.f32 %v2067_v9, %v4144_v53  ;;  %3528 = vtanh.f32 %v2070_v41 }
0x2528   :  { %3530 = vtanh.f32 %v2071_v59 }
0x252c   :  { %v3529_v31 = vpop.eup %3528 }
0x252d   :  { %v2074_v32 = vmul.f32 %v4535_v13, %v3529_v31 }
0x252e   :  { %v3531_v33 = vpop.eup %3530 }
0x252f   :  { %v2076_v40 = vsel %vm539_vm13, %v2074_v32, 0.0  ;;  %v2075_v48 = vmul.f32 %v4535_v13, %v3531_v33 }
0x2530   :  { %2077 = vadd.xlane.f32.xlu2 %v2076_v40 }
0x2531   :  { %v2079_v16 = vsel %vm539_vm13, %v2075_v48, 0.0 }
0x2532   :  { %2080 = vadd.xlane.f32.xlu0 %v2079_v16 }
0x25a3   :  { %v2078_v29 = vpop.xlane.xlu2 %2077 }
0x25a4   :  { %v2082_v63 = vmul.f32 %v3966_v26, %v2078_v29 }
0x25a5   :  { %v2081_v10 = vpop.xlane.xlu0 %2080 }
0x25a6   :  { %v2083_v37 = vmul.f32 %v3969_v28, %v2081_v10  ;;  %v2086_v39 = vperm.slane %v2082_v63, %v3957_v19 }
0x25a8   :  { %v2087_v45 = vperm.slane %v2083_v37, %v3957_v19 }
0x25aa   :  { %v2088_v36 = vsel %vm179_vm6, %v2087_v45, %v2086_v39 }
0x25ab   :  { %v2090_v47 = vsel %vm182_vm7, %v2088_v36, -inf }
0x25ac   :  { %2091 = vmax.xlane.f32.xlu1 %v2090_v47 }
0x261f   :  { %v2092_v30 = vpop.xlane.xlu1 %2091 }
0x2620   :  { %v2094_v15 = vperm.slane %v2092_v30, 0  ;;  %v2095_v35 = vperm.slane %v2092_v30, 1 }
0x2622   :  { %v2098_v38 = vsub.f32 %v2082_v63, %v2094_v15  ;;  %v2099_v54 = vsub.f32 %v2083_v37, %v2095_v35  ;;  %v2256_v15 = vpop.f32.mrf.mxu2 }
0x2624   :  { %v2100_v49 = vmul.f32 1.442695, %v2098_v38  ;;  %v2102_v2 = vmul.f32 1.442695, %v2099_v54 }
0x2626   :  { %3532 = vpow2.f32 %v2100_v49 }
0x2627   :  { %3534 = vpow2.f32 %v2102_v2 }
0x262c   :  { %v3533_v55 = vpop.eup %3532 }
0x262d   :  { %v3535_v42 = vpop.eup %3534  ;;  %2124 = vperm.xlu2 %3406, %v3533_v55   ;;  %v2104_v1 = vmul.f32 %v3533_v55, %v3966_v26 }
0x262e   :  { %2127 = vperm.xlu0 %3405, %v3535_v42   ;;  %v2105_v56 = vmul.f32 %v3535_v42, %v3969_v28 }
0x262f   :  { %2109 = vperm.xlu1 %3407, %v2104_v1  }
0x2635   :  { %2112 = vperm.xlu2 %3406, %v2105_v56  }
0x2687   :  { %v2125_v57 = vpop.permute.xlu2 %2124 }
0x2688   :  { %v2129_v22 = vperm.slane %v2125_v57, %v3957_v19 }
0x268f   :  { %v2113_v17 = vpop.permute.xlu2 %2112 }
0x2690   :  { %v2115_v4 = vperm.slane %v2113_v17, %v3957_v19 }
0x26a0   :  { %v2128_v60 = vpop.permute.xlu0 %2127 }
0x26a1   :  { %v2130_v18 = vperm.slane %v2128_v60, %v3957_v19  ;;  %v2110_v14 = vpop.permute.xlu1 %2109 }
0x26a2   :  { %v2114_v8 = vperm.slane %v2110_v14, %v3957_v19 }
0x26a3   :  { %v2131_v3 = vsel %vm179_vm6, %v2130_v18, %v2129_v22 }
0x26a4   :  { %v2133_v9 = vsel %vm182_vm7, %v2131_v3, 0.0  ;;  %v2116_v41 = vsel %vm179_vm6, %v2115_v4, %v2114_v8 }
0x26a5   :  { %2134 = vadd.xlane.f32.xlu0 %v2133_v9  ;;  %v2118_v59 = vsel %vm182_vm7, %v2116_v41, 0.0  ;;  %v2330_v41 = vld [vmem:[#allocation4 + $0x18] sm:$0xff] }
0x26a6   :  { %2119 = vadd.xlane.f32.xlu2 %v2118_v59  ;;  %v2329_v59 = vld [vmem:[#allocation4 + $0x10] sm:$0xff]  ;;  %2348 = vmatpush.msra.mxu1 %v2330_v41 }
0x26a8   :  { %2349 = vmatpush.msra.mxu1 %v2329_v59 }
0x2718   :  { %v2135_v31 = vpop.xlane.xlu0 %2134 }
0x2719   :  { %v2136_v32 = vmul.f32 1e-13, %v2135_v31  ;;  %v2120_v33 = vpop.xlane.xlu2 %2119  ;;  %v2328_v31 = vld [vmem:[#allocation4 + $0x8] sm:$0xff] }
0x271a   :  { %2350 = vmatpush.msra.mxu1 %v2328_v31 }
0x271b   :  { %v2137_v40 = vadd.f32 %v2136_v32, %v2120_v33  ;;  %v2327_v32 = vld [vmem:[#allocation4] sm:$0xff] }
0x271c   :  { %2351 = vmatpush.msra.mxu1 %v2327_v32 }
0x271d   :  { %3536 = vrcp.f32 %v2137_v40 }
0x2723   :  { %v3537_v48 = vpop.eup %3536 }
0x2724   :  { %v2141_v16 = vperm.slane %v3537_v48, 1  ;;  %v2140_v63 = vperm.slane %v3537_v48, 0 }
0x2726   :  { %v2145_v29 = vmul.f32 %v2141_v16, %v2105_v56  ;;  %v2144_v10 = vmul.f32 %v2140_v63, %v2104_v1  ;;  %v2378_v63 = vpop.f32.mrf.mxu2 }
0x2728   :  { %2175 = vperm.xlu1 %3407, %v2145_v29  }
0x2730   :  { %2148 = vperm.xlu1 %3407, %v2144_v10  }
0x279a   :  { %v2176_v37 = vpop.permute.xlu1 %2175 }
0x279b   :  { %v2177_v39 = vperm.slane %v2176_v37, %v3957_v19 }
0x279d   :  { %3360 = vmatmul.msk.f32.vlgmr.msrb.gmra.mxu1 %vm615_vm14, %v2177_v39 }
0x27a2   :  { %v2149_v45 = vpop.permute.xlu1 %2148 }
0x27a3   :  { %v2150_v36 = vperm.slane %v2149_v45, %v3957_v19 }
0x27a5   :  { %3359 = vmatmul.msk.f32.vlgmr.msrb.gmra.mxu0 %vm615_vm14, %v2150_v36 }
0x27a6   :  { %2441 = vmatpush.msrb.mxu0 %v4489_v58 }
0x27a8   :  { %2442 = vmatpush.msrb.mxu0 %v4494_v6 }
0x27aa   :  { %2443 = vmatpush.msrb.mxu0 %v4500_v44 }
0x27ac   :  { %2444 = vmatpush.msrb.mxu0 %v4506_v25 }
0x27ad   :  { %3363 = vmatmul.msk.f32.vlgmr.msra.gmra.mxu0 %vm370_vm8, %v4668_v24 }
0x27ae   :  { %2636 = vmatpush.msra.mxu0 %v4511_v34 }
0x27b0   :  { %2637 = vmatpush.msra.mxu0 %v4513_v43 }
0x27b2   :  { %2638 = vmatpush.msra.mxu0 %v4516_v61 }
0x27b4   :  { %2639 = vmatpush.msra.mxu0 %v4519_v0 }
0x281a   :  { %v2197_v47 = vpop.f32.mrf.mxu1 }
0x281b   :  { %v2210_v30 = vrot.slane %v2197_v47, 7 }
0x2822   :  { %v2170_v58 = vpop.f32.mrf.mxu0 }
0x2823   :  { %v2211_v6 = vsel %vm179_vm6, %v2210_v30, %v2170_v58 }
0x2824   :  { %3361 = vmatmul.msk.f32.vlgmr.msrb.gmra.mxu3 %vm160_vm0, %v2211_v6 }
0x2825   :  { %2732 = vmatpush.msrb.mxu3 %v2330_v41 }
0x2827   :  { %2733 = vmatpush.msrb.mxu3 %v2329_v59 }
0x2829   :  { %2734 = vmatpush.msrb.mxu3 %v2328_v31 }
0x282a   :  { %v2281_v35 = vpop.f32.mrf.mxu0 }
0x282b   :  { %2735 = vmatpush.msrb.mxu3 %v2327_v32 }
0x28a7   :  { %v2231_v44 = vpop.f32.mrf.mxu3 }
0x28a8   :  { %v2234_v25 = vadd.f32 %v4652_v7, %v2231_v44 }
0x28aa   :  { %v2259_v24 = vadd.f32 %v2256_v15, %v2234_v25 }
0x28ac   :  { %v2284_v34 = vadd.f32 %v2281_v35, %v2259_v24 }
0x28ae   :  { %v3364_v38 = vmul.f32 -1.442695, %v2284_v34 }
0x28b0   :  { %3538 = vpow2.f32 %v3364_v38 }
0x28b6   :  { %v3539_v43 = vpop.eup %3538 }
0x28b7   :  { %v2289_v61 = vadd.f32 1.0, %v3539_v43 }
0x28b9   :  { %3540 = vrcp.f32 %v2289_v61  ;;  %v2301_v2 = vand.u32 2147483648, %v2289_v61  ;;  %v2299_v42 = vand.u32 2147483647, %v2289_v61  ;;  %vm2295_vm15 = vweird.f32 %v2289_v61 }
0x28ba   :  { %3542 = vtanh.f32 %v2284_v34 }
0x28bb   :  { %v2302_v56 = vor.u32 1.1754944e-38, %v2301_v2  ;;  %vm2300_vm3 = vcmp.eq.f32.partialorder %v2299_v42, 8.507059e+37  ;;  %v2743_v2 = vld [vmem:[#allocation6 + $0x10] sm:$0xff] }
0x28bf   :  { %v3541_v0 = vpop.eup %3540 }
0x28c0   :  { %v2291_v54 = vmul.f32 %v3541_v0, %v2289_v61  ;;  %vm2296_vm12 = vweird.f32 %v3541_v0  ;;  %v3543_v17 = vpop.eup %3542 }
0x28c1   :  { %vm2297_vm2 = vmor %vm2295_vm15, %vm2296_vm12 }
0x28c2   :  { %v2292_v49 = vsub.f32 1.0, %v2291_v54  ;;  %v2744_v54 = vld [vmem:[#allocation6 + $0x18] sm:$0xff] }
0x28c4   :  { %v2293_v55 = vmul.f32 %v3541_v0, %v2292_v49 }
0x28c6   :  { %v2294_v1 = vadd.f32 %v3541_v0, %v2293_v55  ;;  %v2742_v55 = vld [vmem:[#allocation6 + $0x8] sm:$0xff] }
0x28c8   :  { %v2298_v57 = vsel %vm2297_vm2, %v3541_v0, %v2294_v1 }
0x28c9   :  { %v2303_v60 = vsel %vm2300_vm3, %v2302_v56, %v2298_v57 }
0x28ca   :  { %v2305_v22 = vsel %vm4057_vm9, %v3543_v17, %v2303_v60 }
0x28cb   :  { %2308 = vrot.lane.b32.xlu1 %v2305_v22, %s3781_s9  ;;  %v2306_v4 = vmul.f32 %v2305_v22, %v4660_v50  ;;  %v4754_v50 = vld [vmem:[%s5006_s30] sm:$0xff] }
0x28cc   :  { %2553 = vmatpush.msrb.mxu1 %v4754_v50 }
0x293d   :  { %v2309_v18 = vpop.permute.xlu1 %2308 }
0x293e   :  { %v2311_v14 = vmul.f32 %v2309_v18, %v2305_v22 }
0x2940   :  { %2313 = vrot.lane.b32.xlu1 %v2311_v14, %s3782_s15 }
0x29b2   :  { %v2314_v8 = vpop.permute.xlu1 %2313 }
0x29b3   :  { %v4747_v3 = vadd.f32 %v2314_v8, %v2306_v4 }
0x29b5   :  { %3544 = vtanh.f32 %v4747_v3 }
0x29bb   :  { %v3545_v9 = vpop.eup %3544 }
0x29bc   :  { %2319 = vrot.lane.b32.xlu1 %v3545_v9, %s3781_s9 }
0x2a2e   :  { %v2320_v33 = vpop.permute.xlu1 %2319 }
0x2a2f   :  { %v4757_v40 = vmul.f32 %v2320_v33, %v2305_v22 }
0x2a31   :  { %2332 = vrot.lane.b32.xlu0 %v4757_v40, %s3782_s15 }
0x2aa3   :  { %v4761_v48 = vpop.permute.xlu0 %2332 }
0x2aa4   :  { %3365 = vmatmul.msk.f32.vlgmr.msra.gmra.mxu1 %vm370_vm8, %v4761_v48 }
0x2aa5   :  { %2661 = vmatpush.msra.mxu1 %v4557_v20 }
0x2aa7   :  { %2662 = vmatpush.msra.mxu1 %v4559_v62 }
0x2aa9   :  { %2663 = vmatpush.msra.mxu1 %v4562_v23 }
0x2aab   :  { %2664 = vmatpush.msra.mxu1 %v4566_v27 }
0x2b21   :  { %v2353_v16 = vpop.f32.mrf.mxu1 }
0x2b22   :  { %v2356_v29 = vadd.f32 %v2353_v16, %v4051_v51 }
0x2b24   :  { %v2381_v10 = vadd.f32 %v2378_v63, %v2356_v29 }
0x2b26   :  { %v3367_v37 = vmul.f32 -1.442695, %v2381_v10 }
0x2b28   :  { %3546 = vpow2.f32 %v3367_v37 }
0x2b2e   :  { %v3547_v39 = vpop.eup %3546 }
0x2b2f   :  { %v2386_v45 = vadd.f32 1.0, %v3547_v39 }
0x2b31   :  { %3548 = vrcp.f32 %v2386_v45  ;;  %v2398_v20 = vand.u32 2147483648, %v2386_v45  ;;  %v2396_v23 = vand.u32 2147483647, %v2386_v45  ;;  %vm2392_vm11 = vweird.f32 %v2386_v45 }
0x2b32   :  { %3550 = vtanh.f32 %v2381_v10 }
0x2b33   :  { %v2399_v27 = vor.u32 1.1754944e-38, %v2398_v20  ;;  %vm2397_vm15 = vcmp.eq.f32.partialorder %v2396_v23, 8.507059e+37 }
0x2b37   :  { %v3549_v36 = vpop.eup %3548 }
0x2b38   :  { %v2388_v47 = vmul.f32 %v3549_v36, %v2386_v45  ;;  %vm2393_vm4 = vweird.f32 %v3549_v36  ;;  %v3551_v6 = vpop.eup %3550 }
0x2b39   :  { %vm2394_vm12 = vmor %vm2392_vm11, %vm2393_vm4 }
0x2b3a   :  { %v2389_v30 = vsub.f32 1.0, %v2388_v47 }
0x2b3c   :  { %v2390_v62 = vmul.f32 %v3549_v36, %v2389_v30 }
0x2b3e   :  { %v2391_v58 = vadd.f32 %v3549_v36, %v2390_v62 }
0x2b40   :  { %v2395_v51 = vsel %vm2394_vm12, %v3549_v36, %v2391_v58 }
0x2b41   :  { %v2400_v44 = vsel %vm2397_vm15, %v2399_v27, %v2395_v51 }
0x2b42   :  { %v2402_v25 = vsel %vm4057_vm9, %v3551_v6, %v2400_v44 }
0x2b43   :  { %2405 = vrot.lane.b32.xlu1 %v2402_v25, %s3781_s9  ;;  %v2403_v35 = vmul.f32 %v2402_v25, %v4682_v11  ;;  %v2741_v11 = vld [vmem:[#allocation6] sm:$0xff] }
0x2bb5   :  { %v2406_v15 = vpop.permute.xlu1 %2405 }
0x2bb6   :  { %v2408_v24 = vmul.f32 %v2406_v15, %v2402_v25 }
0x2bb8   :  { %2410 = vrot.lane.b32.xlu2 %v2408_v24, %s3782_s15 }
0x2c12   :  { %v2411_v34 = vpop.permute.xlu2 %2410 }
0x2c13   :  { %v4775_v38 = vadd.f32 %v2411_v34, %v2403_v35 }
0x2c15   :  { %3552 = vtanh.f32 %v4775_v38 }
0x2c1b   :  { %v3553_v43 = vpop.eup %3552 }
0x2c1c   :  { %2416 = vrot.lane.b32.xlu1 %v3553_v43, %s3781_s9 }
0x2c8e   :  { %v2417_v61 = vpop.permute.xlu1 %2416 }
0x2c8f   :  { %v2419_v0 = vmul.f32 %v2417_v61, %v2402_v25 }
0x2c91   :  { %2425 = vrot.lane.b32.xlu0 %v2419_v0, %s3782_s15 }
0x2d03   :  { %v2426_v49 = vpop.permute.xlu0 %2425 }
0x2d04   :  { %3368 = vmatmul.msk.f32.vlgmr.msrb.gmra.mxu0 %vm370_vm8, %v2426_v49 }
0x2d05   :  { %2757 = vmatpush.msrb.mxu0 %v2744_v54 }
0x2d07   :  { %2758 = vmatpush.msrb.mxu0 %v2743_v2 }
0x2d09   :  { %2759 = vmatpush.msrb.mxu0 %v2742_v55 }
0x2d0b   :  { %2760 = vmatpush.msrb.mxu0 %v2741_v11 }
0x2d0c   :  { %3372 = vmatmul.msk.f32.vlgmr.msra.gmra.mxu0 %vm370_vm8, %v2426_v49 }
0x2d14   :  { %3376 = vmatmul.msk.f32.vlgmr.msrb.gmra.mxu0 %vm370_vm8, %v2426_v49 }
0x2d81   :  { %v2446_v42 = vpop.f32.mrf.mxu0 }
0x2d82   :  { %v2450_v1 = vrot.slane %v2446_v42, 1  ;;  %v2451_v56 = vperm.slane %v2446_v42, 0 }
0x2d84   :  { %v2452_v57 = vperm.slane %v2450_v1, 0  ;;  %v2455_v17 = vadd.f32 %v2451_v56, %v4142_v46 }
0x2d86   :  { %v2456_v60 = vadd.f32 %v2452_v57, %v4144_v53  ;;  %3554 = vtanh.f32 %v2455_v17 }
0x2d88   :  { %3556 = vtanh.f32 %v2456_v60 }
0x2d8c   :  { %v3555_v22 = vpop.eup %3554 }
0x2d8d   :  { %v2459_v18 = vmul.f32 %v4535_v13, %v3555_v22 }
0x2d8e   :  { %v3557_v14 = vpop.eup %3556 }
0x2d8f   :  { %v2461_v4 = vsel %vm539_vm13, %v2459_v18, 0.0  ;;  %v2460_v8 = vmul.f32 %v4535_v13, %v3557_v14 }
0x2d90   :  { %2462 = vadd.xlane.f32.xlu1 %v2461_v4 }
0x2d91   :  { %v2464_v9 = vsel %vm539_vm13, %v2460_v8, 0.0 }
0x2d92   :  { %2465 = vadd.xlane.f32.xlu0 %v2464_v9 }
0x2e03   :  { %v2463_v41 = vpop.xlane.xlu1 %2462 }
0x2e04   :  { %v2467_v59 = vmul.f32 %v3966_v26, %v2463_v41 }
0x2e05   :  { %v2466_v31 = vpop.xlane.xlu0 %2465 }
0x2e06   :  { %v2468_v32 = vmul.f32 %v3969_v28, %v2466_v31  ;;  %v2471_v33 = vperm.slane %v2467_v59, %v3957_v19 }
0x2e08   :  { %v2472_v16 = vperm.slane %v2468_v32, %v3957_v19 }
0x2e0a   :  { %v2473_v29 = vsel %vm179_vm6, %v2472_v16, %v2471_v33 }
0x2e0b   :  { %v2475_v63 = vsel %vm182_vm7, %v2473_v29, -inf }
0x2e0c   :  { %2476 = vmax.xlane.f32.xlu2 %v2475_v63 }
0x2e7f   :  { %v2477_v13 = vpop.xlane.xlu2 %2476 }
0x2e80   :  { %v2479_v10 = vperm.slane %v2477_v13, 0  ;;  %v2480_v37 = vperm.slane %v2477_v13, 1 }
0x2e82   :  { %v2483_v39 = vsub.f32 %v2467_v59, %v2479_v10  ;;  %v2484_v45 = vsub.f32 %v2468_v32, %v2480_v37  ;;  %v2641_v59 = vpop.f32.mrf.mxu0 }
0x2e84   :  { %v2485_v36 = vmul.f32 1.442695, %v2483_v39  ;;  %v2487_v47 = vmul.f32 1.442695, %v2484_v45 }
0x2e86   :  { %3558 = vpow2.f32 %v2485_v36 }
0x2e87   :  { %3560 = vpow2.f32 %v2487_v47 }
0x2e8c   :  { %v3559_v30 = vpop.eup %3558 }
0x2e8d   :  { %v3561_v20 = vpop.eup %3560  ;;  %2509 = vperm.xlu1 %3407, %v3559_v30   ;;  %v2489_v62 = vmul.f32 %v3559_v30, %v3966_v26 }
0x2e8e   :  { %2512 = vperm.xlu0 %3405, %v3561_v20   ;;  %v2490_v23 = vmul.f32 %v3561_v20, %v3969_v28 }
0x2e8f   :  { %2494 = vperm.xlu2 %3406, %v2489_v62  }
0x2e95   :  { %2497 = vperm.xlu1 %3407, %v2490_v23  }
0x2ee9   :  { %v2495_v15 = vpop.permute.xlu2 %2494 }
0x2eea   :  { %v2499_v35 = vperm.slane %v2495_v15, %v3957_v19 }
0x2eff   :  { %v2510_v58 = vpop.permute.xlu1 %2509 }
0x2f00   :  { %v2513_v27 = vpop.permute.xlu0 %2512  ;;  %v2514_v51 = vperm.slane %v2510_v58, %v3957_v19 }
0x2f01   :  { %v2515_v6 = vperm.slane %v2513_v27, %v3957_v19 }
0x2f03   :  { %v2516_v44 = vsel %vm179_vm6, %v2515_v6, %v2514_v51 }
0x2f04   :  { %v2518_v25 = vsel %vm182_vm7, %v2516_v44, 0.0 }
0x2f05   :  { %2519 = vadd.xlane.f32.xlu0 %v2518_v25 }
0x2f07   :  { %v2498_v24 = vpop.permute.xlu1 %2497 }
0x2f08   :  { %v2500_v34 = vperm.slane %v2498_v24, %v3957_v19 }
0x2f0a   :  { %v2501_v43 = vsel %vm179_vm6, %v2500_v34, %v2499_v35  ;;  %v2762_v35 = vpop.f32.mrf.mxu0 }
0x2f0b   :  { %v2503_v61 = vsel %vm182_vm7, %v2501_v43, 0.0 }
0x2f0c   :  { %2504 = vadd.xlane.f32.xlu2 %v2503_v61 }
0x2f78   :  { %v2520_v0 = vpop.xlane.xlu0 %2519 }
0x2f79   :  { %v2521_v54 = vmul.f32 1e-13, %v2520_v0 }
0x2f7f   :  { %v2505_v49 = vpop.xlane.xlu2 %2504 }
0x2f80   :  { %v2522_v2 = vadd.f32 %v2521_v54, %v2505_v49 }
0x2f82   :  { %3562 = vrcp.f32 %v2522_v2 }
0x2f88   :  { %v3563_v55 = vpop.eup %3562 }
0x2f89   :  { %v2526_v11 = vperm.slane %v3563_v55, 1  ;;  %v2525_v1 = vperm.slane %v3563_v55, 0 }
0x2f8b   :  { %v2530_v42 = vmul.f32 %v2526_v11, %v2490_v23  ;;  %v2529_v56 = vmul.f32 %v2525_v1, %v2489_v62 }
0x2f8d   :  { %2560 = vperm.xlu1 %3407, %v2530_v42  }
0x2f95   :  { %2533 = vperm.xlu1 %3407, %v2529_v56  }
0x2fff   :  { %v2561_v57 = vpop.permute.xlu1 %2560 }
0x3000   :  { %v2562_v17 = vperm.slane %v2561_v57, %v3957_v19 }
0x3002   :  { %3370 = vmatmul.msk.f32.vlgmr.msra.gmra.mxu3 %vm615_vm14, %v2562_v17 }
0x3003   :  { %2937 = vmatpush.msra.mxu3 %v4754_v50 }
0x3007   :  { %v2534_v60 = vpop.permute.xlu1 %2533 }
0x3008   :  { %v2535_v22 = vperm.slane %v2534_v60, %v3957_v19 }
0x300a   :  { %3369 = vmatmul.msk.f32.vlgmr.msrb.gmra.mxu1 %vm615_vm14, %v2535_v22 }
0x3012   :  { %3373 = vmatmul.msk.f32.vlgmr.msra.gmra.mxu1 %vm370_vm8, %v4761_v48 }
0x3085   :  { %v2582_v18 = vpop.f32.mrf.mxu3 }
0x3086   :  { %v2595_v14 = vrot.slane %v2582_v18, 7 }
0x3087   :  { %v2555_v4 = vpop.f32.mrf.mxu1 }
0x3088   :  { %v2596_v8 = vsel %vm179_vm6, %v2595_v14, %v2555_v4 }
0x3089   :  { %3371 = vmatmul.msk.f32.vlgmr.msra.gmra.mxu2 %vm160_vm0, %v2596_v8 }
0x308f   :  { %v2666_v31 = vpop.f32.mrf.mxu1 }
0x310c   :  { %v2616_v9 = vpop.f32.mrf.mxu2 }
0x310d   :  { %v2619_v41 = vadd.f32 %v4652_v7, %v2616_v9 }
0x310f   :  { %v2644_v50 = vadd.f32 %v2641_v59, %v2619_v41  ;;  %v2807_v41 = vld [vmem:[%s4987_s10 + $0x18] sm:$0xff]  ;;  %v2806_v59 = vld [vmem:[%s4987_s10 + $0x10] sm:$0xff] }
0x3110   :  { %2825 = vmatpush.msrb.mxu1 %v2807_v41 }
0x3111   :  { %v2669_v32 = vadd.f32 %v2666_v31, %v2644_v50  ;;  %v2805_v50 = vld [vmem:[%s4987_s10 + $0x8] sm:$0xff] }
0x3112   :  { %2826 = vmatpush.msrb.mxu1 %v2806_v59 }
0x3113   :  { %v3374_v33 = vmul.f32 -1.442695, %v2669_v32 }
0x3114   :  { %2827 = vmatpush.msrb.mxu1 %v2805_v50 }
0x3115   :  { %3564 = vpow2.f32 %v3374_v33  ;;  %v3007_v33 = vld [vmem:[#allocation7 + $0x18] sm:$0xff] }
0x311b   :  { %v3565_v16 = vpop.eup %3564 }
0x311c   :  { %v2674_v29 = vadd.f32 1.0, %v3565_v16  ;;  %v3006_v16 = vld [vmem:[#allocation7 + $0x10] sm:$0xff] }
0x311e   :  { %3566 = vrcp.f32 %v2674_v29  ;;  %v2686_v10 = vand.u32 2147483648, %v2674_v29  ;;  %v2684_v39 = vand.u32 2147483647, %v2674_v29  ;;  %vm2680_vm3 = vweird.f32 %v2674_v29 }
0x311f   :  { %3568 = vtanh.f32 %v2669_v32 }
0x3120   :  { %v2687_v7 = vor.u32 1.1754944e-38, %v2686_v10  ;;  %vm2685_vm11 = vcmp.eq.f32.partialorder %v2684_v39, 8.507059e+37 }
0x3124   :  { %v3567_v48 = vpop.eup %3566 }
0x3125   :  { %v2676_v63 = vmul.f32 %v3567_v48, %v2674_v29  ;;  %vm2681_vm2 = vweird.f32 %v3567_v48  ;;  %v3569_v47 = vpop.eup %3568  ;;  %v3005_v29 = vld [vmem:[#allocation7 + $0x8] sm:$0xff] }
0x3126   :  { %vm2682_vm4 = vmor %vm2680_vm3, %vm2681_vm2 }
0x3127   :  { %v2677_v13 = vsub.f32 1.0, %v2676_v63 }
0x3129   :  { %v2678_v37 = vmul.f32 %v3567_v48, %v2677_v13 }
0x312b   :  { %v2679_v45 = vadd.f32 %v3567_v48, %v2678_v37 }
0x312d   :  { %v2683_v36 = vsel %vm2682_vm4, %v3567_v48, %v2679_v45  ;;  %v3004_v48 = vld [vmem:[#allocation7] sm:$0xff] }
0x312e   :  { %v2688_v30 = vsel %vm2685_vm11, %v2687_v7, %v2683_v36 }
0x312f   :  { %v2690_v20 = vsel %vm4057_vm9, %v3569_v47, %v2688_v30  ;;  %v3617_v47 = vld [vmem:[%s4989_s12] ss:$0 sm:$0xff] }
0x3130   :  { %2693 = vrot.lane.b32.xlu1 %v2690_v20, %s3781_s9  ;;  %v2691_v58 = vmul.f32 %v2690_v20, %v4747_v3 }
0x31a2   :  { %v2694_v62 = vpop.permute.xlu1 %2693 }
0x31a3   :  { %v2696_v23 = vmul.f32 %v2694_v62, %v2690_v20 }
0x31a5   :  { %2698 = vrot.lane.b32.xlu1 %v2696_v23, %s3782_s15 }
0x3217   :  { %v2699_v27 = vpop.permute.xlu1 %2698 }
0x3218   :  { %v4820_v51 = vadd.f32 %v2699_v27, %v2691_v58 }
0x321a   :  { %3570 = vtanh.f32 %v4820_v51 }
0x3220   :  { %v3571_v6 = vpop.eup %3570 }
0x3221   :  { %2704 = vrot.lane.b32.xlu1 %v3571_v6, %s3781_s9 }
0x3293   :  { %v2705_v44 = vpop.permute.xlu1 %2704 }
0x3294   :  { %v4824_v25 = vmul.f32 %v2705_v44, %v2690_v20 }
0x3296   :  { %2716 = vrot.lane.b32.xlu0 %v4824_v25, %s3782_s15  ;;  %v3098_v5 = vrot.slane %v4824_v25, 6 }
0x3308   :  { %v4828_v15 = vpop.permute.xlu0 %2716 }
0x3309   :  { %3375 = vmatmul.msk.f32.vlgmr.msrb.gmra.mxu3 %vm370_vm8, %v4828_v15 }
0x338c   :  { %v2737_v3 = vpop.f32.mrf.mxu3 }
0x338d   :  { %v2740_v24 = vadd.f32 %v2737_v3, %v4053_v52 }
0x338f   :  { %v2765_v34 = vadd.f32 %v2762_v35, %v2740_v24 }
0x3391   :  { %v3377_v43 = vmul.f32 -1.442695, %v2765_v34 }
0x3393   :  { %3572 = vpow2.f32 %v3377_v43 }
0x3399   :  { %v3573_v61 = vpop.eup %3572 }
0x339a   :  { %v2770_v0 = vadd.f32 1.0, %v3573_v61 }
0x339c   :  { %3574 = vrcp.f32 %v2770_v0  ;;  %v2782_v55 = vand.u32 2147483648, %v2770_v0  ;;  %v2780_v42 = vand.u32 2147483647, %v2770_v0  ;;  %vm2776_vm15 = vweird.f32 %v2770_v0 }
0x339d   :  { %3576 = vtanh.f32 %v2765_v34 }
0x339e   :  { %v2783_v56 = vor.u32 1.1754944e-38, %v2782_v55  ;;  %vm2781_vm3 = vcmp.eq.f32.partialorder %v2780_v42, 8.507059e+37 }
0x33a2   :  { %v3575_v54 = vpop.eup %3574 }
0x33a3   :  { %v2772_v49 = vmul.f32 %v3575_v54, %v2770_v0  ;;  %vm2777_vm12 = vweird.f32 %v3575_v54  ;;  %v3577_v57 = vpop.eup %3576 }
0x33a4   :  { %vm2778_vm2 = vmor %vm2776_vm15, %vm2777_vm12  ;;  %vm3297_vm15 = vcmask 1024  }
0x33a5   :  { %v2773_v2 = vsub.f32 1.0, %v2772_v49 }
0x33a7   :  { %v2774_v11 = vmul.f32 %v3575_v54, %v2773_v2 }
0x33a9   :  { %v2775_v1 = vadd.f32 %v3575_v54, %v2774_v11 }
0x33ab   :  { %v2779_v52 = vsel %vm2778_vm2, %v3575_v54, %v2775_v1 }
0x33ac   :  { %v2784_v17 = vsel %vm2781_vm3, %v2783_v56, %v2779_v52 }
0x33ad   :  { %v2786_v60 = vsel %vm4057_vm9, %v3577_v57, %v2784_v17 }
0x33ae   :  { %2789 = vrot.lane.b32.xlu2 %v2786_v60, %s3781_s9  ;;  %v2787_v14 = vmul.f32 %v2786_v60, %v4775_v38  ;;  %v2804_v38 = vld [vmem:[%s4987_s10] sm:$0xff] }
0x33af   :  { %2828 = vmatpush.msrb.mxu1 %v2804_v38 }
0x33b1   :  { %3020 = vmatpush.msra.mxu1 %v3007_v33 }
0x33b3   :  { %3021 = vmatpush.msra.mxu1 %v3006_v16 }
0x33b5   :  { %3022 = vmatpush.msra.mxu1 %v3005_v29  ;;  %v3114_v29 = vld [vmem:[#allocation10 + $0x18] sm:$0xff] }
0x33b6   :  { %3141 = vmatpush.msra.mxu2 %v3114_v29 }
0x33b7   :  { %3023 = vmatpush.msra.mxu1 %v3004_v48  ;;  %v3113_v48 = vld [vmem:[#allocation10 + $0x10] sm:$0xff] }
0x33b8   :  { %3142 = vmatpush.msra.mxu2 %v3113_v48 }
0x3408   :  { %v2790_v22 = vpop.permute.xlu2 %2789 }
0x3409   :  { %v2792_v18 = vmul.f32 %v2790_v22, %v2786_v60 }
0x340b   :  { %2794 = vrot.lane.b32.xlu1 %v2792_v18, %s3782_s15 }
0x347d   :  { %v2795_v4 = vpop.permute.xlu1 %2794 }
0x347e   :  { %v2797_v8 = vadd.f32 %v2795_v4, %v2787_v14 }
0x3480   :  { %3578 = vtanh.f32 %v2797_v8 }
0x3486   :  { %v3579_v9 = vpop.eup %3578 }
0x3487   :  { %2800 = vrot.lane.b32.xlu1 %v3579_v9, %s3781_s9 }
0x34f9   :  { %v2801_v31 = vpop.permute.xlu1 %2800 }
0x34fa   :  { %v2803_v32 = vmul.f32 %v2801_v31, %v2786_v60 }
0x34fc   :  { %2809 = vrot.lane.b32.xlu0 %v2803_v32, %s3782_s15 }
0x356e   :  { %v2810_v63 = vpop.permute.xlu0 %2809 }
0x356f   :  { %3378 = vmatmul.msk.f32.vlgmr.msrb.gmra.mxu1 %vm370_vm8, %v2810_v63 }
0x3577   :  { %3382 = vmatmul.msk.f32.vlgmr.msra.gmra.mxu1 %vm370_vm8, %v2810_v63  ;;  %v3112_v63 = vld [vmem:[#allocation10 + $0x8] sm:$0xff] }
0x3578   :  { %3143 = vmatpush.msra.mxu2 %v3112_v63 }
0x35ec   :  { %v2830_v13 = vpop.f32.mrf.mxu1 }
0x35ed   :  { %v2834_v10 = vrot.slane %v2830_v13, 1  ;;  %v2835_v37 = vperm.slane %v2830_v13, 0  ;;  %v3111_v13 = vld [vmem:[#allocation10] sm:$0xff] }
0x35ee   :  { %3144 = vmatpush.msra.mxu2 %v3111_v13 }
0x35ef   :  { %v2836_v39 = vperm.slane %v2834_v10, 0  ;;  %v2839_v45 = vadd.f32 %v2835_v37, %v4142_v46  ;;  %v3031_v10 = vld [vmem:[#allocation9 + $0x10] sm:$0xff]  ;;  %v3030_v37 = vld [vmem:[#allocation9 + $0x8] sm:$0xff] }
0x35f1   :  { %v2840_v7 = vadd.f32 %v2836_v39, %v4144_v53  ;;  %3580 = vtanh.f32 %v2839_v45  ;;  %v3029_v39 = vld [vmem:[#allocation9] sm:$0xff]  ;;  %v2976_v45 = vld [vmem:[%s4990_s13 + $0x38] sm:$0xff] }
0x35f2   :  { %2991 = vmatpush.msra.mxu0 %v2976_v45  ;;  %v3109_v45 = vsel %vm3103_vm5, %v4757_v40, %v3098_v5 }
0x35f3   :  { %3582 = vtanh.f32 %v2840_v7  ;;  %v2975_v7 = vld [vmem:[%s4990_s13 + $0x30] sm:$0xff] }
0x35f4   :  { %2992 = vmatpush.msra.mxu0 %v2975_v7 }
0x35f7   :  { %v3581_v36 = vpop.eup %3580 }
0x35f8   :  { %v2843_v30 = vmul.f32 %v3617_v47, %v3581_v36  ;;  %v2974_v36 = vld [vmem:[%s4990_s13 + $0x28] sm:$0xff] }
0x35f9   :  { %v3583_v20 = vpop.eup %3582  ;;  %2993 = vmatpush.msra.mxu0 %v2974_v36 }
0x35fa   :  { %v2845_v62 = vsel %vm539_vm13, %v2843_v30, 0.0  ;;  %v2844_v23 = vmul.f32 %v3617_v47, %v3583_v20 }
0x35fb   :  { %2846 = vadd.xlane.f32.xlu1 %v2845_v62 }
0x35fc   :  { %v2848_v58 = vsel %vm539_vm13, %v2844_v23, 0.0 }
0x35fd   :  { %2849 = vadd.xlane.f32.xlu2 %v2848_v58  ;;  %v2973_v58 = vld [vmem:[%s4990_s13 + $0x20] sm:$0xff] }
0x35fe   :  { %2994 = vmatpush.msra.mxu0 %v2973_v58 }
0x366e   :  { %v2847_v27 = vpop.xlane.xlu1 %2846 }
0x366f   :  { %v2851_v46 = vmul.f32 %v3966_v26, %v2847_v27  ;;  %v2972_v27 = vld [vmem:[%s4990_s13 + $0x18] sm:$0xff] }
0x3670   :  { %v2850_v53 = vpop.xlane.xlu2 %2849  ;;  %2995 = vmatpush.msra.mxu0 %v2972_v27 }
0x3671   :  { %v2852_v6 = vmul.f32 %v3969_v28, %v2850_v53  ;;  %v2855_v44 = vperm.slane %v2851_v46, %v3957_v19  ;;  %v2970_v53 = vld [vmem:[%s4990_s13 + $0x8] sm:$0xff] }
0x3673   :  { %v2856_v3 = vperm.slane %v2852_v6, %v3957_v19 }
0x3675   :  { %v2857_v24 = vsel %vm179_vm6, %v2856_v3, %v2855_v44  ;;  %v3156_v44 = vld [vmem:[%s4981_s4 + $0x10] sm:$0xff]  ;;  %v3155_v3 = vld [vmem:[%s4981_s4 + $0x8] sm:$0xff] }
0x3676   :  { %v2859_v35 = vsel %vm182_vm7, %v2857_v24, -inf  ;;  %v3154_v24 = vld [vmem:[%s4981_s4] sm:$0xff] }
0x3677   :  { %2860 = vmax.xlane.f32.xlu0 %v2859_v35 }
0x36ea   :  { %v2861_v34 = vpop.xlane.xlu0 %2860 }
0x36eb   :  { %v2863_v43 = vperm.slane %v2861_v34, 0  ;;  %v2864_v61 = vperm.slane %v2861_v34, 1  ;;  %v4925_v34 = vld [vmem:[%s4995_s18] ss:$0 sm:$0xff] }
0x36ed   :  { %v2867_v0 = vsub.f32 %v2851_v46, %v2863_v43  ;;  %v2868_v54 = vsub.f32 %v2852_v6, %v2864_v61  ;;  %v2971_v46 = vld [vmem:[%s4990_s13 + $0x10] sm:$0xff]  ;;  %v3157_v6 = vld [vmem:[%s4981_s4 + $0x18] sm:$0xff] }
0x36ee   :  { %2996 = vmatpush.msra.mxu0 %v2971_v46  ;;  %3176 = vmatpush.msrb.mxu1 %v3157_v6 }
0x36ef   :  { %v2869_v49 = vmul.f32 1.442695, %v2867_v0  ;;  %v2871_v2 = vmul.f32 1.442695, %v2868_v54 }
0x36f0   :  { %2997 = vmatpush.msra.mxu0 %v2970_v53  ;;  %3177 = vmatpush.msrb.mxu1 %v3156_v44 }
0x36f1   :  { %3584 = vpow2.f32 %v2869_v49 }
0x36f2   :  { %3586 = vpow2.f32 %v2871_v2  ;;  %3178 = vmatpush.msrb.mxu1 %v3155_v3 }
0x36f4   :  { %3179 = vmatpush.msrb.mxu1 %v3154_v24 }
0x36f7   :  { %v3585_v55 = vpop.eup %3584 }
0x36f8   :  { %v3587_v11 = vpop.eup %3586  ;;  %2893 = vperm.xlu1 %3407, %v3585_v55   ;;  %v2873_v42 = vmul.f32 %v3585_v55, %v3966_v26 }
0x36f9   :  { %2896 = vperm.xlu2 %3406, %v3587_v11   ;;  %v2874_v1 = vmul.f32 %v3587_v11, %v3969_v28  ;;  %v3618_v11 = vld [vmem:[%s4993_s16] ss:$0 sm:$0xff] }
0x36fa   :  { %2878 = vperm.xlu0 %3405, %v2873_v42  }
0x3700   :  { %2881 = vperm.xlu1 %3407, %v2874_v1  }
0x3753   :  { %v2897_v56 = vpop.permute.xlu2 %2896 }
0x3754   :  { %v2899_v57 = vperm.slane %v2897_v56, %v3957_v19 }
0x376a   :  { %v2894_v52 = vpop.permute.xlu1 %2893 }
0x376b   :  { %v2898_v17 = vperm.slane %v2894_v52, %v3957_v19 }
0x376c   :  { %v2879_v18 = vpop.permute.xlu0 %2878 }
0x376d   :  { %v2900_v60 = vsel %vm179_vm6, %v2899_v57, %v2898_v17  ;;  %v2883_v26 = vperm.slane %v2879_v18, %v3957_v19 }
0x376e   :  { %v2902_v22 = vsel %vm182_vm7, %v2900_v60, 0.0 }
0x376f   :  { %2903 = vadd.xlane.f32.xlu0 %v2902_v22 }
0x3772   :  { %v2882_v14 = vpop.permute.xlu1 %2881 }
0x3773   :  { %v2884_v4 = vperm.slane %v2882_v14, %v3957_v19 }
0x3775   :  { %v2885_v28 = vsel %vm179_vm6, %v2884_v4, %v2883_v26 }
0x3776   :  { %v2887_v8 = vsel %vm182_vm7, %v2885_v28, 0.0 }
0x3777   :  { %2888 = vadd.xlane.f32.xlu2 %v2887_v8 }
0x3783   :  { %3121 = vrot.lane.b32.xlu0 %v4666_v12, %s3782_s15  ;;  %v3032_v12 = vld [vmem:[#allocation9 + $0x18] sm:$0xff] }
0x3784   :  { %3045 = vmatpush.msrb.mxu3 %v3032_v12 }
0x3786   :  { %3046 = vmatpush.msrb.mxu3 %v3031_v10 }
0x3788   :  { %3047 = vmatpush.msrb.mxu3 %v3030_v37 }
0x378a   :  { %3048 = vmatpush.msrb.mxu3 %v3029_v39 }
0x37e2   :  { %v2904_v9 = vpop.xlane.xlu0 %2903 }
0x37e3   :  { %v2905_v41 = vmul.f32 1e-13, %v2904_v9 }
0x37ea   :  { %v2889_v59 = vpop.xlane.xlu2 %2888 }
0x37eb   :  { %v2906_v50 = vadd.f32 %v2905_v41, %v2889_v59 }
0x37ed   :  { %3588 = vrcp.f32 %v2906_v50 }
0x37f3   :  { %v3589_v38 = vpop.eup %3588 }
0x37f4   :  { %v2910_v31 = vperm.slane %v3589_v38, 1  ;;  %v2909_v33 = vperm.slane %v3589_v38, 0 }
0x37f5   :  { %v3122_v23 = vpop.permute.xlu0 %3121 }
0x37f6   :  { %v2914_v32 = vmul.f32 %v2910_v31, %v2874_v1  ;;  %v2913_v16 = vmul.f32 %v2909_v33, %v2873_v42  ;;  %v3025_v1 = vpop.f32.mrf.mxu1 }
0x37f8   :  { %2944 = vperm.xlu1 %3407, %v2914_v32  }
0x3800   :  { %2917 = vperm.xlu1 %3407, %v2913_v16  }
0x386a   :  { %v2945_v47 = vpop.permute.xlu1 %2944 }
0x386b   :  { %v2946_v30 = vperm.slane %v2945_v47, %v3957_v19 }
0x386d   :  { %3380 = vmatmul.msk.f32.vlgmr.msrb.gmra.mxu2 %vm615_vm14, %v2946_v30 }
0x3872   :  { %v2918_v20 = vpop.permute.xlu1 %2917 }
0x3873   :  { %v2919_v62 = vperm.slane %v2918_v20, %v3957_v19 }
0x3875   :  { %3379 = vmatmul.msk.f32.vlgmr.msra.gmra.mxu3 %vm615_vm14, %v2919_v62  ;;  %3385 = vmatmul.msk.f32.vlgmr.msra.gmra.mxu2 %vm370_vm8, %v3122_v23 }
0x387d   :  { %3383 = vmatmul.msk.f32.vlgmr.msrb.gmra.mxu3 %vm370_vm8, %v4828_v15  ;;  %v2969_v15 = vld [vmem:[%s4990_s13] sm:$0xff] }
0x387e   :  { %2998 = vmatpush.msra.mxu0 %v2969_v15 }
0x38f0   :  { %v2966_v35 = vpop.f32.mrf.mxu2 }
0x38f1   :  { %v2979_v43 = vrot.slane %v2966_v35, 7 }
0x38f8   :  { %v2939_v61 = vpop.f32.mrf.mxu3  ;;  %v3146_v0 = vpop.f32.mrf.mxu2 }
0x38f9   :  { %v2980_v54 = vsel %vm179_vm6, %v2979_v43, %v2939_v61  ;;  %v3147_v49 = vadd.f32 %v4925_v34, %v3146_v0 }
0x38fa   :  { %3381 = vmatmul.msk.f32.vlgmr.msra.gmra.mxu0 %vm160_vm0, %v2980_v54 }
0x38fb   :  { %3590 = vtanh.f32 %v3147_v49 }
0x3900   :  { %v3050_v52 = vpop.f32.mrf.mxu3 }
0x3901   :  { %v3591_v2 = vpop.eup %3590 }
0x3902   :  { %3387 = vmatmul.msk.f32.vlgmr.msrb.gmra.mxu1 %vm370_vm8, %v3591_v2 }
0x3977   :  { %v3000_v55 = vpop.f32.mrf.mxu0 }
0x3978   :  { %v3003_v42 = vadd.f32 %v3618_v11, %v3000_v55 }
0x397a   :  { %v3028_v56 = vadd.f32 %v3025_v1, %v3003_v42 }
0x397c   :  { %v3053_v57 = vadd.f32 %v3050_v52, %v3028_v56 }
0x397e   :  { %v3384_v17 = vmul.f32 -1.442695, %v3053_v57 }
0x397f   :  { %v3181_v13 = vpop.f32.mrf.mxu1 }
0x3980   :  { %3592 = vpow2.f32 %v3384_v17  ;;  %v3187_v12 = vsel %vm336_vm1, %v3181_v13, -inf }
0x3986   :  { %v3593_v60 = vpop.eup %3592 }
0x3987   :  { %v3058_v22 = vadd.f32 1.0, %v3593_v60 }
0x3989   :  { %3594 = vrcp.f32 %v3058_v22  ;;  %v3070_v4 = vand.u32 2147483648, %v3058_v22  ;;  %v3068_v8 = vand.u32 2147483647, %v3058_v22  ;;  %vm3064_vm6 = vweird.f32 %v3058_v22 }
0x398a   :  { %3596 = vtanh.f32 %v3053_v57 }
0x398b   :  { %v3071_v41 = vor.u32 1.1754944e-38, %v3070_v4  ;;  %vm3069_vm13 = vcmp.eq.f32.partialorder %v3068_v8, 8.507059e+37 }
0x398f   :  { %v3595_v18 = vpop.eup %3594 }
0x3990   :  { %v3060_v14 = vmul.f32 %v3595_v18, %v3058_v22  ;;  %vm3065_vm0 = vweird.f32 %v3595_v18  ;;  %v3597_v50 = vpop.eup %3596 }
0x3991   :  { %vm3066_vm7 = vmor %vm3064_vm6, %vm3065_vm0 }
0x3992   :  { %v3061_v26 = vsub.f32 1.0, %v3060_v14 }
0x3994   :  { %v3062_v28 = vmul.f32 %v3595_v18, %v3061_v26 }
0x3996   :  { %v3063_v9 = vadd.f32 %v3595_v18, %v3062_v28 }
0x3998   :  { %v3067_v59 = vsel %vm3066_vm7, %v3595_v18, %v3063_v9 }
0x3999   :  { %v3072_v38 = vsel %vm3069_vm13, %v3071_v41, %v3067_v59 }
0x399a   :  { %v3074_v31 = vsel %vm4057_vm9, %v3597_v50, %v3072_v38  ;;  %vm3190_vm9 = vcmask 390144  }
0x399b   :  { %3077 = vrot.lane.b32.xlu1 %v3074_v31, %s3781_s9  ;;  %v3075_v16 = vmul.f32 %v3074_v31, %v4820_v51 }
0x3a0d   :  { %v3078_v32 = vpop.permute.xlu1 %3077 }
0x3a0e   :  { %v3080_v33 = vmul.f32 %v3078_v32, %v3074_v31 }
0x3a10   :  { %3082 = vrot.lane.b32.xlu1 %v3080_v33, %s3782_s15 }
0x3a82   :  { %v3083_v29 = vpop.permute.xlu1 %3082 }
0x3a83   :  { %v3085_v48 = vadd.f32 %v3083_v29, %v3075_v16 }
0x3a85   :  { %3598 = vtanh.f32 %v3085_v48 }
0x3a8b   :  { %v3599_v63 = vpop.eup %3598 }
0x3a8c   :  { %3088 = vrot.lane.b32.xlu1 %v3599_v63, %s3781_s9  ;;  %s5010_s9 = sld [smem:[#allocation17_spill]] }
0x3a92   :  { %v317_v46 = vld [vmem:[%s5010_s9 + $0x8] sm:$0x3f]  ;;  %v316_v53 = vld [vmem:[%s5010_s9] sm:$0xff] }
0x3a93   :  { %vm3232_vm14 = vcmp.ne.s32.totalorder %v316_v53, 0  ;;  %vm3233_vm5 = vcmp.ne.s32.totalorder %v317_v46, 0 }
0x3a94   :  { %v3391_v15 = vsel %vm3232_vm14, 1.0, %v3780_v21  ;;  %v3392_v35 = vsel %vm3233_vm5, 1.0, %v3780_v21 }
0x3a95   :  { %v3249_v6 = vrot.slane %v3391_v15, 2  ;;  %v3255_v44 = vrot.slane %v3391_v15, 4  ;;  %v3261_v24 = vrot.slane %v3391_v15, 6  ;;  %v3271_v43 = vrot.slane %v3392_v35, 2 }
0x3a96   :  { %v3277_v0 = vrot.slane %v3392_v35, 4 }
0x3a97   :  { %v3251_v3 = vadd.f32 %v3391_v15, %v3249_v6 }
0x3ab6   :  { %3188 = vmax.xlane.f32.xlu1 %v3187_v12 }
0x3afe   :  { %v3089_v10 = vpop.permute.xlu1 %3088 }
0x3aff   :  { %v3091_v37 = vmul.f32 %v3089_v10, %v3074_v31 }
0x3b01   :  { %v3101_v39 = vrot.slane %v3091_v37, 4 }
0x3b03   :  { %v3110_v51 = vsel %vm3105_vm10, %v3109_v45, %v3101_v39 }
0x3b04   :  { %3123 = vrot.lane.b32.xlu2 %v3110_v51, %s3782_s15 }
0x3b29   :  { %v4946_v7 = vpop.xlane.xlu1 %3188 }
0x3b2a   :  { %v3194_v36 = vsub.f32 %v3181_v13, %v4946_v7 }
0x3b2c   :  { %v3196_v47 = vmul.f32 1.442695, %v3194_v36 }
0x3b2e   :  { %3600 = vpow2.f32 %v3196_v47 }
0x3b34   :  { %v3601_v30 = vpop.eup %3600 }
0x3b35   :  { %v3200_v20 = vsel %vm336_vm1, %v3601_v30, 0.0 }
0x3b36   :  { %3201 = vadd.xlane.f32.xlu2 %v3200_v20 }
0x3b5e   :  { %v3124_v25 = vpop.permute.xlu2 %3123 }
0x3b5f   :  { %3386 = vmatmul.msk.f32.gmra.mxu2 %vm370_vm8, %v3124_v25 }
0x3ba9   :  { %v3202_v28 = vpop.xlane.xlu2 %3201 }
0x3be2   :  { %v3149_v62 = vpop.f32.mrf.mxu2 }
0x3be3   :  { %v3150_v40 = vadd.f32 %v4925_v34, %v3149_v62  ;;  %v3257_v34 = vadd.f32 %v3255_v44, %v3251_v3 }
0x3be5   :  { %3602 = vtanh.f32 %v3150_v40  ;;  %v3263_v61 = vadd.f32 %v3261_v24, %v3257_v34 }
0x3be7   :  { %v3265_v49 = vadd.f32 %v3392_v35, %v3263_v61 }
0x3be9   :  { %v3273_v55 = vadd.f32 %v3271_v43, %v3265_v49 }
0x3beb   :  { %v3603_v23 = vpop.eup %3602  ;;  %v4962_v42 = vadd.f32 %v3277_v0, %v3273_v55 }
0x3bec   :  { %3388 = vmatmul.msk.f32.gmra.mxu1 %vm370_vm8, %v3603_v23 }
0x3bed   :  { %v3280_v8 = vadd.f32 1e-13, %v4962_v42 }
0x3bef   :  { %v3290_v5 = vand.u32 2147483647, %v3280_v8  ;;  %v3292_v10 = vand.u32 2147483648, %v3280_v8 }
0x3bf1   :  { %v3293_v30 = vor.u32 1.1754944e-38, %v3292_v10  ;;  %vm3291_vm12 = vcmp.eq.f32.partialorder %v3290_v5, 8.507059e+37 }
0x3c69   :  { %v3184_v58 = vpop.f32.mrf.mxu1 }
0x3c6a   :  { %v3191_v27 = vsel %vm3190_vm9, %v3184_v58, -inf }
0x3c6b   :  { %3192 = vmax.xlane.f32.xlu0 %v3191_v27 }
0x3c7f   :  { %3216 = vperm.xlu0 %3405, %v317_v46  }
0x3cde   :  { %v3193_v54 = vpop.xlane.xlu0 %3192 }
0x3cdf   :  { %v3195_v2 = vsub.f32 %v3184_v58, %v3193_v54 }
0x3ce1   :  { %v3198_v11 = vmul.f32 1.442695, %v3195_v2 }
0x3ce3   :  { %3604 = vpow2.f32 %v3198_v11 }
0x3ce4   :  { %3606 = vlog2.f32 %v3202_v28 }
0x3ce5   :  { %3608 = vrcp.f32 %v3280_v8 }
0x3ce9   :  { %v3605_v1 = vpop.eup %3604 }
0x3cea   :  { %v3203_v56 = vsel %vm3190_vm9, %v3605_v1, 0.0  ;;  %v3607_v9 = vpop.eup %3606 }
0x3ceb   :  { %3204 = vadd.xlane.f32.xlu1 %v3203_v56  ;;  %v3609_v41 = vpop.eup %3608  ;;  %v3207_v59 = vmul.f32 0.6931472, %v3607_v9 }
0x3cec   :  { %vm3287_vm4 = vweird.f32 %v3609_v41 }
0x3ced   :  { %v3210_v38 = vadd.f32 %v3207_v59, %v4946_v7 }
0x3cf1   :  { %v3217_v57 = vpop.permute.xlu0 %3216 }
0x3cf2   :  { %vm3219_vm10 = vcmp.eq.s32.totalorder %v3957_v19, %v3217_v57 }
0x3cf3   :  { %v3390_v14 = vsel %vm3219_vm10, 1.0, %v3780_v21 }
0x3cf4   :  { %v3225_v26 = vmul.f32 %v3390_v14, %v3184_v58 }
0x3cf6   :  { %v3229_v4 = vsel %vm3190_vm9, %v3225_v26, 0.0 }
0x3d04   :  { %3213 = vperm.xlu1 %3407, %v316_v53  }
0x3d5e   :  { %v3205_v52 = vpop.xlane.xlu1 %3204 }
0x3d5f   :  { %3610 = vlog2.f32 %v3205_v52 }
0x3d65   :  { %v3611_v50 = vpop.eup %3610 }
0x3d66   :  { %v3209_v33 = vmul.f32 0.6931472, %v3611_v50 }
0x3d68   :  { %v3211_v63 = vadd.f32 %v3209_v33, %v3193_v54 }
0x3d76   :  { %v3214_v17 = vpop.permute.xlu1 %3213 }
0x3d77   :  { %vm3218_vm8 = vcmp.eq.s32.totalorder %v3957_v19, %v3214_v17  ;;  %v3282_v19 = vmul.f32 %v3609_v41, %v3280_v8 }
0x3d78   :  { %v3389_v60 = vsel %vm3218_vm8, 1.0, %v3780_v21 }
0x3d79   :  { %v3224_v22 = vmul.f32 %v3389_v60, %v3181_v13  ;;  %v3283_v32 = vsub.f32 1.0, %v3282_v19 }
0x3d7b   :  { %v3226_v18 = vsel %vm336_vm1, %v3224_v22, 0.0  ;;  %v3284_v48 = vmul.f32 %v3609_v41, %v3283_v32  ;;  %vm3286_vm1 = vweird.f32 %v3280_v8 }
0x3d7c   :  { %3227 = vadd.xlane.f32.xlu2 %v3226_v18  ;;  %vm3288_vm11 = vmor %vm3286_vm1, %vm3287_vm4 }
0x3d7d   :  { %v3285_v51 = vadd.f32 %v3609_v41, %v3284_v48 }
0x3d7f   :  { %v3289_v20 = vsel %vm3288_vm11, %v3609_v41, %v3285_v51 }
0x3d80   :  { %v3294_v58 = vsel %vm3291_vm12, %v3293_v30, %v3289_v20 }
0x3d84   :  { %3230 = vadd.xlane.f32.xlu2 %v3229_v4 }
0x3def   :  { %v3228_v31 = vpop.xlane.xlu2 %3227 }
0x3df0   :  { %v3238_v21 = vsub.f32 %v3210_v38, %v3228_v31 }
0x3df2   :  { %v3240_v16 = vmul.f32 %v3391_v15, %v3238_v21 }
0x3df4   :  { %v3245_v29 = vrot.slane %v3240_v16, 2  ;;  %v3252_v12 = vrot.slane %v3240_v16, 4  ;;  %v3258_v39 = vrot.slane %v3240_v16, 6 }
0x3df6   :  { %v3247_v13 = vadd.f32 %v3245_v29, %v3240_v16 }
0x3df7   :  { %v3231_v37 = vpop.xlane.xlu2 %3230 }
0x3df8   :  { %v3254_v45 = vadd.f32 %v3252_v12, %v3247_v13  ;;  %v3239_v36 = vsub.f32 %v3211_v63, %v3231_v37 }
0x3dfa   :  { %v3260_v7 = vadd.f32 %v3258_v39, %v3254_v45  ;;  %v3241_v47 = vmul.f32 %v3392_v35, %v3239_v36 }
0x3dfc   :  { %v3264_v25 = vadd.f32 %v3260_v7, %v3241_v47  ;;  %v3267_v62 = vrot.slane %v3241_v47, 2  ;;  %v3274_v23 = vrot.slane %v3241_v47, 4 }
0x3dfe   :  { %v3269_v40 = vadd.f32 %v3267_v62, %v3264_v25 }
0x3e00   :  { %v3276_v27 = vadd.f32 %v3274_v23, %v3269_v40 }
0x3e02   :  { %v3295_v46 = vmul.f32 %v3294_v58, %v3276_v27 }
0x3e04   :  { %v3296_v53 = vmul.f32 %v3295_v46, %v4962_v42 }
0x3e06   :  { %3298 = vst.msk [vmem:[%s4996_s19] sm:$0x3] %vm3297_vm15, %v3296_v53 }
0x3e07   :  { %3303 = vsyncpa [#allocation3], 1 }
0x3e08   :  { %3304 = vsyncpa [#allocation5], 1 }
0x3e09   :  { %3305 = vsyncpa [#allocation8], 1 }
0x3e0a   :  { %3306 = vsyncpa [#allocation11], 1 }

</bundles_post_ra>
